<compile_context>
chip_gen: v7x
topology: tpu7x:2x2x1
jax: 0.10.0
libtpu: 0.0.40
codegen_flags: <defaults>
</compile_context>

<pallas_src>
import jax
import jax.numpy as jnp
from jax.experimental import pallas as pl
from jax.experimental.pallas import tpu as pltpu

_LANE_BLK = 128      # per-tap column block width (keeps every slice lane-aligned)
_T1_TAPS = 10        # temporal1 kernel width
_T1_STRIDE = 3       # temporal1 stride
_T1_CH = 50          # temporal1 output channels
_CLS_TAPS = 6        # classifier kernel width
_N_CLS = 12          # classes


# ------------------------------ fused kernel -------------------------------

def _fused_forward_kernel(patch_ref, kfull_ref, wcat_ref, wclcat_ref, pk_ref,
                          out_ref, t_ref, u_ref):
    f32 = jnp.float32
    bf16 = jnp.bfloat16

    n_batch, n_cls = out_ref.shape          # (N, 12)
    n_rows = patch_ref.shape[0]             # N * W2
    w2 = n_rows // n_batch                  # 25
    w3 = (w2 - _T1_TAPS) // _T1_STRIDE + 1  # 6
    n_conv = n_batch * w3                   # N * W3 conv output rows
    r1 = (n_batch - 1) * w2 + _T1_STRIDE * (w3 - 1) + 1   # shift-add rows (temporal1)
    r2 = (n_batch - 1) * w3 + 1                           # shift-add rows (classifier)

    def bn_elu(v, gamma, beta):
        # Train-mode BatchNorm (batch stats over rows, biased var, eps=1e-3) + ELU.
        m = jnp.mean(v, axis=0, keepdims=True)
        var = jnp.mean((v - m) ** 2, axis=0, keepdims=True)
        y = (v - m) * jax.lax.rsqrt(var + 1e-3) * gamma + beta
        return jnp.where(y > 0, y, jnp.exp(jnp.minimum(y, 0.0)) - 1.0)

    # ---- unpack the consolidated small-parameter buffer (single DMA) ----------
    b_full = pk_ref[0:1, :]
    g1 = pk_ref[1:2, :]
    beta1 = pk_ref[2:3, :]
    g2 = pk_ref[3:4, 0:_T1_CH]
    beta2 = pk_ref[4:5, 0:_T1_CH]
    bcl = pk_ref[5:6, 0:n_cls]
    sel1 = pk_ref[6:6 + n_conv, 0:r1]                       # (N*W3, r1) 0/1
    sel2 = pk_ref[6 + n_conv:6 + n_conv + n_batch, 0:r2]    # (N, r2)    0/1

    # ---- spatial(1x1)+conv1+avgpool+conv2: one folded matmul (exact) ----------
    b1 = jnp.dot(patch_ref[...], kfull_ref[...],
                 preferred_element_type=f32) + b_full        # (N*W2, 300)
    act1 = bn_elu(b1, g1, beta1).astype(bf16)                # BN(300)+ELU

    # ---- temporal1 Conv2d(300,50,(1,10),s=(1,3)): 1 matmul + shift-add --------
    # t[m, k*128+d] = act1[m] . w_t1[d,:,k]; conv output at row m0 is
    # sum_k t[m0+k, k-th block]; only rows m0 = n*W2 + 3*w3 are kept (sel1).
    t_ref[...] = jnp.dot(act1, wcat_ref[...], preferred_element_type=f32)
    s = t_ref[0:r1, 0:_LANE_BLK]
    for k in range(1, _T1_TAPS):
        s = s + t_ref[k:k + r1, k * _LANE_BLK:(k + 1) * _LANE_BLK]
    c = jnp.dot(sel1, s[:, 0:_T1_CH], preferred_element_type=f32)  # (N*W3, 50)

    # ---- AvgPool2d((1,1)) identity; BatchNorm2d(50) + ELU ---------------------
    act2 = bn_elu(c, g2, beta2).astype(bf16)                 # rows ordered (n, w3)

    # ---- conv_classifier Conv2d(50,12,(1,6))+bias: 1 matmul + shift-add -------
    u_ref[...] = jnp.dot(act2, wclcat_ref[...], preferred_element_type=f32)
    v = u_ref[0:r2, 0:_LANE_BLK]
    for w in range(1, _CLS_TAPS):
        v = v + u_ref[w:w + r2, w * _LANE_BLK:(w + 1) * _LANE_BLK]
    logits = jnp.dot(sel2, v[:, 0:n_cls], preferred_element_type=f32) + bcl

    # ---- Softmax over the 12 classes (dim=1 of the NCHW tensor) ---------------
    z = logits - jnp.max(logits, axis=-1, keepdims=True)
    e = jnp.exp(z)
    out_ref[...] = e / jnp.sum(e, axis=-1, keepdims=True)


# ------------------------------- parameters --------------------------------

def init_params(key):
    ks = jax.random.split(key, 6)

    def w(k, shape, scale=0.05):
        return (scale * jax.random.normal(k, shape)).astype(jnp.float32)

    return dict(
        w_spatial=w(ks[0], (25, 64)),            # Conv2d(64,25,(1,1)).weight
        b_spatial=w(ks[1], (25,)),               # Conv2d(64,25,(1,1)).bias
        w_conv1=w(ks[2], (100, 25)),             # Conv2d(1,100,(1,25)).weight
        w_conv2=w(ks[3], (300, 100, 25)),        # Conv2d(100,300,(25,1)).weight
        g_bn1=jnp.ones((300,), jnp.float32),     # BatchNorm2d(300) gamma / beta
        b_bn1=jnp.zeros((300,), jnp.float32),
        w_t1=w(ks[4], (50, 300, 10)),            # Conv2d(300,50,(1,10)).weight
        g_bn2=jnp.ones((50,), jnp.float32),      # BatchNorm2d(50) gamma / beta
        b_bn2=jnp.zeros((50,), jnp.float32),
        w_cls=w(ks[5], (12, 50, 6)),             # Conv2d(50,12,(1,6)).weight
        b_cls=jnp.zeros((12,), jnp.float32),     # Conv2d(50,12,(1,6)).bias
    )


def _output_widths(width):
    w1 = (width - 25) // 10 + 1                  # Conv2d(1,100,(1,25),s=(1,10))
    w2 = (w1 - 3) // 3 + 1                       # AvgPool2d((1,3),(1,3))
    w3 = (w2 - _T1_TAPS) // _T1_STRIDE + 1       # Conv2d(300,50,(1,10),s=(1,3))
    return w1, w2, w3


def prepare_params(params, batch, width):
    """Fold / repack weights ONCE per parameter set (hoisted out of the per-call
    path per the performance review).  Returns only device arrays."""
    f32, bf16 = jnp.float32, jnp.bfloat16
    _, w2, w3 = _output_widths(width)
    assert w3 - _CLS_TAPS + 1 == 1, "classifier output width must be 1 for squeeze() -> (N,12)"

    # --- fold spatial(1x1+bias) . conv1(1x25,s10) . avgpool(1x3,s3) . conv2(25x1)
    #     into one (64*45, 300) matrix + (300,) bias (all linear => exact).
    E = jnp.zeros((100, 45), f32)
    for t in range(3):                          # pool taps folded into conv1 kernel
        E = E.at[:, 10 * t:10 * t + 25].add(params["w_conv1"])
    K12 = jnp.einsum("cj,och->jho", E, params["w_conv2"]) * (1.0 / 3.0)   # (45,25,300)
    k_full = jnp.einsum("hc,jho->cjo", params["w_spatial"], K12)
    k_full = k_full.reshape(64 * 45, 300).astype(bf16)                    # (2880,300)
    b_full = jnp.einsum("h,jho->o", params["b_spatial"], K12)             # (300,)

    # --- temporal1 taps column-stacked into one (300, 10*128) matrix (zero-padded
    #     so every per-tap slice inside the kernel is 128-lane aligned).
    wt = jnp.transpose(params["w_t1"], (2, 1, 0))                          # (10,300,50)
    wt = jnp.pad(wt, ((0, 0), (0, 0), (0, _LANE_BLK - _T1_CH)))
    w_cat = jnp.transpose(wt, (1, 0, 2)).reshape(300, _T1_TAPS * _LANE_BLK).astype(bf16)

    # --- classifier taps column-stacked into one (50, 6*128) matrix
    wc = jnp.transpose(params["w_cls"], (2, 1, 0))                         # (6,50,12)
    wc = jnp.pad(wc, ((0, 0), (0, 0), (0, _LANE_BLK - _N_CLS)))
    w_cl_cat = jnp.transpose(wc, (1, 0, 2)).reshape(_T1_CH, _CLS_TAPS * _LANE_BLK).astype(bf16)

    # --- exact 0/1 row-selection matrices (stride-3 conv rows, per-batch rows)
    r1 = (batch - 1) * w2 + _T1_STRIDE * (w3 - 1) + 1
    r2 = (batch - 1) * w3 + 1
    rows1 = (jnp.arange(batch)[:, None] * w2
             + _T1_STRIDE * jnp.arange(w3)[None, :]).reshape(-1)           # (N*W3,)
    sel1 = (rows1[:, None] == jnp.arange(r1)[None, :]).astype(f32)
    sel2 = ((jnp.arange(batch)[:, None] * w3) == jnp.arange(r2)[None, :]).astype(f32)

    # --- consolidate all small f32 parameters into ONE packed buffer ----------
    pc = 300

    def row(vec):
        return jnp.zeros((1, pc), f32).at[0, :vec.shape[0]].set(vec.astype(f32))

    packed = jnp.concatenate([
        row(b_full),
        row(params["g_bn1"]), row(params["b_bn1"]),
        row(params["g_bn2"]), row(params["b_bn2"]),
        row(params["b_cls"]),
        jnp.zeros((batch * w3, pc), f32).at[:, :r1].set(sel1),
        jnp.zeros((batch, pc), f32).at[:, :r2].set(sel2),
    ], axis=0)                                                            # (6+N*W3+N, 300)

    return dict(k_full=k_full, w_cat=w_cat, w_cl_cat=w_cl_cat, packed=packed)


# -------------------------------- forward ----------------------------------

@jax.jit
def fully_conv_forward(prepared, x):
    # x: (N, 64, W); PyTorch forward does x.unsqueeze(2) -> NCHW (N, 64, 1, W).
    N, Cin, W = x.shape
    assert Cin == 64
    _, W2, W3 = _output_widths(W)
    assert W3 - _CLS_TAPS + 1 == 1, "unsupported input width (classifier width != 1)"

    # im2col of the raw input (effective front-end window 45 wide, stride 30),
    # cast to bf16 before the kernel to halve the only batch-scaled DMA.
    windows = jnp.stack([x[:, :, 30 * i:30 * i + 45] for i in range(W2)], axis=1)
    patch = windows.reshape(N * W2, 64 * 45).astype(jnp.bfloat16)         # (N*W2, 2880)
    # TODO(synk): for large batch, build this im2col inside the kernel from a
    # VMEM-resident x block to remove the 1.5x window-overlap duplication.

    return pl.pallas_call(
        _fused_forward_kernel,
        out_shape=jax.ShapeDtypeStruct((N, _N_CLS), jnp.float32),
        in_specs=[pl.BlockSpec(memory_space=pltpu.MemorySpace.VMEM)] * 5,
        out_specs=pl.BlockSpec(memory_space=pltpu.MemorySpace.VMEM),
        scratch_shapes=[
            pltpu.VMEM((N * W2, _T1_TAPS * _LANE_BLK), jnp.float32),   # temporal1 taps
            pltpu.VMEM((N * W3, _CLS_TAPS * _LANE_BLK), jnp.float32),  # classifier taps
        ],
    )(patch, prepared["k_full"], prepared["w_cat"], prepared["w_cl_cat"],
      prepared["packed"])
    # TODO(synk): at real batch sizes add a row grid (dimension_semantics=("parallel",))
    # with a two-pass BatchNorm (sum/sumsq scratch accumulation) so both v7x
    # TensorCores are used and the working set stays inside v7x's 64 MiB VMEM.


# ------------------------- plain-JAX reference (test) -----------------------

def reference_forward(params, x):
    N, _, W = x.shape
    ys = jnp.einsum("ncw,hc->nhw", x, params["w_spatial"]) \
        + params["b_spatial"][None, :, None]                               # (N,25,W)
    W1 = (W - 25) // 10 + 1
    idx = jnp.arange(W1)[:, None] * 10 + jnp.arange(25)[None, :]
    a = jnp.einsum("nhwk,ck->nchw", ys[:, :, idx], params["w_conv1"])      # (N,100,25,W1)
    W2 = (W1 - 3) // 3 + 1
    a = a[..., : W2 * 3].reshape(N, 100, 25, W2, 3).mean(-1)
    b = jnp.einsum("nchw,och->now", a, params["w_conv2"])                  # (N,300,W2)

    def bn_elu(v, g, be):
        m = v.mean(axis=(0, 2), keepdims=True)
        var = ((v - m) ** 2).mean(axis=(0, 2), keepdims=True)
        y = (v - m) / jnp.sqrt(var + 1e-3) * g[None, :, None] + be[None, :, None]
        return jnp.where(y > 0, y, jnp.exp(jnp.minimum(y, 0.0)) - 1.0)

    b = bn_elu(b, params["g_bn1"], params["b_bn1"])
    W3 = (W2 - 10) // 3 + 1
    idx3 = jnp.arange(W3)[:, None] * 3 + jnp.arange(10)[None, :]
    c = jnp.einsum("ncwk,ock->now", b[:, :, idx3], params["w_t1"])         # (N,50,W3)
    c = bn_elu(c, params["g_bn2"], params["b_bn2"])
    logits = jnp.einsum("ncw,ocw->no", c, params["w_cls"]) + params["b_cls"][None, :]
    z = logits - logits.max(-1, keepdims=True)
    e = jnp.exp(z)
    return e / e.sum(-1, keepdims=True)


# ---------------------------------- main ------------------------------------

if __name__ == "__main__":
    key = jax.random.PRNGKey(0)
    pkey, xkey = jax.random.split(key)
    params = init_params(pkey)

    # Smallest input width family for which the classifier output width is 1, so
    # the trailing squeeze(3).squeeze(2) yields (N, 12) exactly as the module does.
    N, C, W = 2, 64, 765
    x = jax.random.normal(xkey, (N, C, W), dtype=jnp.float32)

    prepared = prepare_params(params, N, W)          # once per parameter set
    out = jax.block_until_ready(fully_conv_forward(prepared, x))

    assert out.shape == (N, 12)
    assert bool(jnp.all(jnp.isfinite(out)))
    assert bool(jnp.allclose(jnp.sum(out, axis=-1), 1.0, atol=1e-5))

    ref = reference_forward(params, x)
    max_diff = float(jnp.max(jnp.abs(out - ref)))
    assert bool(jnp.allclose(out, ref, atol=5e-2)), f"max|diff|={max_diff}"

    print("KERNEL_OK")
</pallas_src>

<mosaic_0001>
module attributes {stable_mosaic.version = 11 : i64} {
  func.func @_fused_forward_kernel(%arg0: memref<50x2880xbf16, #tpu.memory_space<vmem>>, %arg1: memref<2880x300xbf16, #tpu.memory_space<vmem>>, %arg2: memref<300x1280xbf16, #tpu.memory_space<vmem>>, %arg3: memref<50x768xbf16, #tpu.memory_space<vmem>>, %arg4: memref<20x300xf32, #tpu.memory_space<vmem>>, %arg5: memref<2x12xf32, #tpu.memory_space<vmem>>, %arg6: memref<50x1280xf32, #tpu.memory_space<vmem>>, %arg7: memref<12x768xf32, #tpu.memory_space<vmem>>) attributes {dimension_semantics = [], scalar_prefetch = 0 : i64, scratch_operands = 2 : i64, tpu.core_type = #tpu.core_type<tc>} {
    %c0 = arith.constant 0 : index
    %c0_0 = arith.constant 0 : index
    %0 = vector.load %arg4[%c0, %c0_0] : memref<20x300xf32, #tpu.memory_space<vmem>>, vector<1x300xf32>
    %c1 = arith.constant 1 : index
    %c0_1 = arith.constant 0 : index
    %1 = vector.load %arg4[%c1, %c0_1] : memref<20x300xf32, #tpu.memory_space<vmem>>, vector<1x300xf32>
    %c2 = arith.constant 2 : index
    %c0_2 = arith.constant 0 : index
    %2 = vector.load %arg4[%c2, %c0_2] : memref<20x300xf32, #tpu.memory_space<vmem>>, vector<1x300xf32>
    %c3 = arith.constant 3 : index
    %c0_3 = arith.constant 0 : index
    %3 = vector.load %arg4[%c3, %c0_3] : memref<20x300xf32, #tpu.memory_space<vmem>>, vector<1x50xf32>
    %c4 = arith.constant 4 : index
    %c0_4 = arith.constant 0 : index
    %4 = vector.load %arg4[%c4, %c0_4] : memref<20x300xf32, #tpu.memory_space<vmem>>, vector<1x50xf32>
    %c5 = arith.constant 5 : index
    %c0_5 = arith.constant 0 : index
    %5 = vector.load %arg4[%c5, %c0_5] : memref<20x300xf32, #tpu.memory_space<vmem>>, vector<1x12xf32>
    %c6 = arith.constant 6 : index
    %c0_6 = arith.constant 0 : index
    %6 = vector.load %arg4[%c6, %c0_6] : memref<20x300xf32, #tpu.memory_space<vmem>>, vector<12x41xf32>
    %c18 = arith.constant 18 : index
    %c0_7 = arith.constant 0 : index
    %7 = vector.load %arg4[%c18, %c0_7] : memref<20x300xf32, #tpu.memory_space<vmem>>, vector<2x7xf32>
    %c0_8 = arith.constant 0 : index
    %c0_9 = arith.constant 0 : index
    %8 = vector.load %arg0[%c0_8, %c0_9] : memref<50x2880xbf16, #tpu.memory_space<vmem>>, vector<50x2880xbf16>
    %c0_10 = arith.constant 0 : index
    %c0_11 = arith.constant 0 : index
    %9 = vector.load %arg1[%c0_10, %c0_11] : memref<2880x300xbf16, #tpu.memory_space<vmem>>, vector<2880x300xbf16>
    %cst = arith.constant dense<0.000000e+00> : vector<50x300xf32>
    %10 = tpu.matmul %8, %9, %cst {dimension_numbers = #tpu.dot_dimension_numbers<[1], [0], [0], [1], [0, 0, 1, 1], [], []>} : vector<50x2880xbf16>, vector<2880x300xbf16>, vector<50x300xf32> -> vector<50x300xf32>
    %11 = vector.broadcast %0 : vector<1x300xf32> to vector<50x300xf32>
    %12 = arith.addf %10, %11 : vector<50x300xf32>
    %cst_12 = arith.constant dense<0.000000e+00> : vector<300xf32>
    %13 = vector.multi_reduction <add>, %12, %cst_12 [0] : vector<50x300xf32> to vector<300xf32>
    %14 = vector.shape_cast %13 : vector<300xf32> to vector<1x300xf32>
    %cst_13 = arith.constant 5.000000e+01 : f32
    %15 = vector.broadcast %cst_13 : f32 to vector<1x300xf32>
    %16 = arith.divf %14, %15 : vector<1x300xf32>
    %17 = vector.broadcast %16 : vector<1x300xf32> to vector<50x300xf32>
    %18 = arith.subf %12, %17 : vector<50x300xf32>
    %19 = arith.mulf %18, %18 : vector<50x300xf32>
    %cst_14 = arith.constant dense<0.000000e+00> : vector<300xf32>
    %20 = vector.multi_reduction <add>, %19, %cst_14 [0] : vector<50x300xf32> to vector<300xf32>
    %21 = vector.shape_cast %20 : vector<300xf32> to vector<1x300xf32>
    %cst_15 = arith.constant 5.000000e+01 : f32
    %22 = vector.broadcast %cst_15 : f32 to vector<1x300xf32>
    %23 = arith.divf %21, %22 : vector<1x300xf32>
    %24 = vector.broadcast %16 : vector<1x300xf32> to vector<50x300xf32>
    %25 = arith.subf %12, %24 : vector<50x300xf32>
    %cst_16 = arith.constant 1.000000e-03 : f32
    %26 = vector.broadcast %cst_16 : f32 to vector<1x300xf32>
    %27 = arith.addf %23, %26 : vector<1x300xf32>
    %28 = math.rsqrt %27 : vector<1x300xf32>
    %29 = vector.broadcast %28 : vector<1x300xf32> to vector<50x300xf32>
    %30 = arith.mulf %25, %29 : vector<50x300xf32>
    %31 = vector.broadcast %1 : vector<1x300xf32> to vector<50x300xf32>
    %32 = arith.mulf %30, %31 : vector<50x300xf32>
    %33 = vector.broadcast %2 : vector<1x300xf32> to vector<50x300xf32>
    %34 = arith.addf %32, %33 : vector<50x300xf32>
    %cst_17 = arith.constant 0.000000e+00 : f32
    %35 = vector.broadcast %cst_17 : f32 to vector<50x300xf32>
    %36 = arith.cmpf ogt, %34, %35 : vector<50x300xf32>
    %cst_18 = arith.constant 0.000000e+00 : f32
    %37 = vector.broadcast %cst_18 : f32 to vector<50x300xf32>
    %38 = arith.minimumf %34, %37 : vector<50x300xf32>
    %39 = math.exp %38 : vector<50x300xf32>
    %cst_19 = arith.constant 1.000000e+00 : f32
    %40 = vector.broadcast %cst_19 : f32 to vector<50x300xf32>
    %41 = arith.subf %39, %40 : vector<50x300xf32>
    %42 = arith.select %36, %34, %41 : vector<50x300xi1>, vector<50x300xf32>
    %43 = arith.truncf %42 : vector<50x300xf32> to vector<50x300xbf16>
    %c0_20 = arith.constant 0 : index
    %c0_21 = arith.constant 0 : index
    %44 = vector.load %arg2[%c0_20, %c0_21] : memref<300x1280xbf16, #tpu.memory_space<vmem>>, vector<300x1280xbf16>
    %cst_22 = arith.constant dense<0.000000e+00> : vector<50x1280xf32>
    %45 = tpu.matmul %43, %44, %cst_22 {dimension_numbers = #tpu.dot_dimension_numbers<[1], [0], [0], [1], [0, 0, 1, 1], [], []>} : vector<50x300xbf16>, vector<300x1280xbf16>, vector<50x1280xf32> -> vector<50x1280xf32>
    %c0_23 = arith.constant 0 : index
    %c0_24 = arith.constant 0 : index
    %46 = vector.load %arg6[%c0_23, %c0_24] : memref<50x1280xf32, #tpu.memory_space<vmem>>, vector<50x1280xf32>
    tpu.vector_store %arg6[%c0_23, %c0_24], %45 {strides = array<i32>} : memref<50x1280xf32, #tpu.memory_space<vmem>>, vector<50x1280xf32>,
    %c0_25 = arith.constant 0 : index
    %c0_26 = arith.constant 0 : index
    %47 = vector.load %arg6[%c0_25, %c0_26] : memref<50x1280xf32, #tpu.memory_space<vmem>>, vector<41x128xf32>
    %c1_27 = arith.constant 1 : index
    %c128 = arith.constant 128 : index
    %48 = vector.load %arg6[%c1_27, %c128] : memref<50x1280xf32, #tpu.memory_space<vmem>>, vector<41x128xf32>
    %49 = arith.addf %47, %48 : vector<41x128xf32>
    %c2_28 = arith.constant 2 : index
    %c256 = arith.constant 256 : index
    %50 = vector.load %arg6[%c2_28, %c256] : memref<50x1280xf32, #tpu.memory_space<vmem>>, vector<41x128xf32>
    %51 = arith.addf %49, %50 : vector<41x128xf32>
    %c3_29 = arith.constant 3 : index
    %c384 = arith.constant 384 : index
    %52 = vector.load %arg6[%c3_29, %c384] : memref<50x1280xf32, #tpu.memory_space<vmem>>, vector<41x128xf32>
    %53 = arith.addf %51, %52 : vector<41x128xf32>
    %c4_30 = arith.constant 4 : index
    %c512 = arith.constant 512 : index
    %54 = vector.load %arg6[%c4_30, %c512] : memref<50x1280xf32, #tpu.memory_space<vmem>>, vector<41x128xf32>
    %55 = arith.addf %53, %54 : vector<41x128xf32>
    %c5_31 = arith.constant 5 : index
    %c640 = arith.constant 640 : index
    %56 = vector.load %arg6[%c5_31, %c640] : memref<50x1280xf32, #tpu.memory_space<vmem>>, vector<41x128xf32>
    %57 = arith.addf %55, %56 : vector<41x128xf32>
    %c6_32 = arith.constant 6 : index
    %c768 = arith.constant 768 : index
    %58 = vector.load %arg6[%c6_32, %c768] : memref<50x1280xf32, #tpu.memory_space<vmem>>, vector<41x128xf32>
    %59 = arith.addf %57, %58 : vector<41x128xf32>
    %c7 = arith.constant 7 : index
    %c896 = arith.constant 896 : index
    %60 = vector.load %arg6[%c7, %c896] : memref<50x1280xf32, #tpu.memory_space<vmem>>, vector<41x128xf32>
    %61 = arith.addf %59, %60 : vector<41x128xf32>
    %c8 = arith.constant 8 : index
    %c1024 = arith.constant 1024 : index
    %62 = vector.load %arg6[%c8, %c1024] : memref<50x1280xf32, #tpu.memory_space<vmem>>, vector<41x128xf32>
    %63 = arith.addf %61, %62 : vector<41x128xf32>
    %c9 = arith.constant 9 : index
    %c1152 = arith.constant 1152 : index
    %64 = vector.load %arg6[%c9, %c1152] : memref<50x1280xf32, #tpu.memory_space<vmem>>, vector<41x128xf32>
    %65 = arith.addf %63, %64 : vector<41x128xf32>
    %66 = vector.extract_strided_slice %65 {offsets = [0, 0], sizes = [41, 50], strides = [1, 1]} : vector<41x128xf32> to vector<41x50xf32>
    %cst_33 = arith.constant dense<0.000000e+00> : vector<12x50xf32>
    %67 = tpu.matmul %6, %66, %cst_33 {dimension_numbers = #tpu.dot_dimension_numbers<[1], [0], [0], [1], [0, 0, 1, 1], [], []>} : vector<12x41xf32>, vector<41x50xf32>, vector<12x50xf32> -> vector<12x50xf32>
    %cst_34 = arith.constant dense<0.000000e+00> : vector<50xf32>
    %68 = vector.multi_reduction <add>, %67, %cst_34 [0] : vector<12x50xf32> to vector<50xf32>
    %69 = vector.shape_cast %68 : vector<50xf32> to vector<1x50xf32>
    %cst_35 = arith.constant 1.200000e+01 : f32
    %70 = vector.broadcast %cst_35 : f32 to vector<1x50xf32>
    %71 = arith.divf %69, %70 : vector<1x50xf32>
    %72 = vector.broadcast %71 : vector<1x50xf32> to vector<12x50xf32>
    %73 = arith.subf %67, %72 : vector<12x50xf32>
    %74 = arith.mulf %73, %73 : vector<12x50xf32>
    %cst_36 = arith.constant dense<0.000000e+00> : vector<50xf32>
    %75 = vector.multi_reduction <add>, %74, %cst_36 [0] : vector<12x50xf32> to vector<50xf32>
    %76 = vector.shape_cast %75 : vector<50xf32> to vector<1x50xf32>
    %cst_37 = arith.constant 1.200000e+01 : f32
    %77 = vector.broadcast %cst_37 : f32 to vector<1x50xf32>
    %78 = arith.divf %76, %77 : vector<1x50xf32>
    %79 = vector.broadcast %71 : vector<1x50xf32> to vector<12x50xf32>
    %80 = arith.subf %67, %79 : vector<12x50xf32>
    %cst_38 = arith.constant 1.000000e-03 : f32
    %81 = vector.broadcast %cst_38 : f32 to vector<1x50xf32>
    %82 = arith.addf %78, %81 : vector<1x50xf32>
    %83 = math.rsqrt %82 : vector<1x50xf32>
    %84 = vector.broadcast %83 : vector<1x50xf32> to vector<12x50xf32>
    %85 = arith.mulf %80, %84 : vector<12x50xf32>
    %86 = vector.broadcast %3 : vector<1x50xf32> to vector<12x50xf32>
    %87 = arith.mulf %85, %86 : vector<12x50xf32>
    %88 = vector.broadcast %4 : vector<1x50xf32> to vector<12x50xf32>
    %89 = arith.addf %87, %88 : vector<12x50xf32>
    %cst_39 = arith.constant 0.000000e+00 : f32
    %90 = vector.broadcast %cst_39 : f32 to vector<12x50xf32>
    %91 = arith.cmpf ogt, %89, %90 : vector<12x50xf32>
    %cst_40 = arith.constant 0.000000e+00 : f32
    %92 = vector.broadcast %cst_40 : f32 to vector<12x50xf32>
    %93 = arith.minimumf %89, %92 : vector<12x50xf32>
    %94 = math.exp %93 : vector<12x50xf32>
    %cst_41 = arith.constant 1.000000e+00 : f32
    %95 = vector.broadcast %cst_41 : f32 to vector<12x50xf32>
    %96 = arith.subf %94, %95 : vector<12x50xf32>
    %97 = arith.select %91, %89, %96 : vector<12x50xi1>, vector<12x50xf32>
    %98 = arith.truncf %97 : vector<12x50xf32> to vector<12x50xbf16>
    %c0_42 = arith.constant 0 : index
    %c0_43 = arith.constant 0 : index
    %99 = vector.load %arg3[%c0_42, %c0_43] : memref<50x768xbf16, #tpu.memory_space<vmem>>, vector<50x768xbf16>
    %cst_44 = arith.constant dense<0.000000e+00> : vector<12x768xf32>
    %100 = tpu.matmul %98, %99, %cst_44 {dimension_numbers = #tpu.dot_dimension_numbers<[1], [0], [0], [1], [0, 0, 1, 1], [], []>} : vector<12x50xbf16>, vector<50x768xbf16>, vector<12x768xf32> -> vector<12x768xf32>
    %c0_45 = arith.constant 0 : index
    %c0_46 = arith.constant 0 : index
    %101 = vector.load %arg7[%c0_45, %c0_46] : memref<12x768xf32, #tpu.memory_space<vmem>>, vector<12x768xf32>
    tpu.vector_store %arg7[%c0_45, %c0_46], %100 {strides = array<i32>} : memref<12x768xf32, #tpu.memory_space<vmem>>, vector<12x768xf32>,
    %c0_47 = arith.constant 0 : index
    %c0_48 = arith.constant 0 : index
    %102 = vector.load %arg7[%c0_47, %c0_48] : memref<12x768xf32, #tpu.memory_space<vmem>>, vector<7x128xf32>
    %c1_49 = arith.constant 1 : index
    %c128_50 = arith.constant 128 : index
    %103 = vector.load %arg7[%c1_49, %c128_50] : memref<12x768xf32, #tpu.memory_space<vmem>>, vector<7x128xf32>
    %104 = arith.addf %102, %103 : vector<7x128xf32>
    %c2_51 = arith.constant 2 : index
    %c256_52 = arith.constant 256 : index
    %105 = vector.load %arg7[%c2_51, %c256_52] : memref<12x768xf32, #tpu.memory_space<vmem>>, vector<7x128xf32>
    %106 = arith.addf %104, %105 : vector<7x128xf32>
    %c3_53 = arith.constant 3 : index
    %c384_54 = arith.constant 384 : index
    %107 = vector.load %arg7[%c3_53, %c384_54] : memref<12x768xf32, #tpu.memory_space<vmem>>, vector<7x128xf32>
    %108 = arith.addf %106, %107 : vector<7x128xf32>
    %c4_55 = arith.constant 4 : index
    %c512_56 = arith.constant 512 : index
    %109 = vector.load %arg7[%c4_55, %c512_56] : memref<12x768xf32, #tpu.memory_space<vmem>>, vector<7x128xf32>
    %110 = arith.addf %108, %109 : vector<7x128xf32>
    %c5_57 = arith.constant 5 : index
    %c640_58 = arith.constant 640 : index
    %111 = vector.load %arg7[%c5_57, %c640_58] : memref<12x768xf32, #tpu.memory_space<vmem>>, vector<7x128xf32>
    %112 = arith.addf %110, %111 : vector<7x128xf32>
    %113 = vector.extract_strided_slice %112 {offsets = [0, 0], sizes = [7, 12], strides = [1, 1]} : vector<7x128xf32> to vector<7x12xf32>
    %cst_59 = arith.constant dense<0.000000e+00> : vector<2x12xf32>
    %114 = tpu.matmul %7, %113, %cst_59 {dimension_numbers = #tpu.dot_dimension_numbers<[1], [0], [0], [1], [0, 0, 1, 1], [], []>} : vector<2x7xf32>, vector<7x12xf32>, vector<2x12xf32> -> vector<2x12xf32>
    %115 = vector.broadcast %5 : vector<1x12xf32> to vector<2x12xf32>
    %116 = arith.addf %114, %115 : vector<2x12xf32>
    %cst_60 = arith.constant dense<0xFF800000> : vector<2xf32>
    %117 = vector.multi_reduction <maximumf>, %116, %cst_60 [1] : vector<2x12xf32> to vector<2xf32>
    %118 = vector.shape_cast %117 : vector<2xf32> to vector<2x1xf32>
    %119 = vector.broadcast %118 : vector<2x1xf32> to vector<2x12xf32>
    %120 = arith.subf %116, %119 : vector<2x12xf32>
    %121 = math.exp %120 : vector<2x12xf32>
    %cst_61 = arith.constant dense<0.000000e+00> : vector<2xf32>
    %122 = vector.multi_reduction <add>, %121, %cst_61 [1] : vector<2x12xf32> to vector<2xf32>
    %123 = vector.shape_cast %122 : vector<2xf32> to vector<2x1xf32>
    %124 = vector.broadcast %123 : vector<2x1xf32> to vector<2x12xf32>
    %125 = arith.divf %121, %124 : vector<2x12xf32>
    %c0_62 = arith.constant 0 : index
    %c0_63 = arith.constant 0 : index
    %126 = vector.load %arg5[%c0_62, %c0_63] : memref<2x12xf32, #tpu.memory_space<vmem>>, vector<2x12xf32>
    tpu.vector_store %arg5[%c0_62, %c0_63], %125 {strides = array<i32>} : memref<2x12xf32, #tpu.memory_space<vmem>>, vector<2x12xf32>,
    return
  }
}

</mosaic_0001>

<bundles_post_ra>
// kernel: fully_conv_forward.1
= control target key start
LH: loop header
LB: loop body
LE: loop exit
PB: predicated region body
PF: predicated region fallthrough
CT: control target
= control target key end

     0   :  { %vm4159_vm0 = vcmask 523264   ;;  %s15615_s0 = inlined_call_operand.vmem [shape: bf16[50,2880], index: 0, kind: input, shape index: {}]   ;;  %s15616_s1 = inlined_call_operand.vmem [shape: bf16[2880,300], index: 1, kind: input, shape index: {}]   ;;  %s15617_s2 = inlined_call_operand.vmem [shape: bf16[300,1280], index: 2, kind: input, shape index: {}]   ;;  %s15618_s3 = inlined_call_operand.vmem [shape: bf16[50,768], index: 3, kind: input, shape index: {}]   ;;  %s15619_s4 = inlined_call_operand.vmem [shape: f32[20,300], index: 4, kind: input, shape index: {}]   ;;  %s15620_s5 = inlined_call_operand.hbm [shape: f32[2,12], index: 5, kind: output, shape index: {}]  }
   0x1   :  { %v10701_v0 = vld [vmem:[%s15616_s1 + $0x4] ss:$12 sps:$4 sm:$0xff]   ;;  %v10703_v1 = vld [vmem:[%s15616_s1 + $0xc8] ss:$12 sps:$4 sm:$0xff]   ;;  %v10704_v2 = vld [vmem:[%s15616_s1] ss:$12 sps:$4 sm:$0xff]  }
   0x2   :  { %4172 = vmatprep.subr.bf16.mxu0 %v10701_v0  ;;  %9918 = vmatprep.subr.bf16.mxu1 %v10703_v1  ;;  %v10705_v3 = vld [vmem:[%s15616_s1 + $0x8] ss:$12 sps:$4 sm:$0xff]   ;;  %v10708_v5 = vld [vmem:[%s15616_s1 + $0xe0] ss:$12 sps:$4 sm:$0xff]   ;;  %v10709_v6 = vld [vmem:[%s15616_s1 + $0x18] ss:$12 sps:$4 sm:$0xff]  }
   0x3   :  { %4173 = vmatpush1.bf16.msra.mxu0 %v10704_v2  ;;  %v10706_v4 = vld [vmem:[%s15616_s1 + $0x1c] ss:$12 sps:$4 sm:$0xff]   ;;  %9919 = vmatpush3.bf16.msra.mxu1 %v10705_v3  ;;  %v10710_v7 = vld [vmem:[%s15616_s1 + $0x20] ss:$12 sps:$4 sm:$0xff]   ;;  %v10713_v9 = vld [vmem:[%s15616_s1 + $0xf8] ss:$12 sps:$4 sm:$0xff]  }
   0x4   :  { %4174 = vmatprep.subr.bf16.mxu0 %v10706_v4  ;;  %9920 = vmatprep.subr.bf16.mxu1 %v10708_v5  ;;  %v10711_v8 = vld [vmem:[%s15616_s1 + $0x34] ss:$12 sps:$4 sm:$0xff]   ;;  %v10714_v10 = vld [vmem:[%s15616_s1 + $0x30] ss:$12 sps:$4 sm:$0xff]   ;;  %v10715_v11 = vld [vmem:[%s15616_s1 + $0x38] ss:$12 sps:$4 sm:$0xff]  }
   0x5   :  { %v10716_v12 = vld [vmem:[%s15616_s1 + $0x4c] ss:$12 sps:$4 sm:$0xff]   ;;  %v10718_v13 = vld [vmem:[%s15616_s1 + $0x110] ss:$12 sps:$4 sm:$0xff]   ;;  %v10719_v14 = vld [vmem:[%s15616_s1 + $0x48] ss:$12 sps:$4 sm:$0xff]  }
   0x6   :  { %v10720_v15 = vld [vmem:[%s15616_s1 + $0x50] ss:$12 sps:$4 sm:$0xff]   ;;  %v10723_v17 = vld [vmem:[%s15616_s1 + $0x128] ss:$12 sps:$4 sm:$0xff]   ;;  %v10724_v18 = vld [vmem:[%s15616_s1 + $0x60] ss:$12 sps:$4 sm:$0xff]  }
   0x7   :  { %4175 = vmatpush1.bf16.msra.mxu0 %v10709_v6  ;;  %9921 = vmatpush3.bf16.msra.mxu1 %v10710_v7  ;;  %v10721_v16 = vld [vmem:[%s15616_s1 + $0x64] ss:$12 sps:$4 sm:$0xff]   ;;  %v10725_v19 = vld [vmem:[%s15616_s1 + $0x68] ss:$12 sps:$4 sm:$0xff]   ;;  %v10728_v21 = vld [vmem:[%s15616_s1 + $0x140] ss:$12 sps:$4 sm:$0xff]  }
   0x8   :  { %4176 = vmatprep.subr.bf16.mxu0 %v10711_v8  ;;  %9922 = vmatprep.subr.bf16.mxu1 %v10713_v9  ;;  %v10726_v20 = vld [vmem:[%s15616_s1 + $0x7c] ss:$12 sps:$4 sm:$0xff]   ;;  %v10729_v22 = vld [vmem:[%s15616_s1 + $0x78] ss:$12 sps:$4 sm:$0xff]   ;;  %v10730_v23 = vld [vmem:[%s15616_s1 + $0x80] ss:$12 sps:$4 sm:$0xff]  }
   0x9   :  { %v10731_v24 = vld [vmem:[%s15616_s1 + $0x94] ss:$12 sps:$4 sm:$0xff]   ;;  %v10733_v25 = vld [vmem:[%s15616_s1 + $0x158] ss:$12 sps:$4 sm:$0xff]   ;;  %v10734_v26 = vld [vmem:[%s15616_s1 + $0x90] ss:$12 sps:$4 sm:$0xff]  }
   0xa   :  { %v10735_v27 = vld [vmem:[%s15616_s1 + $0x98] ss:$12 sps:$4 sm:$0xff]   ;;  %v10738_v29 = vld [vmem:[%s15616_s1 + $0x170] ss:$12 sps:$4 sm:$0xff]   ;;  %v10739_v30 = vld [vmem:[%s15616_s1 + $0xa8] ss:$12 sps:$4 sm:$0xff]  }
   0xb   :  { %4177 = vmatpush1.bf16.msra.mxu0 %v10714_v10  ;;  %9923 = vmatpush3.bf16.msra.mxu1 %v10715_v11  ;;  %v10736_v28 = vld [vmem:[%s15616_s1 + $0xac] ss:$12 sps:$4 sm:$0xff]   ;;  %v10743_v31 = vld [vmem:[%s15615_s0 + $0x4] ss:$92 sps:$4 sm:$0xff]   ;;  %v10740_v32 = vld [vmem:[%s15616_s1 + $0xb0] ss:$12 sps:$4 sm:$0xff]  }
   0xc   :  { %4178 = vmatprep.subr.bf16.mxu0 %v10716_v12  ;;  %9924 = vmatprep.subr.bf16.mxu1 %v10718_v13  ;;  %v10744_v33 = vld [vmem:[%s15616_s1 + $0xc4] ss:$12 sps:$4 sm:$0xff]   ;;  %v10746_v34 = vld [vmem:[%s15616_s1 + $0x248] ss:$12 sps:$4 sm:$0xff]   ;;  %v12141_v35 = vld [vmem:[%s15615_s0] ss:$92 sps:$4 sm:$0xff]  }
   0xd   :  { %5056 = vmatprep.mubr.bf16.mxu1 %v10743_v31  ;;  %4204 = vmatprep.mubr.bf16.mxu0 %v10743_v31  ;;  %v10747_v36 = vld [vmem:[%s15616_s1 + $0xc0] ss:$12 sps:$4 sm:$0xff]   ;;  %v10748_v37 = vld [vmem:[%s15616_s1 + $0x188] ss:$12 sps:$4 sm:$0xff]   ;;  %v12158_v40 = vld [vmem:[%s15615_s0 + $0xbc] ss:$92 sps:$4 sm:$0xff]  }
   0xe   :  { %v10749_v38 = vld [vmem:[%s15616_s1 + $0xdc] ss:$12 sps:$4 sm:$0xff]   ;;  %v10751_v39 = vld [vmem:[%s15616_s1 + $0x260] ss:$12 sps:$4 sm:$0xff]   ;;  %v10752_v41 = vld [vmem:[%s15616_s1 + $0xd8] ss:$12 sps:$4 sm:$0xff]  }
   0xf   :  { %4179 = vmatpush1.bf16.msra.mxu0 %v10719_v14  ;;  %9925 = vmatpush3.bf16.msra.mxu1 %v10720_v15  ;;  %v10753_v42 = vld [vmem:[%s15616_s1 + $0x1a0] ss:$12 sps:$4 sm:$0xff]   ;;  %v10759_v44 = vld [vmem:[%s15616_s1 + $0x278] ss:$12 sps:$4 sm:$0xff]   ;;  %v10760_v46 = vld [vmem:[%s15616_s1 + $0xf0] ss:$12 sps:$4 sm:$0xff]  }
  0x10   :  { %4180 = vmatprep.subr.bf16.mxu0 %v10721_v16  ;;  %9926 = vmatprep.subr.bf16.mxu1 %v10723_v17  ;;  %v10756_v43 = vld [vmem:[%s15616_s1 + $0xf4] ss:$12 sps:$4 sm:$0xff]   ;;  %v10761_v47 = vld [vmem:[%s15616_s1 + $0x1b8] ss:$12 sps:$4 sm:$0xff]   ;;  %v10764_v49 = vld [vmem:[%s15616_s1 + $0x290] ss:$12 sps:$4 sm:$0xff]  }
  0x11   :  { %v12177_v45 = vld [vmem:[%s15615_s0 + $0xb8] ss:$92 sps:$4 sm:$0xff]   ;;  %v10766_v52 = vld [vmem:[%s15616_s1 + $0x1d0] ss:$12 sps:$4 sm:$0xff]   ;;  %v10773_v56 = vld [vmem:[%s15616_s1 + $0x120] ss:$12 sps:$4 sm:$0xff]  }
  0x12   :  { %v10762_v48 = vld [vmem:[%s15616_s1 + $0x10c] ss:$12 sps:$4 sm:$0xff]   ;;  %v12194_v50 = vld [vmem:[%s15615_s0 + $0x174] ss:$92 sps:$4 sm:$0xff]   ;;  %v10775_v58 = vld [vmem:[%s15616_s1 + $0x13c] ss:$12 sps:$4 sm:$0xff]  }
  0x13   :  { %4181 = vmatpush1.bf16.msra.mxu0 %v10724_v18  ;;  %9927 = vmatpush3.bf16.msra.mxu1 %v10725_v19  ;;  %v10765_v51 = vld [vmem:[%s15616_s1 + $0x108] ss:$12 sps:$4 sm:$0xff]   ;;  %v10769_v53 = vld [vmem:[%s15616_s1 + $0x124] ss:$12 sps:$4 sm:$0xff]   ;;  %v10777_v59 = vld [vmem:[%s15616_s1 + $0x2c0] ss:$12 sps:$4 sm:$0xff]  }
  0x14   :  { %4182 = vmatprep.subr.bf16.mxu0 %v10726_v20  ;;  %9928 = vmatprep.subr.bf16.mxu1 %v10728_v21  ;;  %v10772_v54 = vld [vmem:[%s15616_s1 + $0x2a8] ss:$12 sps:$4 sm:$0xff]   ;;  %v12213_v55 = vld [vmem:[%s15615_s0 + $0x170] ss:$92 sps:$4 sm:$0xff]   ;;  %v10778_v61 = vld [vmem:[%s15616_s1 + $0x138] ss:$12 sps:$4 sm:$0xff]  }
  0x15   :  { %v10774_v57 = vld [vmem:[%s15616_s1 + $0x1e8] ss:$12 sps:$4 sm:$0xff]   ;;  %v10779_v63 = vld [vmem:[%s15616_s1 + $0x200] ss:$12 sps:$4 sm:$0xff]   ;;  %v10784_v1 = vld [vmem:[%s15616_s1 + $0x2d8] ss:$12 sps:$4 sm:$0xff]  }
  0x16   :  { %v106_v60 = vld [vmem:[%s15615_s0 + $0x228] sm:$0x11]  ;;  %v10781_v0 = vld [vmem:[%s15616_s1 + $0x154] ss:$12 sps:$4 sm:$0xff]   ;;  %v10785_v3 = vld [vmem:[%s15616_s1 + $0x150] ss:$12 sps:$4 sm:$0xff]  }
  0x17   :  { %4183 = vmatpush1.bf16.msra.mxu0 %v10729_v22  ;;  %9929 = vmatpush3.bf16.msra.mxu1 %v10730_v23  ;;  %v12233_v62 = vcombine.high %v106_v60, %v106_v60  ;;  %v12246_v2 = vcombine.low %v106_v60, %v106_v60  ;;  %v10786_v4 = vld [vmem:[%s15616_s1 + $0x218] ss:$12 sps:$4 sm:$0xff]   ;;  %v10789_v6 = vld [vmem:[%s15616_s1 + $0x2f0] ss:$12 sps:$4 sm:$0xff]   ;;  %v12263_v7 = vld [vmem:[%s15615_s0 + $0xc] ss:$92 sps:$4 sm:$0xff]  }
  0x18   :  { %4184 = vmatprep.subr.bf16.mxu0 %v10731_v24  ;;  %9930 = vmatprep.subr.bf16.mxu1 %v10733_v25  ;;  %v10787_v5 = vld [vmem:[%s15616_s1 + $0x16c] ss:$12 sps:$4 sm:$0xff]   ;;  %v10790_v8 = vld [vmem:[%s15616_s1 + $0x168] ss:$12 sps:$4 sm:$0xff]   ;;  %v10791_v9 = vld [vmem:[%s15616_s1 + $0x230] ss:$12 sps:$4 sm:$0xff]  }
  0x19   :  { %v10797_v10 = vld [vmem:[%s15616_s1 + $0x184] ss:$12 sps:$4 sm:$0xff]   ;;  %v10798_v12 = vld [vmem:[%s15616_s1 + $0x3c8] ss:$12 sps:$4 sm:$0xff]   ;;  %v10795_v13 = vld [vmem:[%s15616_s1 + $0x180] ss:$12 sps:$4 sm:$0xff]  }
  0x1a   :  { %v12278_v11 = vld [vmem:[%s15615_s0 + $0x8] ss:$92 sps:$4 sm:$0xff]   ;;  %v10803_v16 = vld [vmem:[%s15616_s1 + $0x3e0] ss:$12 sps:$4 sm:$0xff]   ;;  %v10807_v21 = vld [vmem:[%s15616_s1 + $0x1b0] ss:$12 sps:$4 sm:$0xff]  }
  0x1b   :  { %4185 = vmatpush1.bf16.msra.mxu0 %v10734_v26  ;;  %9931 = vmatpush3.bf16.msra.mxu1 %v10735_v27  ;;  %v10799_v14 = vld [vmem:[%s15616_s1 + $0x308] ss:$12 sps:$4 sm:$0xff]   ;;  %v12299_v17 = vld [vmem:[%s15615_s0 + $0xc4] ss:$92 sps:$4 sm:$0xff]   ;;  %v10815_v25 = vld [vmem:[%s15616_s1 + $0x1cc] ss:$12 sps:$4 sm:$0xff]  }
  0x1c   :  { %4186 = vmatprep.subr.bf16.mxu0 %v10736_v28  ;;  %9932 = vmatprep.subr.bf16.mxu1 %v10738_v29  ;;  %v10802_v15 = vld [vmem:[%s15616_s1 + $0x19c] ss:$12 sps:$4 sm:$0xff]   ;;  %v10800_v18 = vld [vmem:[%s15616_s1 + $0x198] ss:$12 sps:$4 sm:$0xff]   ;;  %v10804_v19 = vld [vmem:[%s15616_s1 + $0x320] ss:$12 sps:$4 sm:$0xff]  }
  0x1d   :  { %v10809_v20 = vld [vmem:[%s15616_s1 + $0x1b4] ss:$12 sps:$4 sm:$0xff]   ;;  %v10811_v22 = vld [vmem:[%s15616_s1 + $0x3f8] ss:$12 sps:$4 sm:$0xff]   ;;  %v10816_v26 = vld [vmem:[%s15616_s1 + $0x410] ss:$12 sps:$4 sm:$0xff]  }
  0x1e   :  { %v12322_v23 = vld [vmem:[%s15615_s0 + $0xc0] ss:$92 sps:$4 sm:$0xff]   ;;  %v10812_v24 = vld [vmem:[%s15616_s1 + $0x338] ss:$12 sps:$4 sm:$0xff]   ;;  %v10813_v28 = vld [vmem:[%s15616_s1 + $0x1c8] ss:$12 sps:$4 sm:$0xff]  }
  0x1f   :  { %4187 = vmatpush1.bf16.msra.mxu0 %v10739_v30  ;;  %9933 = vmatpush3.bf16.msra.mxu1 %v10740_v32  ;;  %v12337_v27 = vld [vmem:[%s15615_s0 + $0x17c] ss:$92 sps:$4 sm:$0xff]   ;;  %v10822_v30 = vld [vmem:[%s15616_s1 + $0x1e4] ss:$12 sps:$4 sm:$0xff]   ;;  %v10824_v31 = vld [vmem:[%s15616_s1 + $0x428] ss:$12 sps:$4 sm:$0xff]  }
  0x20   :  { %4188 = vmatprep.subr.bf16.mxu0 %v10744_v33  ;;  %9958 = vmatprep.subr.bf16.mxu1 %v10746_v34  ;;  %v10817_v29 = vld [vmem:[%s15616_s1 + $0x350] ss:$12 sps:$4 sm:$0xff]   ;;  %v10820_v32 = vld [vmem:[%s15616_s1 + $0x1e0] ss:$12 sps:$4 sm:$0xff]   ;;  %v12360_v33 = vld [vmem:[%s15615_s0 + $0x178] ss:$92 sps:$4 sm:$0xff]  }
  0x21   :  { %v10825_v34 = vld [vmem:[%s15616_s1 + $0x368] ss:$12 sps:$4 sm:$0xff]   ;;  %v10855_v60 = vld [vmem:[%s15616_s1 + $0x4a0] ss:$12 sps:$4 sm:$0xff]  }
  0x22   :  { %5057 = vmatmul.mubr.bf16.vlgmr.msra.gmra.mrb[0].mxu1 %v12141_v35 }
  0x23   :  { %4189 = vmatpush1.bf16.msra.mxu0 %v10747_v36  ;;  %9959 = vmatpush3.bf16.msra.mxu1 %v10748_v37  ;;  %v107_v36 = vld [vmem:[%s15615_s0 + $0x230] sm:$0x11]  ;;  %v10829_v37 = vld [vmem:[%s15616_s1 + $0x440] ss:$12 sps:$4 sm:$0xff]  }
  0x24   :  { %4190 = vmatprep.subr.bf16.mxu0 %v10749_v38  ;;  %9960 = vmatprep.subr.bf16.mxu1 %v10751_v39  ;;  %v12375_v38 = vcombine.high %v107_v36, %v107_v36  ;;  %v10826_v39 = vld [vmem:[%s15616_s1 + $0x1f8] ss:$12 sps:$4 sm:$0xff]  }
  0x25   :  { %5064 = vmatprep.mubr.bf16.mxu1 %v12158_v40 }
  0x27   :  { %4191 = vmatpush1.bf16.msra.mxu0 %v10752_v41  ;;  %9961 = vmatpush3.bf16.msra.mxu1 %v10753_v42  ;;  %v10834_v41 = vld [vmem:[%s15616_s1 + $0x214] ss:$12 sps:$4 sm:$0xff]   ;;  %v10836_v42 = vld [vmem:[%s15616_s1 + $0x458] ss:$12 sps:$4 sm:$0xff]  }
  0x28   :  { %4192 = vmatprep.subr.bf16.mxu0 %v10756_v43  ;;  %9962 = vmatprep.subr.bf16.mxu1 %v10759_v44  ;;  %v10832_v43 = vld [vmem:[%s15616_s1 + $0x210] ss:$12 sps:$4 sm:$0xff]   ;;  %v12396_v44 = vcombine.low %v107_v36, %v107_v36  ;;  %v10897_v36 = vld [vmem:[%s15616_s1 + $0x300] ss:$12 sps:$4 sm:$0xff]  }
  0x2a   :  { %5065 = vmatmul.mubr.bf16.gmra.mrb[4].mxu1 %v12177_v45 }
  0x2b   :  { %4193 = vmatpush1.bf16.msra.mxu0 %v10760_v46  ;;  %9963 = vmatpush3.bf16.msra.mxu1 %v10761_v47  ;;  %v10840_v46 = vld [vmem:[%s15616_s1 + $0x22c] ss:$12 sps:$4 sm:$0xff]   ;;  %v10841_v47 = vld [vmem:[%s15616_s1 + $0x470] ss:$12 sps:$4 sm:$0xff]  }
  0x2c   :  { %4194 = vmatprep.subr.bf16.mxu0 %v10762_v48  ;;  %9964 = vmatprep.subr.bf16.mxu1 %v10764_v49  ;;  %v12410_v48 = vld [vmem:[%s15615_s0 + $0x14] ss:$92 sps:$4 sm:$0xff]  }
  0x2d   :  { %5072 = vmatprep.mubr.bf16.mxu1 %v12194_v50  ;;  %v10838_v49 = vld [vmem:[%s15616_s1 + $0x228] ss:$12 sps:$4 sm:$0xff]  }
  0x2f   :  { %4195 = vmatpush1.bf16.msra.mxu0 %v10765_v51  ;;  %9965 = vmatpush3.bf16.msra.mxu1 %v10766_v52  ;;  %v10848_v51 = vld [vmem:[%s15616_s1 + $0x244] ss:$12 sps:$4 sm:$0xff]  }
  0x30   :  { %4196 = vmatprep.subr.bf16.mxu0 %v10769_v53  ;;  %9966 = vmatprep.subr.bf16.mxu1 %v10772_v54  ;;  %v12426_v52 = vld [vmem:[%s15615_s0 + $0x10] ss:$92 sps:$4 sm:$0xff]   ;;  %v10849_v53 = vld [vmem:[%s15616_s1 + $0x548] ss:$12 sps:$4 sm:$0xff]  }
  0x31   :  { %v10846_v54 = vld [vmem:[%s15616_s1 + $0x240] ss:$12 sps:$4 sm:$0xff]  }
  0x32   :  { %5073 = vmatmul.mubr.bf16.gmra.mrb[8].mxu1 %v12213_v55 }
  0x33   :  { %4197 = vmatpush1.bf16.msra.mxu0 %v10773_v56  ;;  %9967 = vmatpush3.bf16.msra.mxu1 %v10774_v57  ;;  %v10853_v56 = vld [vmem:[%s15616_s1 + $0x25c] ss:$12 sps:$4 sm:$0xff]   ;;  %v10854_v57 = vld [vmem:[%s15616_s1 + $0x560] ss:$12 sps:$4 sm:$0xff]  }
  0x34   :  { %4198 = vmatprep.subr.bf16.mxu0 %v10775_v58  ;;  %9968 = vmatprep.subr.bf16.mxu1 %v10777_v59  ;;  %v12448_v58 = vld [vmem:[%s15615_s0 + $0xcc] ss:$92 sps:$4 sm:$0xff]   ;;  %v10851_v59 = vld [vmem:[%s15616_s1 + $0x258] ss:$12 sps:$4 sm:$0xff]  }
  0x35   :  { %5080 = vmatprep.mubr.bf16.mxu1 %v12233_v62 }
  0x37   :  { %4199 = vmatpush1.bf16.msra.mxu0 %v10778_v61  ;;  %9969 = vmatpush3.bf16.msra.mxu1 %v10779_v63  ;;  %v10860_v61 = vld [vmem:[%s15616_s1 + $0x274] ss:$12 sps:$4 sm:$0xff]   ;;  %v10862_v63 = vld [vmem:[%s15616_s1 + $0x578] ss:$12 sps:$4 sm:$0xff]  }
  0x38   :  { %4200 = vmatprep.subr.bf16.mxu0 %v10781_v0  ;;  %9970 = vmatprep.subr.bf16.mxu1 %v10784_v1  ;;  %v12470_v0 = vld [vmem:[%s15615_s0 + $0xc8] ss:$92 sps:$4 sm:$0xff]  }
  0x39   :  { %v10863_v1 = vld [vmem:[%s15616_s1 + $0x4b8] ss:$12 sps:$4 sm:$0xff]  }
  0x3a   :  { %5081 = vmatmul.mubr.bf16.gmra.mrb[12].mxu1 %v12246_v2 }
  0x3b   :  { %4201 = vmatpush1.bf16.msra.mxu0 %v10785_v3  ;;  %9971 = vmatpush3.bf16.msra.mxu1 %v10786_v4  ;;  %v10867_v3 = vld [vmem:[%s15616_s1 + $0x590] ss:$12 sps:$4 sm:$0xff]   ;;  %v12484_v4 = vld [vmem:[%s15615_s0 + $0x184] ss:$92 sps:$4 sm:$0xff]  }
  0x3c   :  { %4202 = vmatprep.subr.bf16.mxu0 %v10787_v5  ;;  %9972 = vmatprep.subr.bf16.mxu1 %v10789_v6  ;;  %v10864_v5 = vld [vmem:[%s15616_s1 + $0x288] ss:$12 sps:$4 sm:$0xff]   ;;  %v10868_v6 = vld [vmem:[%s15616_s1 + $0x4d0] ss:$12 sps:$4 sm:$0xff]  }
  0x3d   :  { %5120 = vmatprep.mubr.bf16.mxu1 %v12263_v7 }
  0x3f   :  { %4203 = vmatpush1.bf16.msra.mxu0 %v10790_v8  ;;  %9973 = vmatpush3.bf16.msra.mxu1 %v10791_v9  ;;  %v10871_v8 = vld [vmem:[%s15616_s1 + $0x2a0] ss:$12 sps:$4 sm:$0xff]   ;;  %v10875_v9 = vld [vmem:[%s15616_s1 + $0x5a8] ss:$12 sps:$4 sm:$0xff]  }
  0x40   :  { %4243 = vmatprep.subr.bf16.mxu0 %v10797_v10  ;;  %9998 = vmatprep.subr.bf16.mxu1 %v10798_v12  ;;  %v12506_v10 = vld [vmem:[%s15615_s0 + $0x180] ss:$92 sps:$4 sm:$0xff]   ;;  %v10876_v12 = vld [vmem:[%s15616_s1 + $0x4e8] ss:$12 sps:$4 sm:$0xff]  }
  0x42   :  { %4205 = vmatmul.mubr.bf16.vlgmr.msra.gmra.mrb[0].mxu0 %v12141_v35  ;;  %5121 = vmatmul.mubr.bf16.vlgmr.msra.gmra.mrb[16].mxu1 %v12278_v11  ;;  %v10828_v35 = vld [vmem:[%s15616_s1 + $0x1fc] ss:$12 sps:$4 sm:$0xff]  }
  0x43   :  { %4244 = vmatpush1.bf16.msra.mxu0 %v10795_v13  ;;  %9999 = vmatpush3.bf16.msra.mxu1 %v10799_v14  ;;  %v108_v13 = vld [vmem:[%s15615_s0 + $0x238] sm:$0x11] }
  0x44   :  { %4245 = vmatprep.subr.bf16.mxu0 %v10802_v15  ;;  %10000 = vmatprep.subr.bf16.mxu1 %v10803_v16  ;;  %v10879_v14 = vld [vmem:[%s15616_s1 + $0x2bc] ss:$12 sps:$4 sm:$0xff]   ;;  %v10880_v15 = vld [vmem:[%s15616_s1 + $0x5c0] ss:$12 sps:$4 sm:$0xff]   ;;  %v12520_v16 = vcombine.high %v108_v13, %v108_v13 }
  0x45   :  { %5128 = vmatprep.mubr.bf16.mxu1 %v12299_v17  ;;  %4214 = vmatprep.mubr.bf16.mxu0 %v12158_v40  ;;  %v10830_v40 = vld [vmem:[%s15616_s1 + $0x380] ss:$12 sps:$4 sm:$0xff]  }
  0x47   :  { %4246 = vmatpush1.bf16.msra.mxu0 %v10800_v18  ;;  %10001 = vmatpush3.bf16.msra.mxu1 %v10804_v19  ;;  %v10877_v18 = vld [vmem:[%s15616_s1 + $0x2b8] ss:$12 sps:$4 sm:$0xff]   ;;  %v10881_v19 = vld [vmem:[%s15616_s1 + $0x500] ss:$12 sps:$4 sm:$0xff]  }
  0x48   :  { %4247 = vmatprep.subr.bf16.mxu0 %v10809_v20  ;;  %10002 = vmatprep.subr.bf16.mxu1 %v10811_v22  ;;  %v10885_v20 = vld [vmem:[%s15616_s1 + $0x2d4] ss:$12 sps:$4 sm:$0xff]   ;;  %v10883_v22 = vld [vmem:[%s15616_s1 + $0x2d0] ss:$12 sps:$4 sm:$0xff]  }
  0x4a   :  { %4215 = vmatmul.mubr.bf16.gmra.mrb[4].mxu0 %v12177_v45  ;;  %5129 = vmatmul.mubr.bf16.gmra.mrb[20].mxu1 %v12322_v23  ;;  %v10837_v45 = vld [vmem:[%s15616_s1 + $0x398] ss:$12 sps:$4 sm:$0xff]  }
  0x4b   :  { %4248 = vmatpush1.bf16.msra.mxu0 %v10807_v21  ;;  %10003 = vmatpush3.bf16.msra.mxu1 %v10812_v24  ;;  %v10887_v21 = vld [vmem:[%s15616_s1 + $0x5d8] ss:$12 sps:$4 sm:$0xff]   ;;  %v12539_v24 = vcombine.low %v108_v13, %v108_v13 }
  0x4c   :  { %4249 = vmatprep.subr.bf16.mxu0 %v10815_v25  ;;  %10004 = vmatprep.subr.bf16.mxu1 %v10816_v26  ;;  %v10888_v25 = vld [vmem:[%s15616_s1 + $0x518] ss:$12 sps:$4 sm:$0xff]  }
  0x4d   :  { %5136 = vmatprep.mubr.bf16.mxu1 %v12337_v27  ;;  %4224 = vmatprep.mubr.bf16.mxu0 %v12194_v50  ;;  %v10842_v50 = vld [vmem:[%s15616_s1 + $0x3b0] ss:$12 sps:$4 sm:$0xff]   ;;  %v10891_v26 = vld [vmem:[%s15616_s1 + $0x2ec] ss:$12 sps:$4 sm:$0xff]  }
  0x4e   :  { %v10950_v13 = vld [vmem:[%s15616_s1 + $0x3c4] ss:$12 sps:$4 sm:$0xff]  }
  0x4f   :  { %4250 = vmatpush1.bf16.msra.mxu0 %v10813_v28  ;;  %10005 = vmatpush3.bf16.msra.mxu1 %v10817_v29  ;;  %v10892_v28 = vld [vmem:[%s15616_s1 + $0x5f0] ss:$12 sps:$4 sm:$0xff]  }
  0x50   :  { %4251 = vmatprep.subr.bf16.mxu0 %v10822_v30  ;;  %10006 = vmatprep.subr.bf16.mxu1 %v10824_v31  ;;  %v12553_v29 = vld [vmem:[%s15615_s0 + $0x1c] ss:$92 sps:$4 sm:$0xff]   ;;  %v10889_v30 = vld [vmem:[%s15616_s1 + $0x2e8] ss:$12 sps:$4 sm:$0xff]  }
  0x51   :  { %v10893_v31 = vld [vmem:[%s15616_s1 + $0x530] ss:$12 sps:$4 sm:$0xff]  }
  0x52   :  { %4225 = vmatmul.mubr.bf16.gmra.mrb[8].mxu0 %v12213_v55  ;;  %5137 = vmatmul.mubr.bf16.gmra.mrb[24].mxu1 %v12360_v33  ;;  %v10850_v55 = vld [vmem:[%s15616_s1 + $0x488] ss:$12 sps:$4 sm:$0xff]  }
  0x53   :  { %4252 = vmatpush1.bf16.msra.mxu0 %v10820_v32  ;;  %10007 = vmatpush3.bf16.msra.mxu1 %v10825_v34  ;;  %v10899_v32 = vld [vmem:[%s15616_s1 + $0x304] ss:$12 sps:$4 sm:$0xff]   ;;  %v10894_v34 = vld [vmem:[%s15615_s0 + $0x18] ss:$92 sps:$4 sm:$0xff]  }
  0x54   :  { %4253 = vmatprep.subr.bf16.mxu0 %v10828_v35  ;;  %10008 = vmatprep.subr.bf16.mxu1 %v10829_v37  ;;  %v10900_v35 = vld [vmem:[%s15616_s1 + $0x6c8] ss:$12 sps:$4 sm:$0xff]  }
  0x55   :  { %5144 = vmatprep.mubr.bf16.mxu1 %v12375_v38  ;;  %4234 = vmatprep.mubr.bf16.mxu0 %v12233_v62  ;;  %v10858_v62 = vld [vmem:[%s15616_s1 + $0x270] ss:$12 sps:$4 sm:$0xff]   ;;  %v10901_v37 = vld [vmem:[%s15616_s1 + $0x608] ss:$12 sps:$4 sm:$0xff]  }
  0x57   :  { %4254 = vmatpush1.bf16.msra.mxu0 %v10826_v39  ;;  %10009 = vmatpush3.bf16.msra.mxu1 %v10830_v40  ;;  %v10904_v39 = vld [vmem:[%s15616_s1 + $0x31c] ss:$12 sps:$4 sm:$0xff]   ;;  %v10905_v40 = vld [vmem:[%s15616_s1 + $0x6e0] ss:$12 sps:$4 sm:$0xff]  }
  0x58   :  { %4255 = vmatprep.subr.bf16.mxu0 %v10834_v41  ;;  %10010 = vmatprep.subr.bf16.mxu1 %v10836_v42  ;;  %v10907_v41 = vld [vmem:[%s15615_s0 + $0xd4] ss:$92 sps:$4 sm:$0xff]   ;;  %v10902_v42 = vld [vmem:[%s15616_s1 + $0x318] ss:$12 sps:$4 sm:$0xff]  }
  0x5a   :  { %4235 = vmatmul.mubr.bf16.gmra.mrb[12].mxu0 %v12246_v2  ;;  %5145 = vmatmul.mubr.bf16.gmra.mrb[28].mxu1 %v12396_v44  ;;  %v10866_v2 = vld [vmem:[%s15616_s1 + $0x28c] ss:$12 sps:$4 sm:$0xff]  }
  0x5b   :  { %4256 = vmatpush1.bf16.msra.mxu0 %v10832_v43  ;;  %10011 = vmatpush3.bf16.msra.mxu1 %v10837_v45  ;;  %v10906_v43 = vld [vmem:[%s15616_s1 + $0x620] ss:$12 sps:$4 sm:$0xff]  }
  0x5c   :  { %4257 = vmatprep.subr.bf16.mxu0 %v10840_v46  ;;  %10012 = vmatprep.subr.bf16.mxu1 %v10841_v47  ;;  %v10911_v45 = vld [vmem:[%s15616_s1 + $0x334] ss:$12 sps:$4 sm:$0xff]   ;;  %v10913_v46 = vld [vmem:[%s15616_s1 + $0x6f8] ss:$12 sps:$4 sm:$0xff]   ;;  %v10912_v47 = vld [vmem:[%s15615_s0 + $0xd0] ss:$92 sps:$4 sm:$0xff]  }
  0x5d   :  { %5184 = vmatprep.mubr.bf16.mxu1 %v12410_v48  ;;  %4275 = vmatprep.mubr.bf16.mxu0 %v12263_v7  ;;  %v10873_v7 = vld [vmem:[%s15616_s1 + $0x2a4] ss:$12 sps:$4 sm:$0xff]  }
  0x5f   :  { %4258 = vmatpush1.bf16.msra.mxu0 %v10838_v49  ;;  %10013 = vmatpush3.bf16.msra.mxu1 %v10842_v50  ;;  %v10914_v49 = vld [vmem:[%s15616_s1 + $0x638] ss:$12 sps:$4 sm:$0xff]  }
  0x60   :  { %4259 = vmatprep.subr.bf16.mxu0 %v10848_v51  ;;  %10038 = vmatprep.subr.bf16.mxu1 %v10849_v53  ;;  %v10917_v50 = vld [vmem:[%s15616_s1 + $0x34c] ss:$12 sps:$4 sm:$0xff]   ;;  %v10918_v51 = vld [vmem:[%s15616_s1 + $0x710] ss:$12 sps:$4 sm:$0xff]   ;;  %v10915_v53 = vld [vmem:[%s15616_s1 + $0x348] ss:$12 sps:$4 sm:$0xff]  }
  0x62   :  { %5185 = vmatmul.mubr.bf16.vlgmr.msra.gmra.mrb[32].mxu1 %v12426_v52 }
  0x63   :  { %4260 = vmatpush1.bf16.msra.mxu0 %v10846_v54  ;;  %10039 = vmatpush3.bf16.msra.mxu1 %v10850_v55  ;;  %v10919_v54 = vld [vmem:[%s15616_s1 + $0x650] ss:$12 sps:$4 sm:$0xff]  }
  0x64   :  { %4261 = vmatprep.subr.bf16.mxu0 %v10853_v56  ;;  %10040 = vmatprep.subr.bf16.mxu1 %v10854_v57  ;;  %v10924_v55 = vld [vmem:[%s15616_s1 + $0x364] ss:$12 sps:$4 sm:$0xff]   ;;  %v10926_v56 = vld [vmem:[%s15616_s1 + $0x728] ss:$12 sps:$4 sm:$0xff]  }
  0x65   :  { %5192 = vmatprep.mubr.bf16.mxu1 %v12448_v58  ;;  %v10925_v57 = vld [vmem:[%s15615_s0 + $0x188] ss:$92 sps:$4 sm:$0xff]  }
  0x67   :  { %4262 = vmatpush1.bf16.msra.mxu0 %v10851_v59  ;;  %10041 = vmatpush3.bf16.msra.mxu1 %v10855_v60  ;;  %v109_v59 = vld [vmem:[%s15615_s0 + $0x240] sm:$0x11]  ;;  %v10927_v60 = vld [vmem:[%s15616_s1 + $0x668] ss:$12 sps:$4 sm:$0xff]  }
  0x68   :  { %4263 = vmatprep.subr.bf16.mxu0 %v10860_v61  ;;  %10042 = vmatprep.subr.bf16.mxu1 %v10862_v63  ;;  %v10930_v61 = vld [vmem:[%s15616_s1 + $0x37c] ss:$12 sps:$4 sm:$0xff]   ;;  %v12651_v63 = vcombine.high %v109_v59, %v109_v59 }
  0x6a   :  { %5193 = vmatmul.mubr.bf16.gmra.mrb[36].mxu1 %v12470_v0 }
  0x6b   :  { %4264 = vmatpush1.bf16.msra.mxu0 %v10858_v62  ;;  %10043 = vmatpush3.bf16.msra.mxu1 %v10863_v1  ;;  %v10931_v62 = vld [vmem:[%s15616_s1 + $0x740] ss:$12 sps:$4 sm:$0xff]  }
  0x6c   :  { %4265 = vmatprep.subr.bf16.mxu0 %v10866_v2  ;;  %10044 = vmatprep.subr.bf16.mxu1 %v10867_v3  ;;  %v10932_v1 = vld [vmem:[%s15616_s1 + $0x680] ss:$12 sps:$4 sm:$0xff]   ;;  %v10934_v3 = vld [vmem:[%s15616_s1 + $0x390] ss:$12 sps:$4 sm:$0xff]  }
  0x6d   :  { %5200 = vmatprep.mubr.bf16.mxu1 %v12484_v4  ;;  %v10936_v2 = vld [vmem:[%s15616_s1 + $0x394] ss:$12 sps:$4 sm:$0xff]  }
  0x6f   :  { %4266 = vmatpush1.bf16.msra.mxu0 %v10864_v5  ;;  %10045 = vmatpush3.bf16.msra.mxu1 %v10868_v6  ;;  %v10939_v5 = vld [vmem:[%s15616_s1 + $0x698] ss:$12 sps:$4 sm:$0xff]   ;;  %v12674_v6 = vcombine.low %v109_v59, %v109_v59  ;;  %v10991_v59 = vld [vmem:[%s15616_s1 + $0x468] ss:$12 sps:$4 sm:$0xff]  }
  0x70   :  { %4267 = vmatprep.subr.bf16.mxu0 %v10873_v7  ;;  %10046 = vmatprep.subr.bf16.mxu1 %v10875_v9  ;;  %v10942_v7 = vld [vmem:[%s15616_s1 + $0x3ac] ss:$12 sps:$4 sm:$0xff]   ;;  %v10947_v9 = vld [vmem:[%s15615_s0 + $0x24] ss:$92 sps:$4 sm:$0xff]  }
  0x72   :  { %5201 = vmatmul.mubr.bf16.gmra.mrb[40].mxu1 %v12506_v10 }
  0x73   :  { %4268 = vmatpush1.bf16.msra.mxu0 %v10871_v8  ;;  %10047 = vmatpush3.bf16.msra.mxu1 %v10876_v12  ;;  %v10943_v8 = vld [vmem:[%s15616_s1 + $0x770] ss:$12 sps:$4 sm:$0xff]  }
  0x74   :  { %4269 = vmatprep.subr.bf16.mxu0 %v10879_v14  ;;  %10048 = vmatprep.subr.bf16.mxu1 %v10880_v15  ;;  %v10944_v12 = vld [vmem:[%s15616_s1 + $0x6b0] ss:$12 sps:$4 sm:$0xff]   ;;  %v10951_v14 = vld [vmem:[%s15616_s1 + $0x848] ss:$12 sps:$4 sm:$0xff]   ;;  %v10948_v15 = vld [vmem:[%s15616_s1 + $0x3c0] ss:$12 sps:$4 sm:$0xff]  }
  0x75   :  { %5208 = vmatprep.mubr.bf16.mxu1 %v12520_v16 }
  0x77   :  { %4270 = vmatpush1.bf16.msra.mxu0 %v10877_v18  ;;  %10049 = vmatpush3.bf16.msra.mxu1 %v10881_v19  ;;  %v10952_v18 = vld [vmem:[%s15616_s1 + $0x788] ss:$12 sps:$4 sm:$0xff]  }
  0x78   :  { %4271 = vmatprep.subr.bf16.mxu0 %v10885_v20  ;;  %10050 = vmatprep.subr.bf16.mxu1 %v10887_v21  ;;  %v10955_v19 = vld [vmem:[%s15616_s1 + $0x3dc] ss:$12 sps:$4 sm:$0xff]   ;;  %v10956_v20 = vld [vmem:[%s15616_s1 + $0x860] ss:$12 sps:$4 sm:$0xff]   ;;  %v10953_v21 = vld [vmem:[%s15616_s1 + $0x3d8] ss:$12 sps:$4 sm:$0xff]  }
  0x7a   :  { %5209 = vmatmul.mubr.bf16.gmra.mrb[44].mxu1 %v12539_v24 }
  0x7b   :  { %4272 = vmatpush1.bf16.msra.mxu0 %v10883_v22  ;;  %10051 = vmatpush3.bf16.msra.mxu1 %v10888_v25  ;;  %v10957_v22 = vld [vmem:[%s15616_s1 + $0x7a0] ss:$12 sps:$4 sm:$0xff]  }
  0x7c   :  { %4273 = vmatprep.subr.bf16.mxu0 %v10891_v26  ;;  %10052 = vmatprep.subr.bf16.mxu1 %v10892_v28  ;;  %v10962_v25 = vld [vmem:[%s15616_s1 + $0x3f4] ss:$12 sps:$4 sm:$0xff]   ;;  %v10960_v26 = vld [vmem:[%s15616_s1 + $0x3f0] ss:$12 sps:$4 sm:$0xff]   ;;  %v10964_v28 = vld [vmem:[%s15616_s1 + $0x878] ss:$12 sps:$4 sm:$0xff]  }
  0x7d   :  { %5248 = vmatprep.mubr.bf16.mxu1 %v12553_v29 }
  0x7f   :  { %4274 = vmatpush1.bf16.msra.mxu0 %v10889_v30  ;;  %10053 = vmatpush3.bf16.msra.mxu1 %v10893_v31  ;;  %v10963_v30 = vld [vmem:[%s15615_s0 + $0xd8] ss:$92 sps:$4 sm:$0xff]  }
  0x80   :  { %4314 = vmatprep.subr.bf16.mxu0 %v10899_v32  ;;  %10078 = vmatprep.subr.bf16.mxu1 %v10900_v35  ;;  %v10965_v31 = vld [vmem:[%s15616_s1 + $0x7b8] ss:$12 sps:$4 sm:$0xff]   ;;  %v10971_v35 = vld [vmem:[%s15615_s0 + $0x194] ss:$92 sps:$4 sm:$0xff]  }
  0x81   :  { %v10968_v32 = vld [vmem:[%s15616_s1 + $0x40c] ss:$12 sps:$4 sm:$0xff]  }
  0x82   :  { %4276 = vmatmul.mubr.bf16.vlgmr.msra.gmra.mrb[0].mxu0 %v12278_v11  ;;  %5249 = vmatmul.mubr.bf16.vlgmr.msra.gmra.mrb[48].mxu1 %v10894_v34  ;;  %v10909_v11 = vld [vmem:[%s15616_s1 + $0x330] ss:$12 sps:$4 sm:$0xff]  }
  0x83   :  { %4315 = vmatpush1.bf16.msra.mxu0 %v10897_v36  ;;  %10079 = vmatpush3.bf16.msra.mxu1 %v10901_v37  ;;  %v10969_v34 = vld [vmem:[%s15616_s1 + $0x890] ss:$12 sps:$4 sm:$0xff]   ;;  %v10966_v36 = vld [vmem:[%s15616_s1 + $0x408] ss:$12 sps:$4 sm:$0xff]  }
  0x84   :  { %4316 = vmatprep.subr.bf16.mxu0 %v10904_v39  ;;  %10080 = vmatprep.subr.bf16.mxu1 %v10905_v40  ;;  %v10970_v37 = vld [vmem:[%s15616_s1 + $0x7d0] ss:$12 sps:$4 sm:$0xff]   ;;  %v10973_v40 = vld [vmem:[%s15616_s1 + $0x420] ss:$12 sps:$4 sm:$0xff]  }
  0x85   :  { %5256 = vmatprep.mubr.bf16.mxu1 %v10907_v41  ;;  %4285 = vmatprep.mubr.bf16.mxu0 %v12299_v17  ;;  %v10920_v17 = vld [vmem:[%s15615_s0 + $0x18c] ss:$92 sps:$4 sm:$0xff]   ;;  %v10975_v39 = vld [vmem:[%s15616_s1 + $0x424] ss:$12 sps:$4 sm:$0xff]  }
  0x86   :  { %v10976_v41 = vld [vmem:[%s15615_s0 + $0x190] ss:$92 sps:$4 sm:$0xff]  }
  0x87   :  { %4317 = vmatpush1.bf16.msra.mxu0 %v10902_v42  ;;  %10081 = vmatpush3.bf16.msra.mxu1 %v10906_v43  ;;  %v10977_v42 = vld [vmem:[%s15616_s1 + $0x8a8] ss:$12 sps:$4 sm:$0xff]  }
  0x88   :  { %4318 = vmatprep.subr.bf16.mxu0 %v10911_v45  ;;  %10082 = vmatprep.subr.bf16.mxu1 %v10913_v46  ;;  %v110_v43 = vld [vmem:[%s15615_s0 + $0x248] sm:$0x11] }
  0x89   :  { %v10978_v45 = vld [vmem:[%s15616_s1 + $0x7e8] ss:$12 sps:$4 sm:$0xff]   ;;  %v10982_v46 = vld [vmem:[%s15616_s1 + $0x8c0] ss:$12 sps:$4 sm:$0xff]  }
  0x8a   :  { %4286 = vmatmul.mubr.bf16.gmra.mrb[4].mxu0 %v12322_v23  ;;  %5257 = vmatmul.mubr.bf16.gmra.mrb[52].mxu1 %v10912_v47  ;;  %v10922_v23 = vld [vmem:[%s15616_s1 + $0x360] ss:$12 sps:$4 sm:$0xff]   ;;  %v12778_v47 = vcombine.high %v110_v43, %v110_v43 }
  0x8b   :  { %4319 = vmatpush1.bf16.msra.mxu0 %v10909_v11  ;;  %10083 = vmatpush3.bf16.msra.mxu1 %v10914_v49  ;;  %v10981_v11 = vld [vmem:[%s15616_s1 + $0x43c] ss:$12 sps:$4 sm:$0xff]   ;;  %v10979_v49 = vld [vmem:[%s15616_s1 + $0x438] ss:$12 sps:$4 sm:$0xff]  }
  0x8c   :  { %4320 = vmatprep.subr.bf16.mxu0 %v10917_v50  ;;  %10084 = vmatprep.subr.bf16.mxu1 %v10918_v51  ;;  %v10983_v50 = vld [vmem:[%s15616_s1 + $0x800] ss:$12 sps:$4 sm:$0xff]  }
  0x8d   :  { %5264 = vmatprep.mubr.bf16.mxu1 %v10920_v17  ;;  %4295 = vmatprep.mubr.bf16.mxu0 %v12337_v27  ;;  %v10928_v27 = vld [vmem:[%s15616_s1 + $0x378] ss:$12 sps:$4 sm:$0xff]   ;;  %v10987_v51 = vld [vmem:[%s15616_s1 + $0x454] ss:$12 sps:$4 sm:$0xff]   ;;  %v10985_v17 = vld [vmem:[%s15616_s1 + $0x450] ss:$12 sps:$4 sm:$0xff]  }
  0x8f   :  { %4321 = vmatpush1.bf16.msra.mxu0 %v10915_v53  ;;  %10085 = vmatpush3.bf16.msra.mxu1 %v10919_v54  ;;  %v10989_v53 = vld [vmem:[%s15616_s1 + $0x8d8] ss:$12 sps:$4 sm:$0xff]  }
  0x90   :  { %4322 = vmatprep.subr.bf16.mxu0 %v10924_v55  ;;  %10086 = vmatprep.subr.bf16.mxu1 %v10926_v56  ;;  %v10990_v54 = vld [vmem:[%s15616_s1 + $0x818] ss:$12 sps:$4 sm:$0xff]   ;;  %v12799_v55 = vcombine.low %v110_v43, %v110_v43  ;;  %v10994_v56 = vld [vmem:[%s15616_s1 + $0x8f0] ss:$12 sps:$4 sm:$0xff]   ;;  %v11050_v43 = vld [vmem:[%s15616_s1 + $0x540] ss:$12 sps:$4 sm:$0xff]  }
  0x92   :  { %4296 = vmatmul.mubr.bf16.gmra.mrb[8].mxu0 %v12360_v33  ;;  %5265 = vmatmul.mubr.bf16.gmra.mrb[56].mxu1 %v10925_v57  ;;  %v10938_v33 = vld [vmem:[%s15616_s1 + $0x758] ss:$12 sps:$4 sm:$0xff]   ;;  %v10998_v57 = vld [vmem:[%s15615_s0 + $0x2c] ss:$92 sps:$4 sm:$0xff]  }
  0x93   :  { %4323 = vmatpush1.bf16.msra.mxu0 %v10922_v23  ;;  %10087 = vmatpush3.bf16.msra.mxu1 %v10927_v60  ;;  %v10993_v23 = vld [vmem:[%s15616_s1 + $0x46c] ss:$12 sps:$4 sm:$0xff]   ;;  %v10995_v60 = vld [vmem:[%s15616_s1 + $0x830] ss:$12 sps:$4 sm:$0xff]  }
  0x94   :  { %4324 = vmatprep.subr.bf16.mxu0 %v10930_v61  ;;  %10088 = vmatprep.subr.bf16.mxu1 %v10931_v62  ;;  %v11001_v61 = vld [vmem:[%s15616_s1 + $0x484] ss:$12 sps:$4 sm:$0xff]  }
  0x95   :  { %5272 = vmatprep.mubr.bf16.mxu1 %v12651_v63  ;;  %4305 = vmatprep.mubr.bf16.mxu0 %v12375_v38  ;;  %v10940_v38 = vld [vmem:[%s15616_s1 + $0x3a8] ss:$12 sps:$4 sm:$0xff]  }
  0x96   :  { %v10996_v62 = vld [vmem:[%s15615_s0 + $0x28] ss:$92 sps:$4 sm:$0xff]  }
  0x97   :  { %4325 = vmatpush1.bf16.msra.mxu0 %v10928_v27  ;;  %10089 = vmatpush3.bf16.msra.mxu1 %v10932_v1  ;;  %v11002_v27 = vld [vmem:[%s15616_s1 + $0x9c8] ss:$12 sps:$4 sm:$0xff]   ;;  %v10999_v1 = vld [vmem:[%s15616_s1 + $0x480] ss:$12 sps:$4 sm:$0xff]  }
  0x98   :  { %4326 = vmatprep.subr.bf16.mxu0 %v10936_v2  ;;  %10090 = vmatprep.subr.bf16.mxu1 %v10938_v33  ;;  %v11003_v2 = vld [vmem:[%s15616_s1 + $0x908] ss:$12 sps:$4 sm:$0xff]  }
  0x99   :  { %v11006_v33 = vld [vmem:[%s15616_s1 + $0x49c] ss:$12 sps:$4 sm:$0xff]  }
  0x9a   :  { %4306 = vmatmul.mubr.bf16.gmra.mrb[12].mxu0 %v12396_v44  ;;  %5273 = vmatmul.mubr.bf16.gmra.mrb[60].mxu1 %v12674_v6  ;;  %v10945_v44 = vld [vmem:[%s15615_s0 + $0x20] ss:$92 sps:$4 sm:$0xff]  }
  0x9b   :  { %4327 = vmatpush1.bf16.msra.mxu0 %v10934_v3  ;;  %10091 = vmatpush3.bf16.msra.mxu1 %v10939_v5  ;;  %v11007_v3 = vld [vmem:[%s15616_s1 + $0x9e0] ss:$12 sps:$4 sm:$0xff]  }
  0x9c   :  { %4328 = vmatprep.subr.bf16.mxu0 %v10942_v7  ;;  %10092 = vmatprep.subr.bf16.mxu1 %v10943_v8  ;;  %v11009_v5 = vld [vmem:[%s15615_s0 + $0xe4] ss:$92 sps:$4 sm:$0xff]  }
  0x9d   :  { %5312 = vmatprep.mubr.bf16.mxu1 %v10947_v9  ;;  %4346 = vmatprep.mubr.bf16.mxu0 %v12410_v48  ;;  %v10958_v48 = vld [vmem:[%s15615_s0 + $0xdc] ss:$92 sps:$4 sm:$0xff]   ;;  %v11008_v8 = vld [vmem:[%s15616_s1 + $0x920] ss:$12 sps:$4 sm:$0xff]  }
  0x9e   :  { %v11004_v7 = vld [vmem:[%s15616_s1 + $0x498] ss:$12 sps:$4 sm:$0xff]   ;;  %v11013_v9 = vld [vmem:[%s15616_s1 + $0x4b4] ss:$12 sps:$4 sm:$0xff]  }
  0x9f   :  { %4329 = vmatpush1.bf16.msra.mxu0 %v10940_v38  ;;  %10093 = vmatpush3.bf16.msra.mxu1 %v10944_v12  ;;  %v11015_v38 = vld [vmem:[%s15616_s1 + $0x9f8] ss:$12 sps:$4 sm:$0xff]   ;;  %v11014_v12 = vld [vmem:[%s15615_s0 + $0xe0] ss:$92 sps:$4 sm:$0xff]  }
  0xa0   :  { %4330 = vmatprep.subr.bf16.mxu0 %v10950_v13  ;;  %10118 = vmatprep.subr.bf16.mxu1 %v10951_v14  ;;  %v11016_v13 = vld [vmem:[%s15616_s1 + $0x938] ss:$12 sps:$4 sm:$0xff]   ;;  %v11020_v14 = vld [vmem:[%s15616_s1 + $0xa10] ss:$12 sps:$4 sm:$0xff]  }
  0xa2   :  { %5313 = vmatmul.mubr.bf16.vlgmr.msra.gmra.mrb[64].mxu1 %v10945_v44  ;;  %v11019_v44 = vld [vmem:[%s15616_s1 + $0x4cc] ss:$12 sps:$4 sm:$0xff]  }
  0xa3   :  { %4331 = vmatpush1.bf16.msra.mxu0 %v10948_v15  ;;  %10119 = vmatpush3.bf16.msra.mxu1 %v10952_v18  ;;  %v11022_v15 = vld [vmem:[%s15615_s0 + $0x19c] ss:$92 sps:$4 sm:$0xff]  }
  0xa4   :  { %4332 = vmatprep.subr.bf16.mxu0 %v10955_v19  ;;  %10120 = vmatprep.subr.bf16.mxu1 %v10956_v20  ;;  %v11021_v18 = vld [vmem:[%s15616_s1 + $0x950] ss:$12 sps:$4 sm:$0xff]   ;;  %v11027_v20 = vld [vmem:[%s15615_s0 + $0x198] ss:$92 sps:$4 sm:$0xff]  }
  0xa5   :  { %5320 = vmatprep.mubr.bf16.mxu1 %v10958_v48  ;;  %v11026_v19 = vld [vmem:[%s15616_s1 + $0x4e4] ss:$12 sps:$4 sm:$0xff]   ;;  %v11028_v48 = vld [vmem:[%s15616_s1 + $0xa28] ss:$12 sps:$4 sm:$0xff]  }
  0xa7   :  { %4333 = vmatpush1.bf16.msra.mxu0 %v10953_v21  ;;  %10121 = vmatpush3.bf16.msra.mxu1 %v10957_v22  ;;  %v111_v21 = vld [vmem:[%s15615_s0 + $0x250] sm:$0x11] }
  0xa8   :  { %4334 = vmatprep.subr.bf16.mxu0 %v10962_v25  ;;  %10122 = vmatprep.subr.bf16.mxu1 %v10964_v28  ;;  %v11029_v22 = vld [vmem:[%s15616_s1 + $0x968] ss:$12 sps:$4 sm:$0xff]   ;;  %v12905_v28 = vcombine.high %v111_v21, %v111_v21 }
  0xa9   :  { %v11032_v25 = vld [vmem:[%s15616_s1 + $0x4fc] ss:$12 sps:$4 sm:$0xff]  }
  0xaa   :  { %5321 = vmatmul.mubr.bf16.gmra.mrb[68].mxu1 %v10963_v30  ;;  %v11034_v30 = vld [vmem:[%s15616_s1 + $0x980] ss:$12 sps:$4 sm:$0xff]  }
  0xab   :  { %4335 = vmatpush1.bf16.msra.mxu0 %v10960_v26  ;;  %10123 = vmatpush3.bf16.msra.mxu1 %v10965_v31  ;;  %v11033_v26 = vld [vmem:[%s15616_s1 + $0xa40] ss:$12 sps:$4 sm:$0xff]  }
  0xac   :  { %4336 = vmatprep.subr.bf16.mxu0 %v10968_v32  ;;  %10124 = vmatprep.subr.bf16.mxu1 %v10969_v34  ;;  %v11038_v31 = vld [vmem:[%s15616_s1 + $0x514] ss:$12 sps:$4 sm:$0xff]   ;;  %v11036_v32 = vld [vmem:[%s15616_s1 + $0x510] ss:$12 sps:$4 sm:$0xff]   ;;  %v12925_v34 = vcombine.low %v111_v21, %v111_v21 }
  0xad   :  { %5328 = vmatprep.mubr.bf16.mxu1 %v10971_v35  ;;  %v11041_v35 = vld [vmem:[%s15616_s1 + $0x998] ss:$12 sps:$4 sm:$0xff]   ;;  %v11104_v21 = vld [vmem:[%s15616_s1 + $0xcc8] ss:$12 sps:$4 sm:$0xff]  }
  0xaf   :  { %4337 = vmatpush1.bf16.msra.mxu0 %v10966_v36  ;;  %10125 = vmatpush3.bf16.msra.mxu1 %v10970_v37  ;;  %v11044_v36 = vld [vmem:[%s15616_s1 + $0x52c] ss:$12 sps:$4 sm:$0xff]   ;;  %v11045_v37 = vld [vmem:[%s15616_s1 + $0xa70] ss:$12 sps:$4 sm:$0xff]  }
  0xb0   :  { %4338 = vmatprep.subr.bf16.mxu0 %v10975_v39  ;;  %10126 = vmatprep.subr.bf16.mxu1 %v10977_v42  ;;  %v11042_v39 = vld [vmem:[%s15616_s1 + $0x528] ss:$12 sps:$4 sm:$0xff]   ;;  %v11047_v42 = vld [vmem:[%s15615_s0 + $0x30] ss:$92 sps:$4 sm:$0xff]  }
  0xb2   :  { %5329 = vmatmul.mubr.bf16.gmra.mrb[72].mxu1 %v10976_v41  ;;  %v11052_v41 = vld [vmem:[%s15616_s1 + $0x544] ss:$12 sps:$4 sm:$0xff]  }
  0xb3   :  { %4339 = vmatpush1.bf16.msra.mxu0 %v10973_v40  ;;  %10127 = vmatpush3.bf16.msra.mxu1 %v10978_v45  ;;  %v11046_v40 = vld [vmem:[%s15616_s1 + $0x9b0] ss:$12 sps:$4 sm:$0xff]   ;;  %v11054_v45 = vld [vmem:[%s15616_s1 + $0xa88] ss:$12 sps:$4 sm:$0xff]  }
  0xb4   :  { %4340 = vmatprep.subr.bf16.mxu0 %v10981_v11  ;;  %10128 = vmatprep.subr.bf16.mxu1 %v10982_v46  ;;  %v11057_v11 = vld [vmem:[%s15616_s1 + $0x55c] ss:$12 sps:$4 sm:$0xff]   ;;  %v11058_v46 = vld [vmem:[%s15616_s1 + $0xb60] ss:$12 sps:$4 sm:$0xff]  }
  0xb5   :  { %5336 = vmatprep.mubr.bf16.mxu1 %v12778_v47 }
  0xb7   :  { %4341 = vmatpush1.bf16.msra.mxu0 %v10979_v49  ;;  %10129 = vmatpush3.bf16.msra.mxu1 %v10983_v50  ;;  %v11055_v49 = vld [vmem:[%s15616_s1 + $0x558] ss:$12 sps:$4 sm:$0xff]   ;;  %v11059_v50 = vld [vmem:[%s15616_s1 + $0xaa0] ss:$12 sps:$4 sm:$0xff]  }
  0xb8   :  { %4342 = vmatprep.subr.bf16.mxu0 %v10987_v51  ;;  %10130 = vmatprep.subr.bf16.mxu1 %v10989_v53  ;;  %v11064_v51 = vld [vmem:[%s15616_s1 + $0x574] ss:$12 sps:$4 sm:$0xff]   ;;  %v11066_v53 = vld [vmem:[%s15616_s1 + $0xb78] ss:$12 sps:$4 sm:$0xff]  }
  0xba   :  { %5337 = vmatmul.mubr.bf16.gmra.mrb[76].mxu1 %v12799_v55 }
  0xbb   :  { %4343 = vmatpush1.bf16.msra.mxu0 %v10985_v17  ;;  %10131 = vmatpush3.bf16.msra.mxu1 %v10990_v54  ;;  %v11062_v17 = vld [vmem:[%s15616_s1 + $0x570] ss:$12 sps:$4 sm:$0xff]   ;;  %v11065_v54 = vld [vmem:[%s15615_s0 + $0xe8] ss:$92 sps:$4 sm:$0xff]  }
  0xbc   :  { %4344 = vmatprep.subr.bf16.mxu0 %v10993_v23  ;;  %10132 = vmatprep.subr.bf16.mxu1 %v10994_v56  ;;  %v11067_v23 = vld [vmem:[%s15616_s1 + $0xab8] ss:$12 sps:$4 sm:$0xff]  }
  0xbd   :  { %5376 = vmatprep.mubr.bf16.mxu1 %v10998_v57  ;;  %v11070_v56 = vld [vmem:[%s15616_s1 + $0x58c] ss:$12 sps:$4 sm:$0xff]   ;;  %v11071_v57 = vld [vmem:[%s15616_s1 + $0xb90] ss:$12 sps:$4 sm:$0xff]  }
  0xbf   :  { %4345 = vmatpush1.bf16.msra.mxu0 %v10991_v59  ;;  %10133 = vmatpush3.bf16.msra.mxu1 %v10995_v60  ;;  %v11073_v59 = vld [vmem:[%s15615_s0 + $0x1a4] ss:$92 sps:$4 sm:$0xff]   ;;  %v11068_v60 = vld [vmem:[%s15616_s1 + $0x588] ss:$12 sps:$4 sm:$0xff]  }
  0xc0   :  { %4385 = vmatprep.subr.bf16.mxu0 %v11001_v61  ;;  %10158 = vmatprep.subr.bf16.mxu1 %v11002_v27  ;;  %v11072_v61 = vld [vmem:[%s15616_s1 + $0xad0] ss:$12 sps:$4 sm:$0xff]   ;;  %v11075_v27 = vld [vmem:[%s15616_s1 + $0x5a0] ss:$12 sps:$4 sm:$0xff]  }
  0xc2   :  { %4347 = vmatmul.mubr.bf16.vlgmr.msra.gmra.mrb[0].mxu0 %v12426_v52  ;;  %5377 = vmatmul.mubr.bf16.vlgmr.msra.gmra.mrb[80].mxu1 %v10996_v62  ;;  %v11011_v52 = vld [vmem:[%s15616_s1 + $0x4b0] ss:$12 sps:$4 sm:$0xff]  }
  0xc3   :  { %4386 = vmatpush1.bf16.msra.mxu0 %v10999_v1  ;;  %10159 = vmatpush3.bf16.msra.mxu1 %v11003_v2  ;;  %v11077_v62 = vld [vmem:[%s15616_s1 + $0x5a4] ss:$12 sps:$4 sm:$0xff]   ;;  %v11079_v1 = vld [vmem:[%s15616_s1 + $0xba8] ss:$12 sps:$4 sm:$0xff]   ;;  %v112_v2 = vld [vmem:[%s15615_s0 + $0x258] sm:$0x11] }
  0xc4   :  { %4387 = vmatprep.subr.bf16.mxu0 %v11006_v33  ;;  %10160 = vmatprep.subr.bf16.mxu1 %v11007_v3  ;;  %v11078_v33 = vld [vmem:[%s15615_s0 + $0x1a0] ss:$92 sps:$4 sm:$0xff]   ;;  %v11080_v3 = vld [vmem:[%s15616_s1 + $0xae8] ss:$12 sps:$4 sm:$0xff]  }
  0xc5   :  { %5384 = vmatprep.mubr.bf16.mxu1 %v11009_v5  ;;  %4356 = vmatprep.mubr.bf16.mxu0 %v12448_v58  ;;  %v11017_v58 = vld [vmem:[%s15616_s1 + $0x4c8] ss:$12 sps:$4 sm:$0xff]  }
  0xc6   :  { %v11083_v5 = vld [vmem:[%s15616_s1 + $0x5bc] ss:$12 sps:$4 sm:$0xff]  }
  0xc7   :  { %4388 = vmatpush1.bf16.msra.mxu0 %v11004_v7  ;;  %10161 = vmatpush3.bf16.msra.mxu1 %v11008_v8  ;;  %v11084_v7 = vld [vmem:[%s15616_s1 + $0xbc0] ss:$12 sps:$4 sm:$0xff]   ;;  %v13032_v8 = vcombine.high %v112_v2, %v112_v2 }
  0xc8   :  { %4389 = vmatprep.subr.bf16.mxu0 %v11013_v9  ;;  %10162 = vmatprep.subr.bf16.mxu1 %v11015_v38  ;;  %v11081_v9 = vld [vmem:[%s15616_s1 + $0x5b8] ss:$12 sps:$4 sm:$0xff]   ;;  %v11089_v38 = vld [vmem:[%s15616_s1 + $0x5d4] ss:$12 sps:$4 sm:$0xff]  }
  0xca   :  { %4357 = vmatmul.mubr.bf16.gmra.mrb[4].mxu0 %v12470_v0  ;;  %5385 = vmatmul.mubr.bf16.gmra.mrb[84].mxu1 %v11014_v12  ;;  %v11024_v0 = vld [vmem:[%s15616_s1 + $0x4e0] ss:$12 sps:$4 sm:$0xff]   ;;  %v11091_v12 = vld [vmem:[%s15616_s1 + $0xbd8] ss:$12 sps:$4 sm:$0xff]  }
  0xcb   :  { %4390 = vmatpush1.bf16.msra.mxu0 %v11011_v52  ;;  %10163 = vmatpush3.bf16.msra.mxu1 %v11016_v13  ;;  %v11085_v52 = vld [vmem:[%s15616_s1 + $0xb00] ss:$12 sps:$4 sm:$0xff]   ;;  %v11087_v13 = vld [vmem:[%s15616_s1 + $0x5d0] ss:$12 sps:$4 sm:$0xff]  }
  0xcc   :  { %4391 = vmatprep.subr.bf16.mxu0 %v11019_v44  ;;  %10164 = vmatprep.subr.bf16.mxu1 %v11020_v14  ;;  %v13050_v44 = vcombine.low %v112_v2, %v112_v2  ;;  %v11092_v14 = vld [vmem:[%s15616_s1 + $0xb18] ss:$12 sps:$4 sm:$0xff]  }
  0xcd   :  { %5392 = vmatprep.mubr.bf16.mxu1 %v11022_v15  ;;  %4366 = vmatprep.mubr.bf16.mxu0 %v12484_v4  ;;  %v11030_v4 = vld [vmem:[%s15616_s1 + $0x4f8] ss:$12 sps:$4 sm:$0xff]  }
  0xce   :  { %v11095_v15 = vld [vmem:[%s15616_s1 + $0x5ec] ss:$12 sps:$4 sm:$0xff]  }
  0xcf   :  { %4392 = vmatpush1.bf16.msra.mxu0 %v11017_v58  ;;  %10165 = vmatpush3.bf16.msra.mxu1 %v11021_v18  ;;  %v11096_v58 = vld [vmem:[%s15616_s1 + $0xbf0] ss:$12 sps:$4 sm:$0xff]   ;;  %v11143_v2 = vld [vmem:[%s15616_s1 + $0xc98] ss:$12 sps:$4 sm:$0xff]  }
  0xd0   :  { %4393 = vmatprep.subr.bf16.mxu0 %v11026_v19  ;;  %10166 = vmatprep.subr.bf16.mxu1 %v11028_v48  ;;  %v11100_v18 = vld [vmem:[%s15615_s0 + $0x3c] ss:$92 sps:$4 sm:$0xff]   ;;  %v11093_v19 = vld [vmem:[%s15616_s1 + $0x5e8] ss:$12 sps:$4 sm:$0xff]  }
  0xd1   :  { %v11098_v48 = vld [vmem:[%s15615_s0 + $0x38] ss:$92 sps:$4 sm:$0xff]  }
  0xd2   :  { %4367 = vmatmul.mubr.bf16.gmra.mrb[8].mxu0 %v12506_v10  ;;  %5393 = vmatmul.mubr.bf16.gmra.mrb[88].mxu1 %v11027_v20  ;;  %v11040_v10 = vld [vmem:[%s15616_s1 + $0xa58] ss:$12 sps:$4 sm:$0xff]  }
  0xd3   :  { %4394 = vmatpush1.bf16.msra.mxu0 %v11024_v0  ;;  %10167 = vmatpush3.bf16.msra.mxu1 %v11029_v22  ;;  %v11097_v0 = vld [vmem:[%s15616_s1 + $0xb30] ss:$12 sps:$4 sm:$0xff]   ;;  %v11101_v22 = vld [vmem:[%s15616_s1 + $0x600] ss:$12 sps:$4 sm:$0xff]  }
  0xd4   :  { %4395 = vmatprep.subr.bf16.mxu0 %v11032_v25  ;;  %10168 = vmatprep.subr.bf16.mxu1 %v11033_v26  ;;  %v11103_v20 = vld [vmem:[%s15616_s1 + $0x604] ss:$12 sps:$4 sm:$0xff]   ;;  %v11105_v25 = vld [vmem:[%s15616_s1 + $0xc08] ss:$12 sps:$4 sm:$0xff]  }
  0xd5   :  { %5400 = vmatprep.mubr.bf16.mxu1 %v12905_v28  ;;  %4376 = vmatprep.mubr.bf16.mxu0 %v12520_v16  ;;  %v11049_v16 = vld [vmem:[%s15615_s0 + $0x34] ss:$92 sps:$4 sm:$0xff]   ;;  %v11108_v26 = vld [vmem:[%s15616_s1 + $0x61c] ss:$12 sps:$4 sm:$0xff]  }
  0xd7   :  { %4396 = vmatpush1.bf16.msra.mxu0 %v11030_v4  ;;  %10169 = vmatpush3.bf16.msra.mxu1 %v11034_v30  ;;  %v11109_v4 = vld [vmem:[%s15616_s1 + $0xce0] ss:$12 sps:$4 sm:$0xff]   ;;  %v11111_v30 = vld [vmem:[%s15615_s0 + $0xf4] ss:$92 sps:$4 sm:$0xff]  }
  0xd8   :  { %4397 = vmatprep.subr.bf16.mxu0 %v11038_v31  ;;  %10170 = vmatprep.subr.bf16.mxu1 %v11040_v10  ;;  %v11922_v31 = vld [vmem:[%s15615_s0 + $0x18] ss:$92 sps:$4 sm:$0xff]  }
  0xd9   :  { %v11106_v10 = vld [vmem:[%s15616_s1 + $0x618] ss:$12 sps:$4 sm:$0xff]  }
  0xda   :  { %4377 = vmatmul.mubr.bf16.gmra.mrb[12].mxu0 %v12539_v24  ;;  %5401 = vmatmul.mubr.bf16.gmra.mrb[92].mxu1 %v12925_v34  ;;  %v11053_v24 = vld [vmem:[%s15616_s1 + $0xb48] ss:$12 sps:$4 sm:$0xff]  }
  0xdb   :  { %4398 = vmatpush1.bf16.msra.mxu0 %v11036_v32  ;;  %10171 = vmatpush3.bf16.msra.mxu1 %v11041_v35  ;;  %v11110_v32 = vld [vmem:[%s15616_s1 + $0xc20] ss:$12 sps:$4 sm:$0xff]  }
  0xdc   :  { %4399 = vmatprep.subr.bf16.mxu0 %v11044_v36  ;;  %10172 = vmatprep.subr.bf16.mxu1 %v11045_v37  ;;  %v11115_v35 = vld [vmem:[%s15616_s1 + $0x634] ss:$12 sps:$4 sm:$0xff]   ;;  %v11113_v36 = vld [vmem:[%s15616_s1 + $0x630] ss:$12 sps:$4 sm:$0xff]   ;;  %v11117_v37 = vld [vmem:[%s15616_s1 + $0xcf8] ss:$12 sps:$4 sm:$0xff]  }
  0xdd   :  { %5440 = vmatprep.mubr.bf16.mxu1 %v11049_v16  ;;  %4417 = vmatprep.mubr.bf16.mxu0 %v12553_v29  ;;  %v11060_v29 = vld [vmem:[%s15615_s0 + $0xec] ss:$92 sps:$4 sm:$0xff]  }
  0xde   :  { %v11116_v16 = vld [vmem:[%s15615_s0 + $0xf0] ss:$92 sps:$4 sm:$0xff]  }
  0xdf   :  { %4400 = vmatpush1.bf16.msra.mxu0 %v11042_v39  ;;  %10173 = vmatpush3.bf16.msra.mxu1 %v11046_v40  ;;  %v11923_v39 = vld [vmem:[%s15615_s0 + $0xd4] ss:$92 sps:$4 sm:$0xff]   ;;  %v11118_v40 = vld [vmem:[%s15616_s1 + $0xc38] ss:$12 sps:$4 sm:$0xff]  }
  0xe0   :  { %4401 = vmatprep.subr.bf16.mxu0 %v11052_v41  ;;  %10198 = vmatprep.subr.bf16.mxu1 %v11053_v24  ;;  %v11121_v41 = vld [vmem:[%s15616_s1 + $0x64c] ss:$12 sps:$4 sm:$0xff]  }
  0xe1   :  { %v11124_v24 = vld [vmem:[%s15615_s0 + $0x1ac] ss:$92 sps:$4 sm:$0xff]  }
  0xe2   :  { %5441 = vmatmul.mubr.bf16.vlgmr.msra.gmra.mrb[96].mxu1 %v11047_v42  ;;  %v11122_v42 = vld [vmem:[%s15616_s1 + $0xd10] ss:$12 sps:$4 sm:$0xff]  }
  0xe3   :  { %4402 = vmatpush1.bf16.msra.mxu0 %v11050_v43  ;;  %10199 = vmatpush3.bf16.msra.mxu1 %v11054_v45  ;;  %v11119_v43 = vld [vmem:[%s15616_s1 + $0x648] ss:$12 sps:$4 sm:$0xff]   ;;  %v11924_v45 = vld [vmem:[%s15615_s0 + $0xd0] ss:$92 sps:$4 sm:$0xff]  }
  0xe4   :  { %4403 = vmatprep.subr.bf16.mxu0 %v11057_v11  ;;  %10200 = vmatprep.subr.bf16.mxu1 %v11058_v46  ;;  %v11123_v11 = vld [vmem:[%s15616_s1 + $0xc50] ss:$12 sps:$4 sm:$0xff]  }
  0xe5   :  { %5448 = vmatprep.mubr.bf16.mxu1 %v11060_v29  ;;  %v11128_v46 = vld [vmem:[%s15616_s1 + $0x664] ss:$12 sps:$4 sm:$0xff]   ;;  %v11126_v29 = vld [vmem:[%s15616_s1 + $0x660] ss:$12 sps:$4 sm:$0xff]  }
  0xe7   :  { %4404 = vmatpush1.bf16.msra.mxu0 %v11055_v49  ;;  %10201 = vmatpush3.bf16.msra.mxu1 %v11059_v50  ;;  %v11130_v49 = vld [vmem:[%s15616_s1 + $0xd28] ss:$12 sps:$4 sm:$0xff]   ;;  %v113_v50 = vld [vmem:[%s15615_s0 + $0x260] sm:$0x11] }
  0xe8   :  { %4405 = vmatprep.subr.bf16.mxu0 %v11064_v51  ;;  %10202 = vmatprep.subr.bf16.mxu1 %v11066_v53  ;;  %v11925_v51 = vld [vmem:[%s15615_s0 + $0x18c] ss:$92 sps:$4 sm:$0xff]  }
  0xe9   :  { %v11131_v53 = vld [vmem:[%s15616_s1 + $0xc68] ss:$12 sps:$4 sm:$0xff]  }
  0xea   :  { %5449 = vmatmul.mubr.bf16.gmra.mrb[100].mxu1 %v11065_v54  ;;  %v11134_v54 = vld [vmem:[%s15616_s1 + $0x67c] ss:$12 sps:$4 sm:$0xff]  }
  0xeb   :  { %4406 = vmatpush1.bf16.msra.mxu0 %v11062_v17  ;;  %10203 = vmatpush3.bf16.msra.mxu1 %v11067_v23  ;;  %v11129_v17 = vld [vmem:[%s15615_s0 + $0x1a8] ss:$92 sps:$4 sm:$0xff]   ;;  %v11135_v23 = vld [vmem:[%s15616_s1 + $0xd40] ss:$12 sps:$4 sm:$0xff]  }
  0xec   :  { %4407 = vmatprep.subr.bf16.mxu0 %v11070_v56  ;;  %10204 = vmatprep.subr.bf16.mxu1 %v11071_v57  ;;  %v13167_v56 = vcombine.high %v113_v50, %v113_v50  ;;  %v11132_v57 = vld [vmem:[%s15616_s1 + $0x678] ss:$12 sps:$4 sm:$0xff]  }
  0xed   :  { %5456 = vmatprep.mubr.bf16.mxu1 %v11073_v59  ;;  %v11926_v59 = vld [vmem:[%s15615_s0 + $0x188] ss:$92 sps:$4 sm:$0xff]  }
  0xef   :  { %4408 = vmatpush1.bf16.msra.mxu0 %v11068_v60  ;;  %10205 = vmatpush3.bf16.msra.mxu1 %v11072_v61  ;;  %v11136_v60 = vld [vmem:[%s15616_s1 + $0xc80] ss:$12 sps:$4 sm:$0xff]  }
  0xf0   :  { %4409 = vmatprep.subr.bf16.mxu0 %v11077_v62  ;;  %10206 = vmatprep.subr.bf16.mxu1 %v11079_v1  ;;  %v11140_v61 = vld [vmem:[%s15616_s1 + $0x694] ss:$12 sps:$4 sm:$0xff]   ;;  %v11142_v62 = vld [vmem:[%s15616_s1 + $0xd58] ss:$12 sps:$4 sm:$0xff]   ;;  %v13189_v1 = vcombine.low %v113_v50, %v113_v50 }
  0xf1   :  { %v11183_v50 = vld [vmem:[%s15616_s1 + $0x738] ss:$12 sps:$4 sm:$0xff]  }
  0xf2   :  { %5457 = vmatmul.mubr.bf16.gmra.mrb[104].mxu1 %v11078_v33  ;;  %v11146_v33 = vld [vmem:[%s15616_s1 + $0x6ac] ss:$12 sps:$4 sm:$0xff]  }
  0xf3   :  { %4410 = vmatpush1.bf16.msra.mxu0 %v11075_v27  ;;  %10207 = vmatpush3.bf16.msra.mxu1 %v11080_v3  ;;  %v11138_v27 = vld [vmem:[%s15616_s1 + $0x690] ss:$12 sps:$4 sm:$0xff]  }
  0xf4   :  { %4411 = vmatprep.subr.bf16.mxu0 %v11083_v5  ;;  %10208 = vmatprep.subr.bf16.mxu1 %v11084_v7  ;;  %v11147_v3 = vld [vmem:[%s15616_s1 + $0xd70] ss:$12 sps:$4 sm:$0xff]   ;;  %v11144_v5 = vld [vmem:[%s15616_s1 + $0x6a8] ss:$12 sps:$4 sm:$0xff]  }
  0xf5   :  { %5464 = vmatprep.mubr.bf16.mxu1 %v13032_v8  ;;  %v11148_v7 = vld [vmem:[%s15616_s1 + $0xcb0] ss:$12 sps:$4 sm:$0xff]  }
  0xf7   :  { %4412 = vmatpush1.bf16.msra.mxu0 %v11081_v9  ;;  %10209 = vmatpush3.bf16.msra.mxu1 %v11085_v52  ;;  %v11154_v9 = vld [vmem:[%s15616_s1 + $0x6c4] ss:$12 sps:$4 sm:$0xff]   ;;  %v11155_v52 = vld [vmem:[%s15616_s1 + $0xe48] ss:$12 sps:$4 sm:$0xff]  }
  0xf8   :  { %4413 = vmatprep.subr.bf16.mxu0 %v11089_v38  ;;  %10210 = vmatprep.subr.bf16.mxu1 %v11091_v12  ;;  %v11152_v38 = vld [vmem:[%s15616_s1 + $0x6c0] ss:$12 sps:$4 sm:$0xff]  }
  0xf9   :  { %v11927_v12 = vld [vmem:[%s15615_s0 + $0x24] ss:$92 sps:$4 sm:$0xff]  }
  0xfa   :  { %5465 = vmatmul.mubr.bf16.gmra.mrb[108].mxu1 %v13050_v44 }
  0xfb   :  { %4414 = vmatpush1.bf16.msra.mxu0 %v11087_v13  ;;  %10211 = vmatpush3.bf16.msra.mxu1 %v11092_v14  ;;  %v11156_v13 = vld [vmem:[%s15616_s1 + $0xd88] ss:$12 sps:$4 sm:$0xff]  }
  0xfc   :  { %4415 = vmatprep.subr.bf16.mxu0 %v11095_v15  ;;  %10212 = vmatprep.subr.bf16.mxu1 %v11096_v58  ;;  %v11159_v14 = vld [vmem:[%s15616_s1 + $0x6dc] ss:$12 sps:$4 sm:$0xff]   ;;  %v11160_v15 = vld [vmem:[%s15616_s1 + $0xe60] ss:$12 sps:$4 sm:$0xff]  }
  0xfd   :  { %5504 = vmatprep.mubr.bf16.mxu1 %v11100_v18  ;;  %v11162_v58 = vld [vmem:[%s15615_s0 + $0xfc] ss:$92 sps:$4 sm:$0xff]  }
  0xfe   :  { %v11157_v18 = vld [vmem:[%s15616_s1 + $0x6d8] ss:$12 sps:$4 sm:$0xff]  }
  0xff   :  { %4416 = vmatpush1.bf16.msra.mxu0 %v11093_v19  ;;  %10213 = vmatpush3.bf16.msra.mxu1 %v11097_v0  ;;  %v11161_v19 = vld [vmem:[%s15616_s1 + $0xda0] ss:$12 sps:$4 sm:$0xff]   ;;  %v9934_v0 = vpop.f32.mrb[0].mxu1 }
 0x100   :  { %4456 = vmatprep.subr.bf16.mxu0 %v11103_v20  ;;  %10238 = vmatprep.subr.bf16.mxu1 %v11104_v21  ;;  %v11166_v20 = vld [vmem:[%s15616_s1 + $0x6f4] ss:$12 sps:$4 sm:$0xff]   ;;  %v11164_v21 = vld [vmem:[%s15616_s1 + $0x6f0] ss:$12 sps:$4 sm:$0xff]  }
 0x102   :  { %4418 = vmatmul.mubr.bf16.vlgmr.msra.gmra.mrb[0].mxu0 %v11922_v31  ;;  %5505 = vmatmul.mubr.bf16.vlgmr.msra.gmra.mrb[112].mxu1 %v11098_v48  ;;  %v11168_v48 = vld [vmem:[%s15616_s1 + $0xe78] ss:$12 sps:$4 sm:$0xff]   ;;  %v11173_v31 = vld [vmem:[%s15616_s1 + $0xe90] ss:$12 sps:$4 sm:$0xff]  }
 0x103   :  { %4457 = vmatpush1.bf16.msra.mxu0 %v11101_v22  ;;  %10239 = vmatpush3.bf16.msra.mxu1 %v11105_v25  ;;  %v9935_v22 = vpop.f32.mrb[1].mxu1  ;;  %v11167_v25 = vld [vmem:[%s15615_s0 + $0xf8] ss:$92 sps:$4 sm:$0xff]  }
 0x104   :  { %4458 = vmatprep.subr.bf16.mxu0 %v11108_v26  ;;  %10240 = vmatprep.subr.bf16.mxu1 %v11109_v4  ;;  %v11169_v26 = vld [vmem:[%s15616_s1 + $0xdb8] ss:$12 sps:$4 sm:$0xff]   ;;  %v13259_v4 = vadd.f32 %v9935_v22, %v9934_v0 }
 0x105   :  { %5512 = vmatprep.mubr.bf16.mxu1 %v11111_v30  ;;  %4427 = vmatprep.mubr.bf16.mxu0 %v11923_v39  ;;  %v11172_v30 = vld [vmem:[%s15616_s1 + $0x70c] ss:$12 sps:$4 sm:$0xff]   ;;  %v11181_v39 = vld [vmem:[%s15616_s1 + $0xea8] ss:$12 sps:$4 sm:$0xff]  }
 0x106   :  { %v11208_v22 = vld [vmem:[%s15616_s1 + $0x798] ss:$12 sps:$4 sm:$0xff]  }
 0x107   :  { %4459 = vmatpush1.bf16.msra.mxu0 %v11106_v10  ;;  %10241 = vmatpush3.bf16.msra.mxu1 %v11110_v32  ;;  %v11175_v10 = vld [vmem:[%s15615_s0 + $0x1b4] ss:$92 sps:$4 sm:$0xff]  }
 0x108   :  { %4460 = vmatprep.subr.bf16.mxu0 %v11115_v35  ;;  %10242 = vmatprep.subr.bf16.mxu1 %v11117_v37  ;;  %v11170_v32 = vld [vmem:[%s15616_s1 + $0x708] ss:$12 sps:$4 sm:$0xff]   ;;  %v9937_v35 = vpop.f32.mrb[2].mxu1  ;;  %v11179_v37 = vld [vmem:[%s15616_s1 + $0x724] ss:$12 sps:$4 sm:$0xff]  }
 0x10a   :  { %4428 = vmatmul.mubr.bf16.gmra.mrb[4].mxu0 %v11924_v45  ;;  %5513 = vmatmul.mubr.bf16.gmra.mrb[116].mxu1 %v11116_v16  ;;  %v11177_v16 = vld [vmem:[%s15616_s1 + $0x720] ss:$12 sps:$4 sm:$0xff]   ;;  %v11185_v45 = vld [vmem:[%s15616_s1 + $0x73c] ss:$12 sps:$4 sm:$0xff]  }
 0x10b   :  { %4461 = vmatpush1.bf16.msra.mxu0 %v11113_v36  ;;  %10243 = vmatpush3.bf16.msra.mxu1 %v11118_v40  ;;  %v11174_v36 = vld [vmem:[%s15616_s1 + $0xdd0] ss:$12 sps:$4 sm:$0xff]   ;;  %v9938_v40 = vpop.f32.mrb[3].mxu1 }
 0x10c   :  { %4462 = vmatprep.subr.bf16.mxu0 %v11121_v41  ;;  %10244 = vmatprep.subr.bf16.mxu1 %v11122_v42  ;;  %v11180_v41 = vld [vmem:[%s15615_s0 + $0x1b0] ss:$92 sps:$4 sm:$0xff]  }
 0x10d   :  { %5520 = vmatprep.mubr.bf16.mxu1 %v11124_v24  ;;  %4437 = vmatprep.mubr.bf16.mxu0 %v11925_v51  ;;  %v114_v42 = vld [vmem:[%s15615_s0 + $0x268] sm:$0x11]  ;;  %v13291_v24 = vadd.f32 %v9938_v40, %v9937_v35  ;;  %v11215_v35 = vld [vmem:[%s15616_s1 + $0x7b0] ss:$12 sps:$4 sm:$0xff]  }
 0x10e   :  { %v11224_v40 = vld [vmem:[%s15616_s1 + $0x1010] ss:$12 sps:$4 sm:$0xff]  }
 0x10f   :  { %4463 = vmatpush1.bf16.msra.mxu0 %v11119_v43  ;;  %10245 = vmatpush3.bf16.msra.mxu1 %v11123_v11  ;;  %v11182_v43 = vld [vmem:[%s15616_s1 + $0xde8] ss:$12 sps:$4 sm:$0xff]   ;;  %v9940_v11 = vpop.f32.mrb[4].mxu1 }
 0x110   :  { %4464 = vmatprep.subr.bf16.mxu0 %v11128_v46  ;;  %10246 = vmatprep.subr.bf16.mxu1 %v11130_v49  ;;  %v11186_v46 = vld [vmem:[%s15616_s1 + $0xec0] ss:$12 sps:$4 sm:$0xff]   ;;  %v9941_v49 = vpop.f32.mrb[5].mxu1 }
 0x111   :  { %v13307_v51 = vadd.f32 %v9941_v49, %v9940_v11  ;;  %v11225_v11 = vld [vmem:[%s15616_s1 + $0xf50] ss:$12 sps:$4 sm:$0xff]  }
 0x112   :  { %4438 = vmatmul.mubr.bf16.gmra.mrb[8].mxu0 %v11926_v59  ;;  %5521 = vmatmul.mubr.bf16.gmra.mrb[120].mxu1 %v11129_v17  ;;  %v9943_v17 = vpop.f32.mrb[6].mxu1  ;;  %v11189_v59 = vld [vmem:[%s15616_s1 + $0x750] ss:$12 sps:$4 sm:$0xff]  }
 0x113   :  { %4465 = vmatpush1.bf16.msra.mxu0 %v11126_v29  ;;  %10247 = vmatpush3.bf16.msra.mxu1 %v11131_v53  ;;  %v13302_v29 = vcombine.high %v114_v42, %v114_v42  ;;  %v11187_v53 = vld [vmem:[%s15616_s1 + $0xe00] ss:$12 sps:$4 sm:$0xff]  }
 0x114   :  { %4466 = vmatprep.subr.bf16.mxu0 %v11134_v54  ;;  %10248 = vmatprep.subr.bf16.mxu1 %v11135_v23  ;;  %v11191_v54 = vld [vmem:[%s15616_s1 + $0x754] ss:$12 sps:$4 sm:$0xff]   ;;  %v11193_v23 = vld [vmem:[%s15616_s1 + $0xed8] ss:$12 sps:$4 sm:$0xff]  }
 0x115   :  { %5528 = vmatprep.mubr.bf16.mxu1 %v13167_v56  ;;  %4447 = vmatprep.mubr.bf16.mxu0 %v12651_v63  ;;  %v11151_v63 = vld [vmem:[%s15615_s0 + $0x44] ss:$92 sps:$4 sm:$0xff]  }
 0x117   :  { %4467 = vmatpush1.bf16.msra.mxu0 %v11132_v57  ;;  %10249 = vmatpush3.bf16.msra.mxu1 %v11136_v60  ;;  %v9944_v57 = vpop.f32.mrb[7].mxu1  ;;  %v11194_v60 = vld [vmem:[%s15616_s1 + $0xe18] ss:$12 sps:$4 sm:$0xff]  }
 0x118   :  { %4468 = vmatprep.subr.bf16.mxu0 %v11140_v61  ;;  %10250 = vmatprep.subr.bf16.mxu1 %v11142_v62  ;;  %v13325_v61 = vadd.f32 %v9944_v57, %v9943_v17  ;;  %v13327_v62 = vcombine.low %v114_v42, %v114_v42  ;;  %v11232_v17 = vld [vmem:[%s15616_s1 + $0x1028] ss:$12 sps:$4 sm:$0xff]  }
 0x119   :  { %v11231_v57 = vld [vmem:[%s15615_s0 + $0x1b8] ss:$92 sps:$4 sm:$0xff]  }
 0x11a   :  { %4448 = vmatmul.mubr.bf16.gmra.mrb[12].mxu0 %v12674_v6  ;;  %5529 = vmatmul.mubr.bf16.gmra.mrb[124].mxu1 %v13189_v1  ;;  %v11149_v6 = vld [vmem:[%s15615_s0 + $0x40] ss:$92 sps:$4 sm:$0xff]  }
 0x11b   :  { %4469 = vmatpush1.bf16.msra.mxu0 %v11138_v27  ;;  %10251 = vmatpush3.bf16.msra.mxu1 %v11143_v2  ;;  %v11197_v27 = vld [vmem:[%s15616_s1 + $0x76c] ss:$12 sps:$4 sm:$0xff]   ;;  %v11198_v2 = vld [vmem:[%s15616_s1 + $0xef0] ss:$12 sps:$4 sm:$0xff]  }
 0x11c   :  { %4470 = vmatprep.subr.bf16.mxu0 %v11146_v33  ;;  %10252 = vmatprep.subr.bf16.mxu1 %v11147_v3  ;;  %v9946_v33 = vpop.f32.mrb[8].mxu1  ;;  %v11202_v3 = vld [vmem:[%s15615_s0 + $0x4c] ss:$92 sps:$4 sm:$0xff]  }
 0x11d   :  { %5568 = vmatprep.mubr.bf16.mxu1 %v11151_v63  ;;  %4488 = vmatprep.mubr.bf16.mxu0 %v11927_v12  ;;  %v9947_v63 = vpop.f32.mrb[9].mxu1  ;;  %v11206_v12 = vld [vmem:[%s15616_s1 + $0xfc8] ss:$12 sps:$4 sm:$0xff]  }
 0x11f   :  { %4471 = vmatpush1.bf16.msra.mxu0 %v11144_v5  ;;  %10253 = vmatpush3.bf16.msra.mxu1 %v11148_v7  ;;  %v11195_v5 = vld [vmem:[%s15616_s1 + $0x768] ss:$12 sps:$4 sm:$0xff]   ;;  %v13341_v7 = vadd.f32 %v9947_v63, %v9946_v33  ;;  %v11237_v33 = vld [vmem:[%s15616_s1 + $0x1040] ss:$12 sps:$4 sm:$0xff]  }
 0x120   :  { %4472 = vmatprep.subr.bf16.mxu0 %v11154_v9  ;;  %10278 = vmatprep.subr.bf16.mxu1 %v11155_v52  ;;  %v9949_v9 = vpop.f32.mrb[10].mxu1  ;;  %v11205_v52 = vld [vmem:[%s15616_s1 + $0x784] ss:$12 sps:$4 sm:$0xff]  }
 0x122   :  { %5569 = vmatmul.mubr.bf16.vlgmr.msra.gmra.mrb[128].mxu1 %v11149_v6  ;;  %v11199_v6 = vld [vmem:[%s15616_s1 + $0xe30] ss:$12 sps:$4 sm:$0xff]  }
 0x123   :  { %4473 = vmatpush1.bf16.msra.mxu0 %v11152_v38  ;;  %10279 = vmatpush3.bf16.msra.mxu1 %v11156_v13  ;;  %v11200_v38 = vld [vmem:[%s15615_s0 + $0x48] ss:$92 sps:$4 sm:$0xff]   ;;  %v9950_v13 = vpop.f32.mrb[11].mxu1 }
 0x124   :  { %4474 = vmatprep.subr.bf16.mxu0 %v11159_v14  ;;  %10280 = vmatprep.subr.bf16.mxu1 %v11160_v15  ;;  %v11203_v14 = vld [vmem:[%s15616_s1 + $0x780] ss:$12 sps:$4 sm:$0xff]   ;;  %v11207_v15 = vld [vmem:[%s15616_s1 + $0xf08] ss:$12 sps:$4 sm:$0xff]   ;;  %v9952_v0 = vpop.f32.mrb[12].mxu1 }
 0x125   :  { %5576 = vmatprep.mubr.bf16.mxu1 %v11162_v58  ;;  %v13362_v58 = vadd.f32 %v9950_v13, %v9949_v9  ;;  %v11932_v9 = vld [vmem:[%s15615_s0 + $0x190] ss:$92 sps:$4 sm:$0xff]  }
 0x127   :  { %4475 = vmatpush1.bf16.msra.mxu0 %v11157_v18  ;;  %10281 = vmatpush3.bf16.msra.mxu1 %v11161_v19  ;;  %v11210_v18 = vld [vmem:[%s15616_s1 + $0x79c] ss:$12 sps:$4 sm:$0xff]   ;;  %v11211_v19 = vld [vmem:[%s15616_s1 + $0xfe0] ss:$12 sps:$4 sm:$0xff]  }
 0x128   :  { %4476 = vmatprep.subr.bf16.mxu0 %v11166_v20  ;;  %10282 = vmatprep.subr.bf16.mxu1 %v11168_v48  ;;  %v11213_v20 = vld [vmem:[%s15615_s0 + $0x104] ss:$92 sps:$4 sm:$0xff]   ;;  %v9953_v48 = vpop.f32.mrb[13].mxu1 }
 0x12a   :  { %5577 = vmatmul.mubr.bf16.gmra.mrb[132].mxu1 %v11167_v25  ;;  %v13379_v25 = vadd.f32 %v9953_v48, %v9952_v0  ;;  %v11240_v48 = vld [vmem:[%s15616_s1 + $0x810] ss:$12 sps:$4 sm:$0xff]  }
 0x12b   :  { %4477 = vmatpush1.bf16.msra.mxu0 %v11164_v21  ;;  %10283 = vmatpush3.bf16.msra.mxu1 %v11169_v26  ;;  %v11928_v21 = vld [vmem:[%s15615_s0 + $0x20] ss:$92 sps:$4 sm:$0xff]   ;;  %v9955_v26 = vpop.f32.mrb[14].mxu1 }
 0x12c   :  { %4478 = vmatprep.subr.bf16.mxu0 %v11172_v30  ;;  %10284 = vmatprep.subr.bf16.mxu1 %v11173_v31  ;;  %v11212_v30 = vld [vmem:[%s15616_s1 + $0xf20] ss:$12 sps:$4 sm:$0xff]  }
 0x12d   :  { %5584 = vmatprep.mubr.bf16.mxu1 %v11175_v10  ;;  %v11217_v31 = vld [vmem:[%s15616_s1 + $0x7b4] ss:$12 sps:$4 sm:$0xff]   ;;  %v11219_v10 = vld [vmem:[%s15616_s1 + $0xff8] ss:$12 sps:$4 sm:$0xff]  }
 0x12f   :  { %4479 = vmatpush1.bf16.msra.mxu0 %v11170_v32  ;;  %10285 = vmatpush3.bf16.msra.mxu1 %v11174_v36  ;;  %v9956_v32 = vpop.f32.mrb[15].mxu1  ;;  %v11218_v36 = vld [vmem:[%s15615_s0 + $0x100] ss:$92 sps:$4 sm:$0xff]  }
 0x130   :  { %4480 = vmatprep.subr.bf16.mxu0 %v11179_v37  ;;  %10286 = vmatprep.subr.bf16.mxu1 %v11181_v39  ;;  %v11929_v37 = vld [vmem:[%s15615_s0 + $0xdc] ss:$92 sps:$4 sm:$0xff]   ;;  %v9974_v42 = vpop.f32.mrb[16].mxu1  ;;  %v11253_v32 = vld [vmem:[%s15615_s0 + $0x54] ss:$92 sps:$4 sm:$0xff]  }
 0x131   :  { %v11223_v39 = vld [vmem:[%s15616_s1 + $0x7cc] ss:$12 sps:$4 sm:$0xff]   ;;  %v9975_v49 = vpop.f32.mrb[17].mxu1 }
 0x132   :  { %5585 = vmatmul.mubr.bf16.gmra.mrb[136].mxu1 %v11180_v41  ;;  %v11226_v41 = vld [vmem:[%s15615_s0 + $0x1bc] ss:$92 sps:$4 sm:$0xff]  }
 0x133   :  { %4481 = vmatpush1.bf16.msra.mxu0 %v11177_v16  ;;  %10287 = vmatpush3.bf16.msra.mxu1 %v11182_v43  ;;  %v11220_v16 = vld [vmem:[%s15616_s1 + $0xf38] ss:$12 sps:$4 sm:$0xff]   ;;  %v11221_v43 = vld [vmem:[%s15616_s1 + $0x7c8] ss:$12 sps:$4 sm:$0xff]  }
 0x134   :  { %4482 = vmatprep.subr.bf16.mxu0 %v11185_v45  ;;  %10288 = vmatprep.subr.bf16.mxu1 %v11186_v46  ;;  %v11930_v45 = vld [vmem:[%s15615_s0 + $0xd8] ss:$92 sps:$4 sm:$0xff]   ;;  %v11230_v46 = vld [vmem:[%s15616_s1 + $0x7e4] ss:$12 sps:$4 sm:$0xff]  }
 0x135   :  { %5592 = vmatprep.mubr.bf16.mxu1 %v13302_v29 }
 0x137   :  { %4483 = vmatpush1.bf16.msra.mxu0 %v11183_v50  ;;  %10289 = vmatpush3.bf16.msra.mxu1 %v11187_v53  ;;  %v11228_v50 = vld [vmem:[%s15616_s1 + $0x7e0] ss:$12 sps:$4 sm:$0xff]   ;;  %v13429_v53 = vadd.f32 %v9975_v49, %v9974_v42  ;;  %v11275_v42 = vld [vmem:[%s15616_s1 + $0x1088] ss:$12 sps:$4 sm:$0xff]  }
 0x138   :  { %4484 = vmatprep.subr.bf16.mxu0 %v11191_v54  ;;  %10290 = vmatprep.subr.bf16.mxu1 %v11193_v23  ;;  %v115_v54 = vld [vmem:[%s15615_s0 + $0x270] sm:$0x11]  ;;  %v11260_v49 = vld [vmem:[%s15615_s0 + $0x10c] ss:$92 sps:$4 sm:$0xff]  }
 0x139   :  { %v11931_v23 = vld [vmem:[%s15615_s0 + $0x194] ss:$92 sps:$4 sm:$0xff]  }
 0x13a   :  { %5593 = vmatmul.mubr.bf16.gmra.mrb[140].mxu1 %v13327_v62 }
 0x13b   :  { %4485 = vmatpush1.bf16.msra.mxu0 %v11189_v59  ;;  %10291 = vmatpush3.bf16.msra.mxu1 %v11194_v60  ;;  %v9977_v59 = vpop.f32.mrb[18].mxu1  ;;  %v11233_v60 = vld [vmem:[%s15616_s1 + $0xf68] ss:$12 sps:$4 sm:$0xff]  }
 0x13c   :  { %4486 = vmatprep.subr.bf16.mxu0 %v11197_v27  ;;  %10292 = vmatprep.subr.bf16.mxu1 %v11198_v2  ;;  %v11236_v27 = vld [vmem:[%s15616_s1 + $0x7fc] ss:$12 sps:$4 sm:$0xff]   ;;  %v9978_v2 = vpop.f32.mrb[19].mxu1 }
 0x13d   :  { %5632 = vmatprep.mubr.bf16.mxu1 %v11202_v3  ;;  %v13449_v3 = vcombine.high %v115_v54, %v115_v54  ;;  %v13451_v63 = vadd.f32 %v9978_v2, %v9977_v59 }
 0x13f   :  { %4487 = vmatpush1.bf16.msra.mxu0 %v11195_v5  ;;  %10293 = vmatpush3.bf16.msra.mxu1 %v11199_v6  ;;  %v9980_v5 = vpop.f32.mrb[20].mxu1 }
 0x140   :  { %4527 = vmatprep.subr.bf16.mxu0 %v11205_v52  ;;  %10318 = vmatprep.subr.bf16.mxu1 %v11206_v12  ;;  %v9981_v6 = vpop.f32.mrb[21].mxu1  ;;  %v11234_v52 = vld [vmem:[%s15616_s1 + $0x7f8] ss:$12 sps:$4 sm:$0xff]  }
 0x141   :  { %v13462_v12 = vadd.f32 %v9981_v6, %v9980_v5  ;;  %v9983_v13 = vpop.f32.mrb[22].mxu1  ;;  %v11269_v6 = vld [vmem:[%s15615_s0 + $0x1c4] ss:$92 sps:$4 sm:$0xff]  }
 0x142   :  { %4489 = vmatmul.mubr.bf16.vlgmr.msra.gmra.mrb[0].mxu0 %v11928_v21  ;;  %5633 = vmatmul.mubr.bf16.vlgmr.msra.gmra.mrb[144].mxu1 %v11200_v38  ;;  %v11238_v38 = vld [vmem:[%s15616_s1 + $0xf80] ss:$12 sps:$4 sm:$0xff]   ;;  %v13477_v21 = vcombine.low %v115_v54, %v115_v54  ;;  %v11257_v54 = vld [vmem:[%s15616_s1 + $0x858] ss:$12 sps:$4 sm:$0xff]  }
 0x143   :  { %4528 = vmatpush1.bf16.msra.mxu0 %v11203_v14  ;;  %10319 = vmatpush3.bf16.msra.mxu1 %v11207_v15  ;;  %v11242_v14 = vld [vmem:[%s15616_s1 + $0x814] ss:$12 sps:$4 sm:$0xff]   ;;  %v9984_v15 = vpop.f32.mrb[23].mxu1 }
 0x144   :  { %4529 = vmatprep.subr.bf16.mxu0 %v11210_v18  ;;  %10320 = vmatprep.subr.bf16.mxu1 %v11211_v19  ;;  %v11244_v18 = vld [vmem:[%s15616_s1 + $0x1058] ss:$12 sps:$4 sm:$0xff]   ;;  %v13471_v19 = vadd.f32 %v9984_v15, %v9983_v13  ;;  %v9986_v0 = vpop.f32.mrb[24].mxu1  ;;  %v11289_v13 = vld [vmem:[%s15616_s1 + $0x10d0] ss:$12 sps:$4 sm:$0xff]  }
 0x145   :  { %5640 = vmatprep.mubr.bf16.mxu1 %v11213_v20  ;;  %4498 = vmatprep.mubr.bf16.mxu0 %v11929_v37  ;;  %v9987_v20 = vpop.f32.mrb[25].mxu1  ;;  %v11246_v37 = vld [vmem:[%s15616_s1 + $0x828] ss:$12 sps:$4 sm:$0xff]  }
 0x146   :  { %v13482_v26 = vadd.f32 %v9987_v20, %v9986_v0  ;;  %v11273_v20 = vld [vmem:[%s15616_s1 + $0x8a4] ss:$12 sps:$4 sm:$0xff]  }
 0x147   :  { %4530 = vmatpush1.bf16.msra.mxu0 %v11208_v22  ;;  %10321 = vmatpush3.bf16.msra.mxu1 %v11212_v30  ;;  %v11245_v22 = vld [vmem:[%s15616_s1 + $0xf98] ss:$12 sps:$4 sm:$0xff]   ;;  %v9989_v30 = vpop.f32.mrb[26].mxu1 }
 0x148   :  { %4531 = vmatprep.subr.bf16.mxu0 %v11217_v31  ;;  %10322 = vmatprep.subr.bf16.mxu1 %v11219_v10  ;;  %v9990_v31 = vpop.f32.mrb[27].mxu1  ;;  %v11249_v10 = vld [vmem:[%s15616_s1 + $0x1070] ss:$12 sps:$4 sm:$0xff]  }
 0x14a   :  { %4499 = vmatmul.mubr.bf16.gmra.mrb[4].mxu0 %v11930_v45  ;;  %5641 = vmatmul.mubr.bf16.gmra.mrb[148].mxu1 %v11218_v36  ;;  %v9992_v36 = vpop.f32.mrb[28].mxu1  ;;  %v11933_v45 = vld [vmem:[%s15615_s0 + $0x2c] ss:$92 sps:$4 sm:$0xff]  }
 0x14b   :  { %4532 = vmatpush1.bf16.msra.mxu0 %v11215_v35  ;;  %10323 = vmatpush3.bf16.msra.mxu1 %v11220_v16  ;;  %v13493_v35 = vadd.f32 %v9990_v31, %v9989_v30  ;;  %v9993_v16 = vpop.f32.mrb[29].mxu1  ;;  %v116_v30 = vld [vmem:[%s15615_s0 + $0x278] sm:$0x11] }
 0x14c   :  { %4533 = vmatprep.subr.bf16.mxu0 %v11223_v39  ;;  %10324 = vmatprep.subr.bf16.mxu1 %v11224_v40  ;;  %v11250_v39 = vld [vmem:[%s15616_s1 + $0xfb0] ss:$12 sps:$4 sm:$0xff]  }
 0x14d   :  { %5648 = vmatprep.mubr.bf16.mxu1 %v11226_v41  ;;  %4508 = vmatprep.mubr.bf16.mxu0 %v11931_v23  ;;  %v11256_v40 = vld [vmem:[%s15616_s1 + $0x844] ss:$12 sps:$4 sm:$0xff]   ;;  %v13506_v41 = vadd.f32 %v9993_v16, %v9992_v36  ;;  %v11271_v36 = vld [vmem:[%s15616_s1 + $0x8a0] ss:$12 sps:$4 sm:$0xff]  }
 0x14f   :  { %4534 = vmatpush1.bf16.msra.mxu0 %v11221_v43  ;;  %10325 = vmatpush3.bf16.msra.mxu1 %v11225_v11  ;;  %v11254_v43 = vld [vmem:[%s15616_s1 + $0x840] ss:$12 sps:$4 sm:$0xff]   ;;  %v9995_v11 = vpop.f32.mrb[30].mxu1 }
 0x150   :  { %4535 = vmatprep.subr.bf16.mxu0 %v11230_v46  ;;  %10326 = vmatprep.subr.bf16.mxu1 %v11232_v17  ;;  %v11259_v46 = vld [vmem:[%s15616_s1 + $0x85c] ss:$12 sps:$4 sm:$0xff]   ;;  %v11279_v17 = vld [vmem:[%s15616_s1 + $0x10a0] ss:$12 sps:$4 sm:$0xff]  }
 0x152   :  { %4509 = vmatmul.mubr.bf16.gmra.mrb[8].mxu0 %v11932_v9  ;;  %5649 = vmatmul.mubr.bf16.gmra.mrb[152].mxu1 %v11231_v57  ;;  %v11264_v57 = vld [vmem:[%s15616_s1 + $0x874] ss:$12 sps:$4 sm:$0xff]   ;;  %v11268_v9 = vld [vmem:[%s15616_s1 + $0x88c] ss:$12 sps:$4 sm:$0xff]  }
 0x153   :  { %4536 = vmatpush1.bf16.msra.mxu0 %v11228_v50  ;;  %10327 = vmatpush3.bf16.msra.mxu1 %v11233_v60  ;;  %v9996_v50 = vpop.f32.mrb[31].mxu1  ;;  %v11262_v60 = vld [vmem:[%s15616_s1 + $0x870] ss:$12 sps:$4 sm:$0xff]  }
 0x154   :  { %4537 = vmatprep.subr.bf16.mxu0 %v11236_v27  ;;  %10328 = vmatprep.subr.bf16.mxu1 %v11237_v33  ;;  %v10014_v23 = vpop.f32.mrb[32].mxu1  ;;  %v11265_v27 = vld [vmem:[%s15615_s0 + $0x108] ss:$92 sps:$4 sm:$0xff]  }
 0x155   :  { %5656 = vmatprep.mubr.bf16.mxu1 %v13449_v3  ;;  %4518 = vmatprep.mubr.bf16.mxu0 %v12778_v47  ;;  %v11248_v47 = vld [vmem:[%s15616_s1 + $0x82c] ss:$12 sps:$4 sm:$0xff]   ;;  %v10015_v59 = vpop.f32.mrb[33].mxu1 }
 0x156   :  { %v13541_v2 = vadd.f32 %v10015_v59, %v10014_v23  ;;  %v11285_v33 = vld [vmem:[%s15616_s1 + $0x10b8] ss:$12 sps:$4 sm:$0xff]   ;;  %v10017_v5 = vpop.f32.mrb[34].mxu1  ;;  %v22_v59 = vld [vmem:[%s15619_s4] ss:$8 sm:$0x7] }
 0x157   :  { %4538 = vmatpush1.bf16.msra.mxu0 %v11234_v52  ;;  %10329 = vmatpush3.bf16.msra.mxu1 %v11238_v38  ;;  %v10018_v52 = vpop.f32.mrb[35].mxu1 }
 0x158   :  { %4539 = vmatprep.subr.bf16.mxu0 %v11242_v14  ;;  %10330 = vmatprep.subr.bf16.mxu1 %v11244_v18  ;;  %v13552_v38 = vadd.f32 %v10018_v52, %v10017_v5  ;;  %v839_v14 = vlaneseq  ;;  %v10020_v15 = vpop.f32.mrb[36].mxu1  ;;  %v11266_v18 = vld [vmem:[%s15616_s1 + $0x888] ss:$12 sps:$4 sm:$0xff]  }
 0x159   :  { %v10021_v0 = vpop.f32.mrb[37].mxu1 }
 0x15a   :  { %4519 = vmatmul.mubr.bf16.gmra.mrb[12].mxu0 %v12799_v55  ;;  %5657 = vmatmul.mubr.bf16.gmra.mrb[156].mxu1 %v13477_v21  ;;  %v11251_v55 = vld [vmem:[%s15615_s0 + $0x50] ss:$92 sps:$4 sm:$0xff]   ;;  %v13568_v31 = vshrl.u32 %v839_v14, 7 }
 0x15b   :  { %4540 = vmatpush1.bf16.msra.mxu0 %v11240_v48  ;;  %10331 = vmatpush3.bf16.msra.mxu1 %v11245_v22  ;;  %v13563_v48 = vadd.f32 %v10021_v0, %v10020_v15  ;;  %v10023_v22 = vpop.f32.mrb[38].mxu1 }
 0x15c   :  { %4541 = vmatprep.subr.bf16.mxu0 %v11248_v47  ;;  %10332 = vmatprep.subr.bf16.mxu1 %v11249_v10  ;;  %v10024_v47 = vpop.f32.mrb[39].mxu1 }
 0x15d   :  { %5696 = vmatprep.mubr.bf16.mxu1 %v11253_v32  ;;  %4559 = vmatprep.mubr.bf16.mxu0 %v11933_v45  ;;  %v13570_v10 = vadd.f32 %v10024_v47, %v10023_v22  ;;  %v10026_v32 = vpop.f32.mrb[40].mxu1 }
 0x15e   :  { %v10027_v16 = vpop.f32.mrb[41].mxu1 }
 0x15f   :  { %4542 = vmatpush1.bf16.msra.mxu0 %v11246_v37  ;;  %10333 = vmatpush3.bf16.msra.mxu1 %v11250_v39  ;;  %v11274_v37 = vld [vmem:[%s15615_s0 + $0x1c0] ss:$92 sps:$4 sm:$0xff]  }
 0x160   :  { %4543 = vmatprep.subr.bf16.mxu0 %v11256_v40  ;;  %10376 = vmatprep.subr.bf16.mxu1 %v11275_v42  ;;  %v11278_v39 = vld [vmem:[%s15616_s1 + $0x8bc] ss:$12 sps:$4 sm:$0xff]   ;;  %v13581_v40 = vcombine.high %v116_v30, %v116_v30 }
 0x162   :  { %5697 = vmatmul.mubr.bf16.vlgmr.msra.gmra.mrb[160].mxu1 %v11251_v55  ;;  %v10028_v55 = vadd.f32 %v10027_v16, %v10026_v32 }
 0x163   :  { %4544 = vmatpush1.bf16.msra.mxu0 %v11254_v43  ;;  %5704 = vmatprep.mubr.bf16.mxu1 %v11260_v49  ;;  %v13587_v49 = vsub.s32 2, %v13568_v31 }
 0x164   :  { %4545 = vmatprep.subr.bf16.mxu0 %v11259_v46  ;;  %10377 = vmatpush3.bf16.msra.mxu1 %v11275_v42  ;;  %v10029_v42 = vpop.f32.mrb[42].mxu1  ;;  %v11276_v46 = vld [vmem:[%s15616_s1 + $0x8b8] ss:$12 sps:$4 sm:$0xff]  }
 0x165   :  { %10378 = vmatprep.subr.bf16.mxu1 %v11279_v17  ;;  %v10030_v43 = vpop.f32.mrb[43].mxu1  ;;  %v850_v5 = vrot.slane %v22_v59, %v13587_v49 }
 0x166   :  { %v10031_v45 = vadd.f32 %v10030_v43, %v10029_v42  ;;  %v10032_v11 = vpop.f32.mrb[44].mxu1  ;;  %v11291_v43 = vld [vmem:[%s15616_s1 + $0x900] ss:$12 sps:$4 sm:$0xff]  }
 0x167   :  { %4546 = vmatpush1.bf16.msra.mxu0 %v11257_v54  ;;  %v10033_v50 = vpop.f32.mrb[45].mxu1  ;;  %v5078_v14 = vadd.f32 %v13362_v58, %v850_v5  ;;  %v5083_v15 = vadd.f32 %v13379_v25, %v850_v5  ;;  %v5067_v22 = vadd.f32 %v13307_v51, %v850_v5  ;;  %v11293_v51 = vld [vmem:[%s15616_s1 + $0x904] ss:$12 sps:$4 sm:$0xff]  }
 0x168   :  { %4547 = vmatprep.subr.bf16.mxu0 %v11264_v57  ;;  %10379 = vmatpush3.bf16.msra.mxu1 %v11279_v17  ;;  %v11283_v17 = vld [vmem:[%s15616_s1 + $0x8d4] ss:$12 sps:$4 sm:$0xff]   ;;  %v10034_v54 = vadd.f32 %v10033_v50, %v10032_v11  ;;  %v10035_v23 = vpop.f32.mrb[46].mxu1 }
 0x169   :  { %10380 = vmatprep.subr.bf16.mxu1 %v11285_v33  ;;  %v10036_v57 = vpop.f32.mrb[47].mxu1  ;;  %v5142_v25 = vadd.f32 %v13493_v35, %v5078_v14  ;;  %v11301_v14 = vld [vmem:[%s15616_s1 + $0x934] ss:$12 sps:$4 sm:$0xff]  }
 0x16a   :  { %5705 = vmatmul.mubr.bf16.gmra.mrb[164].mxu1 %v11265_v27  ;;  %v13599_v27 = vcombine.low %v116_v30, %v116_v30  ;;  %v5070_v30 = vadd.f32 %v13325_v61, %v850_v5 }
 0x16b   :  { %4548 = vmatpush1.bf16.msra.mxu0 %v11262_v60  ;;  %5712 = vmatprep.mubr.bf16.mxu1 %v11269_v6  ;;  %v11281_v60 = vld [vmem:[%s15616_s1 + $0x8d0] ss:$12 sps:$4 sm:$0xff]   ;;  %v11290_v6 = vld [vmem:[%s15615_s0 + $0x58] ss:$92 sps:$4 sm:$0xff]  }
 0x16c   :  { %4549 = vmatprep.subr.bf16.mxu0 %v11268_v9  ;;  %10381 = vmatpush3.bf16.msra.mxu1 %v11285_v33  ;;  %v11288_v33 = vld [vmem:[%s15616_s1 + $0x8ec] ss:$12 sps:$4 sm:$0xff]   ;;  %v10054_v9 = vpop.f32.mrb[48].mxu1 }
 0x16d   :  { %10382 = vmatprep.subr.bf16.mxu1 %v11289_v13  ;;  %v10055_v52 = vpop.f32.mrb[49].mxu1 }
 0x16e   :  { %v10057_v0 = vpop.f32.mrb[50].mxu1  ;;  %v10056_v47 = vadd.f32 %v10055_v52, %v10054_v9  ;;  %v11295_v9 = vld [vmem:[%s15616_s1 + $0x918] ss:$12 sps:$4 sm:$0xff]  }
 0x16f   :  { %4550 = vmatpush1.bf16.msra.mxu0 %v11266_v18  ;;  %v5059_v18 = vadd.f32 %v13259_v4, %v850_v5  ;;  %v10058_v32 = vpop.f32.mrb[51].mxu1 }
 0x170   :  { %4551 = vmatprep.subr.bf16.mxu0 %v11273_v20  ;;  %10383 = vmatpush3.bf16.msra.mxu1 %v11289_v13  ;;  %v5075_v13 = vadd.f32 %v13341_v7, %v850_v5  ;;  %v5062_v20 = vadd.f32 %v13291_v24, %v850_v5  ;;  %v11286_v7 = vld [vmem:[%s15616_s1 + $0x8e8] ss:$12 sps:$4 sm:$0xff]   ;;  %v10060_v24 = vpop.f32.mrb[52].mxu1 }
 0x171   :  { %v5123_v58 = vadd.f32 %v13429_v53, %v5059_v18  ;;  %v10061_v16 = vpop.f32.mrb[53].mxu1  ;;  %v5147_v53 = vadd.f32 %v13506_v41, %v5083_v15  ;;  %v11294_v41 = vld [vmem:[%s15615_s0 + $0x110] ss:$92 sps:$4 sm:$0xff]   ;;  %v11934_v5 = vld [vmem:[%s15615_s0 + $0x28] ss:$92 sps:$4 sm:$0xff]  }
 0x172   :  { %5713 = vmatmul.mubr.bf16.gmra.mrb[168].mxu1 %v11274_v37  ;;  %v5139_v4 = vadd.f32 %v13482_v26, %v5075_v13  ;;  %v5126_v61 = vadd.f32 %v13451_v63, %v5062_v20  ;;  %v5134_v37 = vadd.f32 %v13471_v19, %v5070_v30  ;;  %v10063_v42 = vpop.f32.mrb[54].mxu1  ;;  %v10062_v50 = vadd.f32 %v10061_v16, %v10060_v24  ;;  %v11935_v18 = vld [vmem:[%s15615_s0 + $0xe4] ss:$92 sps:$4 sm:$0xff]   ;;  %v11299_v30 = vld [vmem:[%s15616_s1 + $0x930] ss:$12 sps:$4 sm:$0xff]  }
 0x173   :  { %4552 = vmatpush1.bf16.msra.mxu0 %v11271_v36  ;;  %5720 = vmatprep.mubr.bf16.mxu1 %v13581_v40  ;;  %v5131_v36 = vadd.f32 %v13462_v12, %v5067_v22  ;;  %v5187_v26 = vadd.f32 %v13541_v2, %v5123_v58  ;;  %v10064_v19 = vpop.f32.mrb[55].mxu1  ;;  %v11297_v2 = vld [vmem:[%s15616_s1 + $0x91c] ss:$12 sps:$4 sm:$0xff]  }
 0x174   :  { %4553 = vmatprep.subr.bf16.mxu0 %v11278_v39  ;;  %v5203_v35 = vadd.f32 %v10028_v55, %v5139_v4  ;;  %v5206_v39 = vadd.f32 %v10031_v45, %v5142_v25  ;;  %v5190_v11 = vadd.f32 %v13552_v38, %v5126_v61  ;;  %v5198_v12 = vadd.f32 %v13570_v10, %v5134_v37  ;;  %v10066_v38 = vpop.f32.mrb[56].mxu1  ;;  %v11305_v4 = vld [vmem:[%s15616_s1 + $0x94c] ss:$12 sps:$4 sm:$0xff]   ;;  %v11936_v61 = vld [vmem:[%s15615_s0 + $0xe0] ss:$92 sps:$4 sm:$0xff]  }
 0x175   :  { %v5195_v63 = vadd.f32 %v13563_v48, %v5131_v36  ;;  %v5211_v55 = vadd.f32 %v10034_v54, %v5147_v53  ;;  %v5251_v45 = vadd.f32 %v10056_v47, %v5187_v26  ;;  %v11298_v48 = vld [vmem:[%s15615_s0 + $0x1c8] ss:$92 sps:$4 sm:$0xff]   ;;  %v10067_v23 = vpop.f32.mrb[57].mxu1 }
 0x176   :  { %v11303_v37 = vld [vmem:[%s15616_s1 + $0x948] ss:$12 sps:$4 sm:$0xff]  }
 0x177   :  { %4554 = vmatpush1.bf16.msra.mxu0 %v11276_v46  ;;  %v10059_v46 = vadd.f32 %v10058_v32, %v10057_v0  ;;  %v5259_v57 = vadd.f32 %v10062_v50, %v5195_v63  ;;  %v11302_v32 = vld [vmem:[%s15615_s0 + $0x280] ss:$0 sps:$4 sm:$0x11]  }
 0x178   :  { %4555 = vmatprep.subr.bf16.mxu0 %v11283_v17  ;;  %v10065_v17 = vadd.f32 %v10064_v19, %v10063_v42 }
 0x179   :  { %v5254_v10 = vadd.f32 %v10059_v46, %v5190_v11  ;;  %v11306_v46 = vld [vmem:[%s15616_s1 + $0x960] ss:$12 sps:$4 sm:$0xff]  }
 0x17a   :  { %5721 = vmatmul.mubr.bf16.gmra.mrb[172].mxu1 %v13599_v27  ;;  %v5262_v59 = vadd.f32 %v10065_v17, %v5198_v12 }
 0x17b   :  { %4556 = vmatpush1.bf16.msra.mxu0 %v11281_v60  ;;  %10384 = vmatprep.mubr.msk.bf16.mxu1 %vm4159_vm0, %v11290_v6  ;;  %v10068_v60 = vadd.f32 %v10067_v23, %v10066_v38  ;;  %v11309_v23 = vld [vmem:[%s15616_s1 + $0x978] ss:$12 sps:$4 sm:$0xff]  }
 0x17c   :  { %4557 = vmatprep.subr.bf16.mxu0 %v11288_v33  ;;  %v10069_v33 = vpop.f32.mrb[58].mxu1 }
 0x17d   :  { %v10070_v54 = vpop.f32.mrb[59].mxu1  ;;  %v5267_v6 = vadd.f32 %v10068_v60, %v5203_v35  ;;  %v11308_v35 = vld [vmem:[%s15616_s1 + $0x964] ss:$12 sps:$4 sm:$0xff]  }
 0x17e   :  { %v10071_v52 = vadd.f32 %v10070_v54, %v10069_v33  ;;  %v10072_v13 = vpop.f32.mrb[60].mxu1 }
 0x17f   :  { %4558 = vmatpush1.bf16.msra.mxu0 %v11286_v7  ;;  %v10073_v15 = vpop.f32.mrb[61].mxu1 }
 0x180   :  { %4598 = vmatprep.subr.bf16.mxu0 %v11293_v51  ;;  %v5270_v0 = vadd.f32 %v10071_v52, %v5206_v39  ;;  %v10074_v20 = vadd.f32 %v10073_v15, %v10072_v13  ;;  %v10075_v22 = vpop.f32.mrb[62].mxu1  ;;  %v11937_v39 = vld [vmem:[%s15615_s0 + $0x19c] ss:$92 sps:$4 sm:$0xff]  }
 0x181   :  { %v10076_v47 = vpop.f32.mrb[63].mxu1 }
 0x182   :  { %4560 = vmatmul.mubr.bf16.vlgmr.msra.gmra.mrb[0].mxu0 %v11934_v5  ;;  %10385 = vmatmul.mubr.msk.bf16.vlgmr.msra.gmra.mrb[176].mxu1 %vm4159_vm0, %v11294_v41  ;;  %v5275_v7 = vadd.f32 %v10074_v20, %v5211_v55  ;;  %v10094_v58 = vpop.f32.mrb[64].mxu1  ;;  %v11311_v55 = vld [vmem:[%s15616_s1 + $0x97c] ss:$12 sps:$4 sm:$0xff]   ;;  %v11320_v47 = vld [vmem:[%s15616_s1 + $0x9c4] ss:$12 sps:$4 sm:$0xff]  }
 0x183   :  { %4599 = vmatpush1.bf16.msra.mxu0 %v11291_v43  ;;  %10388 = vmatprep.mubr.msk.bf16.mxu1 %vm4159_vm0, %v11298_v48  ;;  %v10095_v25 = vpop.f32.mrb[65].mxu1  ;;  %v11938_v48 = vld [vmem:[%s15615_s0 + $0x198] ss:$92 sps:$4 sm:$0xff]  }
 0x184   :  { %4600 = vmatprep.subr.bf16.mxu0 %v11297_v2  ;;  %4569 = vmatprep.mubr.bf16.mxu0 %v11935_v18  ;;  %v10096_v24 = vadd.f32 %v10095_v25, %v10094_v58  ;;  %v10097_v51 = vpop.f32.mrb[66].mxu1  ;;  %v11318_v25 = vld [vmem:[%s15616_s1 + $0x9c0] ss:$12 sps:$4 sm:$0xff]  }
 0x185   :  { %v10098_v36 = vpop.f32.mrb[67].mxu1 }
 0x186   :  { %v5315_v16 = vadd.f32 %v10096_v24, %v5251_v45  ;;  %v10099_v53 = vadd.f32 %v10098_v36, %v10097_v51  ;;  %v10100_v26 = vpop.f32.mrb[68].mxu1  ;;  %v11323_v24 = vld [vmem:[%s15616_s1 + $0x9dc] ss:$12 sps:$4 sm:$0xff]  }
 0x187   :  { %4601 = vmatpush1.bf16.msra.mxu0 %v11295_v9  ;;  %v10101_v42 = vpop.f32.mrb[69].mxu1 }
 0x188   :  { %4602 = vmatprep.subr.bf16.mxu0 %v11301_v14  ;;  %v5318_v43 = vadd.f32 %v10099_v53, %v5254_v10  ;;  %v10102_v11 = vadd.f32 %v10101_v42, %v10100_v26  ;;  %v10103_v63 = vpop.f32.mrb[70].mxu1  ;;  %v11312_v14 = vld [vmem:[%s15616_s1 + $0x990] ss:$12 sps:$4 sm:$0xff]   ;;  %v11321_v26 = vld [vmem:[%s15616_s1 + $0x9d8] ss:$12 sps:$4 sm:$0xff]  }
 0x189   :  { %v10104_v12 = vpop.f32.mrb[71].mxu1 }
 0x18a   :  { %4570 = vmatmul.mubr.bf16.gmra.mrb[4].mxu0 %v11936_v61  ;;  %10389 = vmatmul.mubr.msk.bf16.gmra.mrb[180].mxu1 %vm4159_vm0, %v11302_v32  ;;  %v5323_v19 = vadd.f32 %v10102_v11, %v5259_v57  ;;  %v10105_v41 = vadd.f32 %v10104_v12, %v10103_v63  ;;  %v10106_v2 = vpop.f32.mrb[72].mxu1  ;;  %v11939_v32 = vld [vmem:[%s15615_s0 + $0x34] ss:$92 sps:$4 sm:$0xff]   ;;  %v11329_v11 = vld [vmem:[%s15616_s1 + $0xa0c] ss:$12 sps:$4 sm:$0xff]  }
 0x18b   :  { %4603 = vmatpush1.bf16.msra.mxu0 %v11299_v30  ;;  %4579 = vmatprep.mubr.bf16.mxu0 %v11937_v39  ;;  %v10107_v45 = vpop.f32.mrb[73].mxu1  ;;  %v11315_v30 = vld [vmem:[%s15616_s1 + $0x9a8] ss:$12 sps:$4 sm:$0xff]  }
 0x18c   :  { %4604 = vmatprep.subr.bf16.mxu0 %v11305_v4  ;;  %v5326_v50 = vadd.f32 %v10105_v41, %v5262_v59  ;;  %v10108_v17 = vadd.f32 %v10107_v45, %v10106_v2  ;;  %v10109_v38 = vpop.f32.mrb[74].mxu1  ;;  %v11314_v59 = vld [vmem:[%s15616_s1 + $0x994] ss:$12 sps:$4 sm:$0xff]   ;;  %v11332_v45 = vld [vmem:[%s15616_s1 + $0xa24] ss:$12 sps:$4 sm:$0xff]  }
 0x18d   :  { %v10110_v10 = vpop.f32.mrb[75].mxu1 }
 0x18e   :  { %v5331_v57 = vadd.f32 %v10108_v17, %v5267_v6  ;;  %v10111_v60 = vadd.f32 %v10110_v10, %v10109_v38  ;;  %v10112_v33 = vpop.f32.mrb[76].mxu1  ;;  %v11317_v6 = vld [vmem:[%s15616_s1 + $0x9ac] ss:$12 sps:$4 sm:$0xff]  }
 0x18f   :  { %4605 = vmatpush1.bf16.msra.mxu0 %v11303_v37  ;;  %v10113_v5 = vpop.f32.mrb[77].mxu1  ;;  %v11330_v38 = vld [vmem:[%s15616_s1 + $0xa20] ss:$12 sps:$4 sm:$0xff]  }
 0x190   :  { %4606 = vmatprep.subr.bf16.mxu0 %v11308_v35  ;;  %v5334_v54 = vadd.f32 %v10111_v60, %v5270_v0  ;;  %v10114_v9 = vadd.f32 %v10113_v5, %v10112_v33  ;;  %v10115_v52 = vpop.f32.mrb[78].mxu1  ;;  %v11326_v35 = vld [vmem:[%s15616_s1 + $0x9f4] ss:$12 sps:$4 sm:$0xff]  }
 0x191   :  { %v10116_v13 = vpop.f32.mrb[79].mxu1  ;;  %v11338_v5 = vld [vmem:[%s15616_s1 + $0xa54] ss:$12 sps:$4 sm:$0xff]   ;;  %v11341_v52 = vld [vmem:[%s15616_s1 + $0xa6c] ss:$12 sps:$4 sm:$0xff]  }
 0x192   :  { %4580 = vmatmul.mubr.bf16.gmra.mrb[8].mxu0 %v11938_v48  ;;  %v5339_v15 = vadd.f32 %v10114_v9, %v5275_v7  ;;  %v11335_v48 = vld [vmem:[%s15616_s1 + $0xa3c] ss:$12 sps:$4 sm:$0xff]  }
 0x193   :  { %4607 = vmatpush1.bf16.msra.mxu0 %v11306_v46  ;;  %4589 = vmatprep.mubr.bf16.mxu0 %v12905_v28  ;;  %v11336_v9 = vld [vmem:[%s15616_s1 + $0xa50] ss:$12 sps:$4 sm:$0xff]  }
 0x194   :  { %4608 = vmatprep.subr.bf16.mxu0 %v11311_v55  ;;  %v11327_v55 = vld [vmem:[%s15616_s1 + $0xa08] ss:$12 sps:$4 sm:$0xff]  }
 0x195   :  { %v10134_v28 = vpop.f32.mrb[80].mxu1 }
 0x196   :  { %v10135_v18 = vpop.f32.mrb[81].mxu1 }
 0x197   :  { %4609 = vmatpush1.bf16.msra.mxu0 %v11309_v23  ;;  %v10136_v20 = vadd.f32 %v10135_v18, %v10134_v28  ;;  %v10137_v22 = vpop.f32.mrb[82].mxu1 }
 0x198   :  { %4610 = vmatprep.subr.bf16.mxu0 %v11314_v59  ;;  %v10138_v0 = vpop.f32.mrb[83].mxu1  ;;  %v11333_v59 = vld [vmem:[%s15616_s1 + $0xa38] ss:$12 sps:$4 sm:$0xff]  }
 0x199   :  { %v5379_v7 = vadd.f32 %v10136_v20, %v5315_v16  ;;  %v10139_v58 = vadd.f32 %v10138_v0, %v10137_v22  ;;  %v11339_v20 = vld [vmem:[%s15616_s1 + $0xa68] ss:$12 sps:$4 sm:$0xff]   ;;  %v11344_v22 = vld [vmem:[%s15616_s1 + $0xa84] ss:$12 sps:$4 sm:$0xff]  }
 0x19a   :  { %4590 = vmatmul.mubr.bf16.gmra.mrb[12].mxu0 %v12925_v34 }
 0x19b   :  { %4611 = vmatpush1.bf16.msra.mxu0 %v11312_v14  ;;  %4630 = vmatprep.mubr.bf16.mxu0 %v11939_v32  ;;  %v5382_v4 = vadd.f32 %v10139_v58, %v5318_v43  ;;  %v11324_v43 = vld [vmem:[%s15616_s1 + $0x9f0] ss:$12 sps:$4 sm:$0xff]  }
 0x19c   :  { %4612 = vmatprep.subr.bf16.mxu0 %v11317_v6  ;;  %v11347_v32 = vld [vmem:[%s15616_s1 + $0xa9c] ss:$12 sps:$4 sm:$0xff]  }
 0x19d   :  { %v10140_v34 = vpop.f32.mrb[84].mxu1 }
 0x19e   :  { %v10141_v51 = vpop.f32.mrb[85].mxu1 }
 0x19f   :  { %4613 = vmatpush1.bf16.msra.mxu0 %v11315_v30  ;;  %v10142_v61 = vadd.f32 %v10141_v51, %v10140_v34  ;;  %v10143_v36 = vpop.f32.mrb[86].mxu1 }
 0x1a0   :  { %4614 = vmatprep.subr.bf16.mxu0 %v11320_v47  ;;  %v10144_v37 = vpop.f32.mrb[87].mxu1  ;;  %v11342_v47 = vld [vmem:[%s15616_s1 + $0xa80] ss:$12 sps:$4 sm:$0xff]  }
 0x1a1   :  { %v13720_v53 = vadd.f32 %v10142_v61, %v5323_v19  ;;  %v10145_v16 = vadd.f32 %v10144_v37, %v10143_v36  ;;  %v11345_v61 = vld [vmem:[%s15616_s1 + $0xa98] ss:$12 sps:$4 sm:$0xff]   ;;  %v11350_v36 = vld [vmem:[%s15616_s1 + $0xab4] ss:$12 sps:$4 sm:$0xff]   ;;  %v11941_v37 = vld [vmem:[%s15615_s0 + $0xec] ss:$92 sps:$4 sm:$0xff]  }
 0x1a3   :  { %4615 = vmatpush1.bf16.msra.mxu0 %v11318_v25  ;;  %v13728_v39 = vadd.f32 %v10145_v16, %v5326_v50 }
 0x1a4   :  { %4616 = vmatprep.subr.bf16.mxu0 %v11323_v24 }
 0x1a5   :  { %v10146_v42 = vpop.f32.mrb[88].mxu1 }
 0x1a6   :  { %v10147_v63 = vpop.f32.mrb[89].mxu1 }
 0x1a7   :  { %4617 = vmatpush1.bf16.msra.mxu0 %v11321_v26  ;;  %v10148_v12 = vadd.f32 %v10147_v63, %v10146_v42  ;;  %v10149_v46 = vpop.f32.mrb[90].mxu1  ;;  %v11348_v26 = vld [vmem:[%s15616_s1 + $0xab0] ss:$12 sps:$4 sm:$0xff]  }
 0x1a8   :  { %4618 = vmatprep.subr.bf16.mxu0 %v11326_v35  ;;  %v10150_v19 = vpop.f32.mrb[91].mxu1  ;;  %v11353_v35 = vld [vmem:[%s15616_s1 + $0xacc] ss:$12 sps:$4 sm:$0xff]  }
 0x1a9   :  { %v13736_v41 = vadd.f32 %v10148_v12, %v5331_v57  ;;  %v10151_v2 = vadd.f32 %v10150_v19, %v10149_v46  ;;  %v11351_v19 = vld [vmem:[%s15616_s1 + $0xac8] ss:$12 sps:$4 sm:$0xff]  }
 0x1ab   :  { %4619 = vmatpush1.bf16.msra.mxu0 %v11324_v43  ;;  %v13744_v50 = vadd.f32 %v10151_v2, %v5334_v54  ;;  %v11356_v2 = vld [vmem:[%s15616_s1 + $0xae4] ss:$12 sps:$4 sm:$0xff]  }
 0x1ac   :  { %4620 = vmatprep.subr.bf16.mxu0 %v11329_v11 }
 0x1ad   :  { %v10152_v17 = vpop.f32.mrb[92].mxu1 }
 0x1ae   :  { %v10153_v10 = vpop.f32.mrb[93].mxu1 }
 0x1af   :  { %4621 = vmatpush1.bf16.msra.mxu0 %v11327_v55  ;;  %v10154_v23 = vadd.f32 %v10153_v10, %v10152_v17  ;;  %v10155_v57 = vpop.f32.mrb[94].mxu1  ;;  %v11943_v55 = vld [vmem:[%s15615_s0 + $0x1a4] ss:$92 sps:$4 sm:$0xff]  }
 0x1b0   :  { %4622 = vmatprep.subr.bf16.mxu0 %v11332_v45  ;;  %v10156_v60 = vpop.f32.mrb[95].mxu1  ;;  %v11354_v17 = vld [vmem:[%s15616_s1 + $0xae0] ss:$12 sps:$4 sm:$0xff]   ;;  %v11357_v57 = vld [vmem:[%s15616_s1 + $0xaf8] ss:$12 sps:$4 sm:$0xff]  }
 0x1b1   :  { %v13752_v33 = vadd.f32 %v10154_v23, %v5339_v15  ;;  %v11362_v60 = vld [vmem:[%s15616_s1 + $0xb14] ss:$12 sps:$4 sm:$0xff]  }
 0x1b3   :  { %4623 = vmatpush1.bf16.msra.mxu0 %v11330_v38  ;;  %v11359_v38 = vld [vmem:[%s15616_s1 + $0xafc] ss:$12 sps:$4 sm:$0xff]  }
 0x1b4   :  { %4624 = vmatprep.subr.bf16.mxu0 %v11335_v48 }
 0x1b5   :  { %v10174_v54 = vpop.f32.mrb[96].mxu1 }
 0x1b6   :  { %v10175_v13 = vpop.f32.mrb[97].mxu1 }
 0x1b7   :  { %4625 = vmatpush1.bf16.msra.mxu0 %v11333_v59  ;;  %v10176_v14 = vadd.f32 %v10175_v13, %v10174_v54  ;;  %v10177_v15 = vpop.f32.mrb[98].mxu1  ;;  %v11944_v59 = vld [vmem:[%s15615_s0 + $0x1a0] ss:$92 sps:$4 sm:$0xff]  }
 0x1b8   :  { %4626 = vmatprep.subr.bf16.mxu0 %v11338_v5  ;;  %v10178_v28 = vpop.f32.mrb[99].mxu1  ;;  %v11360_v54 = vld [vmem:[%s15616_s1 + $0xb10] ss:$12 sps:$4 sm:$0xff]  }
 0x1b9   :  { %v13766_v6 = vadd.f32 %v10176_v14, %v5379_v7  ;;  %v10179_v18 = vadd.f32 %v10178_v28, %v10177_v15  ;;  %v11368_v28 = vld [vmem:[%s15616_s1 + $0xb44] ss:$12 sps:$4 sm:$0xff]  }
 0x1bb   :  { %4627 = vmatpush1.bf16.msra.mxu0 %v11336_v9  ;;  %v13774_v0 = vadd.f32 %v10179_v18, %v5382_v4  ;;  %v11940_v4 = vld [vmem:[%s15615_s0 + $0x30] ss:$92 sps:$4 sm:$0xff]  }
 0x1bc   :  { %4628 = vmatprep.subr.bf16.mxu0 %v11341_v52  ;;  %v11365_v9 = vld [vmem:[%s15616_s1 + $0xb2c] ss:$12 sps:$4 sm:$0xff]  }
 0x1bd   :  { %v10180_v30 = vpop.f32.mrb[100].mxu1 }
 0x1be   :  { %v10181_v7 = vpop.f32.mrb[101].mxu1 }
 0x1bf   :  { %4629 = vmatpush1.bf16.msra.mxu0 %v11339_v20  ;;  %v10182_v58 = vadd.f32 %v10181_v7, %v10180_v30  ;;  %v10183_v34 = vpop.f32.mrb[102].mxu1 }
 0x1c0   :  { %4669 = vmatprep.subr.bf16.mxu0 %v11344_v22  ;;  %v10184_v25 = vpop.f32.mrb[103].mxu1  ;;  %v11945_v22 = vld [vmem:[%s15615_s0 + $0x3c] ss:$92 sps:$4 sm:$0xff]  }
 0x1c1   :  { %v13786_v24 = vadd.f32 %v10182_v58, %v13720_v53  ;;  %v10185_v51 = vadd.f32 %v10184_v25, %v10183_v34 }
 0x1c2   :  { %4631 = vmatmul.mubr.bf16.vlgmr.msra.gmra.mrb[0].mxu0 %v11940_v4 }
 0x1c3   :  { %4670 = vmatpush1.bf16.msra.mxu0 %v11342_v47  ;;  %4640 = vmatprep.mubr.bf16.mxu0 %v11941_v37  ;;  %v13798_v16 = vadd.f32 %v10185_v51, %v13728_v39  ;;  %v11942_v39 = vld [vmem:[%s15615_s0 + $0xe8] ss:$92 sps:$4 sm:$0xff]   ;;  %v11366_v47 = vld [vmem:[%s15616_s1 + $0xb40] ss:$12 sps:$4 sm:$0xff]  }
 0x1c4   :  { %4671 = vmatprep.subr.bf16.mxu0 %v11347_v32  ;;  %v11374_v51 = vld [vmem:[%s15616_s1 + $0xb74] ss:$12 sps:$4 sm:$0xff]   ;;  %v11377_v37 = vld [vmem:[%s15616_s1 + $0xb8c] ss:$12 sps:$4 sm:$0xff]  }
 0x1c5   :  { %v10186_v53 = vpop.f32.mrb[104].mxu1 }
 0x1c6   :  { %v10187_v42 = vpop.f32.mrb[105].mxu1 }
 0x1c7   :  { %4672 = vmatpush1.bf16.msra.mxu0 %v11345_v61  ;;  %v10188_v43 = vadd.f32 %v10187_v42, %v10186_v53  ;;  %v10189_v11 = vpop.f32.mrb[106].mxu1 }
 0x1c8   :  { %4673 = vmatprep.subr.bf16.mxu0 %v11350_v36  ;;  %v10190_v63 = vpop.f32.mrb[107].mxu1  ;;  %v11372_v36 = vld [vmem:[%s15616_s1 + $0xb70] ss:$12 sps:$4 sm:$0xff]  }
 0x1c9   :  { %v13810_v12 = vadd.f32 %v10188_v43, %v13736_v41  ;;  %v10191_v46 = vadd.f32 %v10190_v63, %v10189_v11  ;;  %v11380_v63 = vld [vmem:[%s15616_s1 + $0xba4] ss:$12 sps:$4 sm:$0xff]  }
 0x1ca   :  { %4641 = vmatmul.mubr.bf16.gmra.mrb[4].mxu0 %v11942_v39 }
 0x1cb   :  { %4674 = vmatpush1.bf16.msra.mxu0 %v11348_v26  ;;  %4650 = vmatprep.mubr.bf16.mxu0 %v11943_v55  ;;  %v13822_v45 = vadd.f32 %v10191_v46, %v13744_v50  ;;  %v11378_v46 = vld [vmem:[%s15616_s1 + $0xba0] ss:$12 sps:$4 sm:$0xff]  }
 0x1cc   :  { %4675 = vmatprep.subr.bf16.mxu0 %v11353_v35 }
 0x1cd   :  { %v10192_v41 = vpop.f32.mrb[108].mxu1 }
 0x1ce   :  { %v10193_v48 = vpop.f32.mrb[109].mxu1 }
 0x1cf   :  { %4676 = vmatpush1.bf16.msra.mxu0 %v11351_v19  ;;  %v10194_v10 = vadd.f32 %v10193_v48, %v10192_v41  ;;  %v10195_v23 = vpop.f32.mrb[110].mxu1  ;;  %v11386_v48 = vld [vmem:[%s15616_s1 + $0xbd4] ss:$12 sps:$4 sm:$0xff]  }
 0x1d0   :  { %4677 = vmatprep.subr.bf16.mxu0 %v11356_v2  ;;  %v10196_v50 = vpop.f32.mrb[111].mxu1 }
 0x1d1   :  { %v13840_v5 = vadd.f32 %v10194_v10, %v13752_v33  ;;  %v11363_v33 = vld [vmem:[%s15616_s1 + $0xb28] ss:$12 sps:$4 sm:$0xff]   ;;  %v11384_v10 = vld [vmem:[%s15616_s1 + $0xbd0] ss:$12 sps:$4 sm:$0xff]  }
 0x1d2   :  { %4651 = vmatmul.mubr.bf16.gmra.mrb[8].mxu0 %v11944_v59 }
 0x1d3   :  { %4678 = vmatpush1.bf16.msra.mxu0 %v11354_v17  ;;  %4660 = vmatprep.mubr.bf16.mxu0 %v13032_v8 }
 0x1d4   :  { %4679 = vmatprep.subr.bf16.mxu0 %v11359_v38 }
 0x1d5   :  { %v10214_v52 = vpop.f32.mrb[112].mxu1 }
 0x1d6   :  { %v10215_v13 = vpop.f32.mrb[113].mxu1 }
 0x1d7   :  { %4680 = vmatpush1.bf16.msra.mxu0 %v11357_v57  ;;  %v10216_v14 = vadd.f32 %v10215_v13, %v10214_v52  ;;  %v10217_v15 = vpop.f32.mrb[114].mxu1  ;;  %v11389_v57 = vld [vmem:[%s15616_s1 + $0xbec] ss:$12 sps:$4 sm:$0xff]   ;;  %v11392_v13 = vld [vmem:[%s15616_s1 + $0xc04] ss:$12 sps:$4 sm:$0xff]  }
 0x1d8   :  { %4681 = vmatprep.subr.bf16.mxu0 %v11362_v60  ;;  %v10218_v8 = vpop.f32.mrb[115].mxu1 }
 0x1d9   :  { %v13857_v18 = vadd.f32 %v10216_v14, %v13766_v6  ;;  %v10219_v20 = vadd.f32 %v10218_v8, %v10217_v15  ;;  %v11390_v15 = vld [vmem:[%s15616_s1 + $0xc00] ss:$12 sps:$4 sm:$0xff]   ;;  %v11395_v8 = vld [vmem:[%s15616_s1 + $0xc1c] ss:$12 sps:$4 sm:$0xff]  }
 0x1da   :  { %4661 = vmatmul.mubr.bf16.gmra.mrb[12].mxu0 %v13050_v44  ;;  %v11371_v44 = vld [vmem:[%s15616_s1 + $0xb5c] ss:$12 sps:$4 sm:$0xff]  }
 0x1db   :  { %4682 = vmatpush1.bf16.msra.mxu0 %v11360_v54  ;;  %4701 = vmatprep.mubr.bf16.mxu0 %v11945_v22  ;;  %v5510_v30 = vadd.f32 %v10219_v20, %v13774_v0  ;;  %v11369_v0 = vld [vmem:[%s15616_s1 + $0xb58] ss:$12 sps:$4 sm:$0xff]   ;;  %v11387_v54 = vld [vmem:[%s15616_s1 + $0xbe8] ss:$12 sps:$4 sm:$0xff]  }
 0x1dc   :  { %4683 = vmatprep.subr.bf16.mxu0 %v11365_v9 }
 0x1dd   :  { %v10220_v6 = vpop.f32.mrb[116].mxu1 }
 0x1de   :  { %v10221_v32 = vpop.f32.mrb[117].mxu1 }
 0x1df   :  { %4684 = vmatpush1.bf16.msra.mxu0 %v11363_v33  ;;  %v10222_v7 = vadd.f32 %v10221_v32, %v10220_v6  ;;  %v10223_v58 = vpop.f32.mrb[118].mxu1  ;;  %v11398_v32 = vld [vmem:[%s15616_s1 + $0xc34] ss:$12 sps:$4 sm:$0xff]  }
 0x1e0   :  { %4685 = vmatprep.subr.bf16.mxu0 %v11368_v28  ;;  %v10224_v34 = vpop.f32.mrb[119].mxu1 }
 0x1e1   :  { %v13870_v25 = vadd.f32 %v10222_v7, %v13786_v24  ;;  %v10225_v4 = vadd.f32 %v10224_v34, %v10223_v58  ;;  %v11947_v7 = vld [vmem:[%s15615_s0 + $0xf4] ss:$92 sps:$4 sm:$0xff]  }
 0x1e2   :  { %v11396_v34 = vld [vmem:[%s15616_s1 + $0xc30] ss:$12 sps:$4 sm:$0xff]  }
 0x1e3   :  { %4686 = vmatpush1.bf16.msra.mxu0 %v11366_v47  ;;  %v13879_v61 = vadd.f32 %v10225_v4, %v13798_v16  ;;  %v11375_v16 = vld [vmem:[%s15616_s1 + $0xb88] ss:$12 sps:$4 sm:$0xff]   ;;  %v11393_v47 = vld [vmem:[%s15616_s1 + $0xc18] ss:$12 sps:$4 sm:$0xff]  }
 0x1e4   :  { %4687 = vmatprep.subr.bf16.mxu0 %v11371_v44  ;;  %v11401_v4 = vld [vmem:[%s15616_s1 + $0xc4c] ss:$12 sps:$4 sm:$0xff]  }
 0x1e5   :  { %v10226_v24 = vpop.f32.mrb[120].mxu1 }
 0x1e6   :  { %v10227_v53 = vpop.f32.mrb[121].mxu1 }
 0x1e7   :  { %4688 = vmatpush1.bf16.msra.mxu0 %v11369_v0  ;;  %v10228_v26 = vadd.f32 %v10227_v53, %v10226_v24  ;;  %v10229_v35 = vpop.f32.mrb[122].mxu1 }
 0x1e8   :  { %4689 = vmatprep.subr.bf16.mxu0 %v11374_v51  ;;  %v10230_v42 = vpop.f32.mrb[123].mxu1 }
 0x1e9   :  { %v13891_v43 = vadd.f32 %v10228_v26, %v13810_v12  ;;  %v10231_v11 = vadd.f32 %v10230_v42, %v10229_v35  ;;  %v11383_v12 = vld [vmem:[%s15616_s1 + $0xbbc] ss:$12 sps:$4 sm:$0xff]   ;;  %v11404_v35 = vld [vmem:[%s15616_s1 + $0xc64] ss:$12 sps:$4 sm:$0xff]  }
 0x1ea   :  { %v11949_v42 = vld [vmem:[%s15615_s0 + $0x1ac] ss:$92 sps:$4 sm:$0xff]  }
 0x1eb   :  { %4690 = vmatpush1.bf16.msra.mxu0 %v11372_v36  ;;  %v13897_v39 = vadd.f32 %v10231_v11, %v13822_v45  ;;  %v11381_v45 = vld [vmem:[%s15616_s1 + $0xbb8] ss:$12 sps:$4 sm:$0xff]  }
 0x1ec   :  { %4691 = vmatprep.subr.bf16.mxu0 %v11377_v37  ;;  %v11948_v37 = vld [vmem:[%s15615_s0 + $0xf0] ss:$92 sps:$4 sm:$0xff]  }
 0x1ed   :  { %v10232_v19 = vpop.f32.mrb[124].mxu1 }
 0x1ee   :  { %v10233_v2 = vpop.f32.mrb[125].mxu1 }
 0x1ef   :  { %4692 = vmatpush1.bf16.msra.mxu0 %v11375_v16  ;;  %v10234_v55 = vadd.f32 %v10233_v2, %v10232_v19  ;;  %v10235_v41 = vpop.f32.mrb[126].mxu1 }
 0x1f0   :  { %4693 = vmatprep.subr.bf16.mxu0 %v11380_v63  ;;  %v10236_v17 = vpop.f32.mrb[127].mxu1  ;;  %v11407_v63 = vld [vmem:[%s15616_s1 + $0xc7c] ss:$12 sps:$4 sm:$0xff]  }
 0x1f1   :  { %v13909_v38 = vadd.f32 %v10234_v55, %v13840_v5 }
 0x1f3   :  { %4694 = vmatpush1.bf16.msra.mxu0 %v11378_v46 }
 0x1f4   :  { %4695 = vmatprep.subr.bf16.mxu0 %v11383_v12 }
 0x1f5   :  { %v10254_v23 = vpop.f32.mrb[128].mxu1 }
 0x1f6   :  { %v10255_v50 = vpop.f32.mrb[129].mxu1 }
 0x1f7   :  { %4696 = vmatpush1.bf16.msra.mxu0 %v11381_v45  ;;  %v10256_v60 = vadd.f32 %v10255_v50, %v10254_v23  ;;  %v10257_v59 = vpop.f32.mrb[130].mxu1 }
 0x1f8   :  { %4697 = vmatprep.subr.bf16.mxu0 %v11386_v48  ;;  %v10258_v5 = vpop.f32.mrb[131].mxu1 }
 0x1f9   :  { %v13924_v9 = vadd.f32 %v10256_v60, %v13857_v18  ;;  %v10259_v52 = vadd.f32 %v10258_v5, %v10257_v59 }
 0x1fb   :  { %4698 = vmatpush1.bf16.msra.mxu0 %v11384_v10  ;;  %v13929_v14 = vadd.f32 %v10259_v52, %v5510_v30  ;;  %v11946_v30 = vld [vmem:[%s15615_s0 + $0x38] ss:$92 sps:$4 sm:$0xff]  }
 0x1fc   :  { %4699 = vmatprep.subr.bf16.mxu0 %v11389_v57 }
 0x1fd   :  { %v10260_v33 = vpop.f32.mrb[132].mxu1 }
 0x1fe   :  { %v10261_v28 = vpop.f32.mrb[133].mxu1 }
 0x1ff   :  { %4700 = vmatpush1.bf16.msra.mxu0 %v11387_v54  ;;  %v10262_v18 = vadd.f32 %v10261_v28, %v10260_v33  ;;  %v10263_v20 = vpop.f32.mrb[134].mxu1 }
 0x200   :  { %4740 = vmatprep.subr.bf16.mxu0 %v11392_v13  ;;  %v10264_v22 = vpop.f32.mrb[135].mxu1 }
 0x201   :  { %v13944_v44 = vadd.f32 %v10262_v18, %v13870_v25  ;;  %v10265_v6 = vadd.f32 %v10264_v22, %v10263_v20 }
 0x202   :  { %4702 = vmatmul.mubr.bf16.vlgmr.msra.gmra.mrb[0].mxu0 %v11946_v30 }
 0x203   :  { %4741 = vmatpush1.bf16.msra.mxu0 %v11390_v15  ;;  %4711 = vmatprep.mubr.bf16.mxu0 %v11947_v7  ;;  %v13953_v58 = vadd.f32 %v10265_v6, %v13879_v61  ;;  %v11399_v61 = vld [vmem:[%s15616_s1 + $0xc48] ss:$12 sps:$4 sm:$0xff]  }
 0x204   :  { %4742 = vmatprep.subr.bf16.mxu0 %v11395_v8 }
 0x205   :  { %v10266_v25 = vpop.f32.mrb[136].mxu1 }
 0x206   :  { %v10267_v0 = vpop.f32.mrb[137].mxu1 }
 0x207   :  { %4743 = vmatpush1.bf16.msra.mxu0 %v11393_v47  ;;  %v10268_v51 = vadd.f32 %v10267_v0, %v10266_v25  ;;  %v10269_v36 = vpop.f32.mrb[138].mxu1 }
 0x208   :  { %4744 = vmatprep.subr.bf16.mxu0 %v11398_v32  ;;  %v10270_v24 = vpop.f32.mrb[139].mxu1 }
 0x209   :  { %v13968_v53 = vadd.f32 %v10268_v51, %v13891_v43  ;;  %v10271_v26 = vadd.f32 %v10270_v24, %v10269_v36  ;;  %v11402_v43 = vld [vmem:[%s15616_s1 + $0xc60] ss:$12 sps:$4 sm:$0xff]  }
 0x20a   :  { %4712 = vmatmul.mubr.bf16.gmra.mrb[4].mxu0 %v11948_v37 }
 0x20b   :  { %4745 = vmatpush1.bf16.msra.mxu0 %v11396_v34  ;;  %4721 = vmatprep.mubr.bf16.mxu0 %v11949_v42  ;;  %v13977_v16 = vadd.f32 %v10271_v26, %v13897_v39  ;;  %v11950_v39 = vld [vmem:[%s15615_s0 + $0x1a8] ss:$92 sps:$4 sm:$0xff]  }
 0x20c   :  { %4746 = vmatprep.subr.bf16.mxu0 %v11401_v4 }
 0x20d   :  { %v10272_v11 = vpop.f32.mrb[140].mxu1 }
 0x20e   :  { %v10273_v46 = vpop.f32.mrb[141].mxu1 }
 0x20f   :  { %4747 = vmatpush1.bf16.msra.mxu0 %v11399_v61  ;;  %v10274_v19 = vadd.f32 %v10273_v46, %v10272_v11  ;;  %v10275_v12 = vpop.f32.mrb[142].mxu1 }
 0x210   :  { %4748 = vmatprep.subr.bf16.mxu0 %v11404_v35  ;;  %v10276_v2 = vpop.f32.mrb[143].mxu1 }
 0x211   :  { %v13986_v55 = vadd.f32 %v10274_v19, %v13909_v38 }
 0x212   :  { %4722 = vmatmul.mubr.bf16.gmra.mrb[8].mxu0 %v11950_v39 }
 0x213   :  { %10 = vsyncpa [#allocation5], 0  ;;  %4749 = vmatpush1.bf16.msra.mxu0 %v11402_v43  ;;  %v11405_v41 = vld [vmem:[%s15616_s1 + $0xc78] ss:$12 sps:$4 sm:$0xff]   ;;  %4731 = vmatprep.mubr.bf16.mxu0 %v13167_v56  ;;  %v11410_v17 = vld [vmem:[%s15616_s1 + $0xc94] ss:$12 sps:$4 sm:$0xff]  }
 0x214   :  { %4750 = vmatprep.subr.bf16.mxu0 %v11407_v63  ;;  %v11408_v38 = vld [vmem:[%s15616_s1 + $0xc90] ss:$12 sps:$4 sm:$0xff]   ;;  %v11413_v10 = vld [vmem:[%s15616_s1 + $0xcac] ss:$12 sps:$4 sm:$0xff]   ;;  %v11411_v59 = vld [vmem:[%s15616_s1 + $0xca8] ss:$12 sps:$4 sm:$0xff]  }
 0x215   :  { %v10294_v45 = vpop.f32.mrb[144].mxu1  ;;  %v11951_v5 = vld [vmem:[%s15615_s0 + $0x44] ss:$92 sps:$4 sm:$0xff]   ;;  %v11419_v15 = vld [vmem:[%s15616_s1 + $0xcdc] ss:$12 sps:$4 sm:$0xff]   ;;  %vm5819_vm1 = vcmask 359424  }
 0x216   :  { %v10295_v48 = vpop.f32.mrb[145].mxu1  ;;  %v11416_v54 = vld [vmem:[%s15616_s1 + $0xcc4] ss:$12 sps:$4 sm:$0xff]   ;;  %v11422_v22 = vld [vmem:[%s15616_s1 + $0xcf4] ss:$12 sps:$4 sm:$0xff]   ;;  %vm5831_vm2 = vcmask 353280  }
 0x217   :  { %4751 = vmatpush1.bf16.msra.mxu0 %v11405_v41  ;;  %v10296_v23 = vadd.f32 %v10295_v48, %v10294_v45  ;;  %v10297_v57 = vpop.f32.mrb[146].mxu1  ;;  %v11425_v32 = vld [vmem:[%s15616_s1 + $0xd0c] ss:$12 sps:$4 sm:$0xff]   ;;  %v11423_v0 = vld [vmem:[%s15616_s1 + $0xd08] ss:$12 sps:$4 sm:$0xff]   ;;  %vm5797_vm9 = vcmask 1041408  }
 0x218   :  { %4752 = vmatprep.subr.bf16.mxu0 %v11410_v17  ;;  %v10298_v56 = vpop.f32.mrb[147].mxu1  ;;  %v11428_v51 = vld [vmem:[%s15616_s1 + $0xd24] ss:$12 sps:$4 sm:$0xff]   ;;  %v11426_v61 = vld [vmem:[%s15616_s1 + $0xd20] ss:$12 sps:$4 sm:$0xff]   ;;  %s12002_s20 = smov [#allocation4]  }
 0x219   :  { %v14005_v50 = vadd.f32 %v10296_v23, %v13924_v9  ;;  %v10299_v60 = vadd.f32 %v10298_v56, %v10297_v57  ;;  %v11434_v11 = vld [vmem:[%s15616_s1 + $0xd54] ss:$12 sps:$4 sm:$0xff]   ;;  %v11432_v46 = vld [vmem:[%s15616_s1 + $0xd50] ss:$12 sps:$4 sm:$0xff]   ;;  %v11437_v12 = vld [vmem:[%s15616_s1 + $0xd6c] ss:$12 sps:$4 sm:$0xff]  }
 0x21a   :  { %4732 = vmatmul.mubr.bf16.gmra.mrb[12].mxu0 %v13189_v1  ;;  %v11414_v1 = vld [vmem:[%s15616_s1 + $0xcc0] ss:$12 sps:$4 sm:$0xff]   ;;  %v11435_v45 = vld [vmem:[%s15616_s1 + $0xd68] ss:$12 sps:$4 sm:$0xff]  }
 0x21b   :  { %4753 = vmatpush1.bf16.msra.mxu0 %v11408_v38  ;;  %4772 = vmatprep.mubr.bf16.mxu0 %v11951_v5  ;;  %v5638_v9 = vadd.f32 %v10299_v60, %v13929_v14  ;;  %v11417_v14 = vld [vmem:[%s15616_s1 + $0xcd8] ss:$12 sps:$4 sm:$0xff]   ;;  %v11438_v23 = vld [vmem:[%s15616_s1 + $0xd80] ss:$12 sps:$4 sm:$0xff]   ;;  %v11443_v56 = vld [vmem:[%s15616_s1 + $0xd9c] ss:$12 sps:$4 sm:$0xff]  }
 0x21c   :  { %4754 = vmatprep.subr.bf16.mxu0 %v11413_v10  ;;  %v11440_v38 = vld [vmem:[%s15616_s1 + $0xd84] ss:$12 sps:$4 sm:$0xff]   ;;  %v11952_v5 = vld [vmem:[%s15615_s0 + $0x40] ss:$92 sps:$4 sm:$0xff]  }
 0x21d   :  { %v10300_v52 = vpop.f32.mrb[148].mxu1 }
 0x21e   :  { %v10301_v13 = vpop.f32.mrb[149].mxu1 }
 0x21f   :  { %4755 = vmatpush1.bf16.msra.mxu0 %v11411_v59  ;;  %v10302_v33 = vadd.f32 %v10301_v13, %v10300_v52  ;;  %v10303_v8 = vpop.f32.mrb[150].mxu1  ;;  %v11441_v52 = vld [vmem:[%s15616_s1 + $0xd98] ss:$12 sps:$4 sm:$0xff]   ;;  %v11446_v13 = vld [vmem:[%s15616_s1 + $0xdb4] ss:$12 sps:$4 sm:$0xff]  }
 0x220   :  { %4756 = vmatprep.subr.bf16.mxu0 %v11416_v54  ;;  %v10304_v28 = vpop.f32.mrb[151].mxu1 }
 0x221   :  { %v14025_v18 = vadd.f32 %v10302_v33, %v13944_v44  ;;  %v10305_v20 = vadd.f32 %v10304_v28, %v10303_v8  ;;  %v11420_v44 = vld [vmem:[%s15616_s1 + $0xcf0] ss:$12 sps:$4 sm:$0xff]  }
 0x222   :  { %v11444_v8 = vld [vmem:[%s15616_s1 + $0xdb0] ss:$12 sps:$4 sm:$0xff]  }
 0x223   :  { %4757 = vmatpush1.bf16.msra.mxu0 %v11414_v1  ;;  %v14034_v30 = vadd.f32 %v10305_v20, %v13953_v58  ;;  %v11953_v1 = vld [vmem:[%s15615_s0 + $0xfc] ss:$92 sps:$4 sm:$0xff]  }
 0x224   :  { %4758 = vmatprep.subr.bf16.mxu0 %v11419_v15 }
 0x225   :  { %v10306_v47 = vpop.f32.mrb[152].mxu1 }
 0x226   :  { %v10307_v6 = vpop.f32.mrb[153].mxu1 }
 0x227   :  { %4759 = vmatpush1.bf16.msra.mxu0 %v11417_v14  ;;  %v10308_v7 = vadd.f32 %v10307_v6, %v10306_v47  ;;  %v10309_v34 = vpop.f32.mrb[154].mxu1  ;;  %v11447_v6 = vld [vmem:[%s15616_s1 + $0xdc8] ss:$12 sps:$4 sm:$0xff]  }
 0x228   :  { %4760 = vmatprep.subr.bf16.mxu0 %v11422_v22  ;;  %v10310_v25 = vpop.f32.mrb[155].mxu1 }
 0x229   :  { %v14043_v4 = vadd.f32 %v10308_v7, %v13968_v53  ;;  %v10311_v58 = vadd.f32 %v10310_v25, %v10309_v34  ;;  %v11431_v53 = vld [vmem:[%s15616_s1 + $0xd3c] ss:$12 sps:$4 sm:$0xff]   ;;  %v11452_v7 = vld [vmem:[%s15616_s1 + $0xde4] ss:$12 sps:$4 sm:$0xff]  }
 0x22b   :  { %4761 = vmatpush1.bf16.msra.mxu0 %v11420_v44  ;;  %v14052_v36 = vadd.f32 %v10311_v58, %v13977_v16  ;;  %v11429_v16 = vld [vmem:[%s15616_s1 + $0xd38] ss:$12 sps:$4 sm:$0xff]  }
 0x22c   :  { %4762 = vmatprep.subr.bf16.mxu0 %v11425_v32  ;;  %v11955_v32 = vld [vmem:[%s15615_s0 + $0x1b4] ss:$92 sps:$4 sm:$0xff]  }
 0x22d   :  { %v10312_v24 = vpop.f32.mrb[156].mxu1 }
 0x22e   :  { %v10313_v37 = vpop.f32.mrb[157].mxu1 }
 0x22f   :  { %4763 = vmatpush1.bf16.msra.mxu0 %v11423_v0  ;;  %v10314_v26 = vadd.f32 %v10313_v37, %v10312_v24  ;;  %v10315_v35 = vpop.f32.mrb[158].mxu1  ;;  %v11455_v24 = vld [vmem:[%s15616_s1 + $0xdfc] ss:$12 sps:$4 sm:$0xff]  }
 0x230   :  { %4764 = vmatprep.subr.bf16.mxu0 %v11428_v51  ;;  %v10316_v42 = vpop.f32.mrb[159].mxu1 }
 0x231   :  { %v14061_v43 = vadd.f32 %v10314_v26, %v13986_v55  ;;  %v11458_v26 = vld [vmem:[%s15616_s1 + $0xe14] ss:$12 sps:$4 sm:$0xff]  }
 0x233   :  { %4765 = vmatpush1.bf16.msra.mxu0 %v11426_v61 }
 0x234   :  { %4766 = vmatprep.subr.bf16.mxu0 %v11431_v53  ;;  %v11453_v53 = vld [vmem:[%s15616_s1 + $0xdf8] ss:$12 sps:$4 sm:$0xff]  }
 0x235   :  { %v10334_v63 = vpop.f32.mrb[160].mxu1 }
 0x236   :  { %v10335_v19 = vpop.f32.mrb[161].mxu1 }
 0x237   :  { %4767 = vmatpush1.bf16.msra.mxu0 %v11429_v16  ;;  %v10336_v2 = vadd.f32 %v10335_v19, %v10334_v63  ;;  %v10337_v55 = vpop.f32.mrb[162].mxu1  ;;  %v11456_v16 = vld [vmem:[%s15616_s1 + $0xe10] ss:$12 sps:$4 sm:$0xff]  }
 0x238   :  { %4768 = vmatprep.subr.bf16.mxu0 %v11434_v11  ;;  %v10338_v39 = vpop.f32.mrb[163].mxu1 }
 0x239   :  { %v10339_v41 = vadd.f32 %v10338_v39, %v10337_v55  ;;  %v14076_v17 = vadd.f32 %v10336_v2, %v14005_v50  ;;  %v11459_v55 = vld [vmem:[%s15616_s1 + $0xe28] ss:$12 sps:$4 sm:$0xff]  }
 0x23a   :  { %v11957_v39 = vld [vmem:[%s15615_s0 + $0x4c] ss:$92 sps:$4 sm:$0xff]  }
 0x23b   :  { %4769 = vmatpush1.bf16.msra.mxu0 %v11432_v46  ;;  %v14084_v48 = vadd.f32 %v10339_v41, %v5638_v9 }
 0x23c   :  { %4770 = vmatprep.subr.bf16.mxu0 %v11437_v12 }
 0x23d   :  { %v10340_v10 = vpop.f32.mrb[164].mxu1 }
 0x23e   :  { %v10341_v57 = vpop.f32.mrb[165].mxu1 }
 0x23f   :  { %4771 = vmatpush1.bf16.msra.mxu0 %v11435_v45  ;;  %v10342_v50 = vadd.f32 %v10341_v57, %v10340_v10  ;;  %v10343_v60 = vpop.f32.mrb[166].mxu1 }
 0x240   :  { %4811 = vmatprep.subr.bf16.mxu0 %v11440_v38  ;;  %v10344_v59 = vpop.f32.mrb[167].mxu1 }
 0x241   :  { %v10345_v54 = vadd.f32 %v10344_v59, %v10343_v60  ;;  %v5707_v9 = vadd.f32 %v10342_v50, %v14025_v18  ;;  %v11449_v18 = vld [vmem:[%s15616_s1 + $0xdcc] ss:$12 sps:$4 sm:$0xff]   ;;  %v11467_v59 = vld [vmem:[%s15616_s1 + $0xe5c] ss:$12 sps:$4 sm:$0xff]  }
 0x242   :  { %4773 = vmatmul.mubr.bf16.vlgmr.msra.gmra.mrb[0].mxu0 %v11952_v5 }
 0x243   :  { %4812 = vmatpush1.bf16.msra.mxu0 %v11438_v23  ;;  %4782 = vmatprep.mubr.bf16.mxu0 %v11953_v1  ;;  %v5710_v15 = vadd.f32 %v10345_v54, %v14034_v30  ;;  %v11954_v30 = vld [vmem:[%s15615_s0 + $0xf8] ss:$92 sps:$4 sm:$0xff]  }
 0x244   :  { %4813 = vmatprep.subr.bf16.mxu0 %v11443_v56  ;;  %v11462_v56 = vld [vmem:[%s15616_s1 + $0xe40] ss:$12 sps:$4 sm:$0xff]  }
 0x245   :  { %v10346_v33 = vpop.f32.mrb[168].mxu1 }
 0x246   :  { %v10347_v28 = vpop.f32.mrb[169].mxu1 }
 0x247   :  { %4814 = vmatpush1.bf16.msra.mxu0 %v11441_v52  ;;  %v10348_v20 = vadd.f32 %v10347_v28, %v10346_v33  ;;  %v10349_v14 = vpop.f32.mrb[170].mxu1 }
 0x248   :  { %4815 = vmatprep.subr.bf16.mxu0 %v11446_v13  ;;  %v10350_v22 = vpop.f32.mrb[171].mxu1  ;;  %v11465_v13 = vld [vmem:[%s15616_s1 + $0xe58] ss:$12 sps:$4 sm:$0xff]  }
 0x249   :  { %v10351_v47 = vadd.f32 %v10350_v22, %v10349_v14  ;;  %v5715_v44 = vadd.f32 %v10348_v20, %v14043_v4  ;;  %v11450_v4 = vld [vmem:[%s15616_s1 + $0xde0] ss:$12 sps:$4 sm:$0xff]   ;;  %v11468_v20 = vld [vmem:[%s15616_s1 + $0xe70] ss:$12 sps:$4 sm:$0xff]  }
 0x24a   :  { %4783 = vmatmul.mubr.bf16.gmra.mrb[4].mxu0 %v11954_v30  ;;  %v11473_v14 = vld [vmem:[%s15616_s1 + $0xe8c] ss:$12 sps:$4 sm:$0xff]   ;;  %v11476_v30 = vld [vmem:[%s15616_s1 + $0xea4] ss:$12 sps:$4 sm:$0xff]  }
 0x24b   :  { %4816 = vmatpush1.bf16.msra.mxu0 %v11444_v8  ;;  %4792 = vmatprep.mubr.bf16.mxu0 %v11955_v32  ;;  %v5718_v34 = vadd.f32 %v10351_v47, %v14052_v36  ;;  %v11956_v36 = vld [vmem:[%s15615_s0 + $0x1b0] ss:$92 sps:$4 sm:$0xff]   ;;  %v11470_v8 = vld [vmem:[%s15616_s1 + $0xe74] ss:$12 sps:$4 sm:$0xff]  }
 0x24c   :  { %4817 = vmatprep.subr.bf16.mxu0 %v11449_v18 }
 0x24d   :  { %v10352_v25 = vpop.f32.mrb[172].mxu1 }
 0x24e   :  { %v10353_v58 = vpop.f32.mrb[173].mxu1 }
 0x24f   :  { %4818 = vmatpush1.bf16.msra.mxu0 %v11447_v6  ;;  %v10354_v0 = vadd.f32 %v10353_v58, %v10352_v25  ;;  %v10355_v51 = vpop.f32.mrb[174].mxu1  ;;  %v11477_v58 = vld [vmem:[%s15616_s1 + $0xeb8] ss:$12 sps:$4 sm:$0xff]  }
 0x250   :  { %4819 = vmatprep.subr.bf16.mxu0 %v11452_v7  ;;  %v10356_v61 = vpop.f32.mrb[175].mxu1  ;;  %v11474_v7 = vld [vmem:[%s15616_s1 + $0xea0] ss:$12 sps:$4 sm:$0xff]  }
 0x251   :  { %v5723_v37 = vadd.f32 %v10354_v0, %v14061_v43  ;;  %v11482_v0 = vld [vmem:[%s15616_s1 + $0xed4] ss:$12 sps:$4 sm:$0xff]  }
 0x252   :  { %4793 = vmatmul.mubr.bf16.gmra.mrb[8].mxu0 %v11956_v36 }
 0x253   :  { %4820 = vmatpush1.bf16.msra.mxu0 %v11450_v4  ;;  %4802 = vmatprep.mubr.bf16.mxu0 %v13302_v29  ;;  %v11461_v29 = vld [vmem:[%s15616_s1 + $0xe2c] ss:$12 sps:$4 sm:$0xff]  }
 0x254   :  { %4821 = vmatprep.subr.bf16.mxu0 %v11455_v24 }
 0x255   :  { %v10386_v35 = vpop.f32.mrb[176].mxu1 }
 0x256   :  { %v14143_v42 = vadd.f32 %v10386_v35, %v5707_v9  ;;  %v5762_v43 = vpop.f32.mrb[177].mxu1 }
 0x257   :  { %4822 = vmatpush1.bf16.msra.mxu0 %v11453_v53  ;;  %v14149_v11 = vadd.f32 %v5762_v43, %v14076_v17  ;;  %v10387_v63 = vpop.f32.mrb[178].mxu1  ;;  %v11480_v53 = vld [vmem:[%s15616_s1 + $0xed0] ss:$12 sps:$4 sm:$0xff]  }
 0x258   :  { %4823 = vmatprep.subr.bf16.mxu0 %v11458_v26  ;;  %v14154_v46 = vadd.f32 %v10387_v63, %v5710_v15  ;;  %v5765_v19 = vpop.f32.mrb[179].mxu1  ;;  %v5823_v41 = vsel %vm5819_vm1, %v14143_v42, 0.0 }
 0x259   :  { %v5820_v12 = vsel %vm5819_vm1, %v14149_v11, 0.0  ;;  %v5766_v2 = vadd.f32 %v5765_v19, %v14084_v48 }
 0x25a   :  { %4803 = vmatmul.mubr.bf16.gmra.mrb[12].mxu0 %v13327_v62  ;;  %v11464_v62 = vld [vmem:[%s15616_s1 + $0xe44] ss:$12 sps:$4 sm:$0xff]   ;;  %v5825_v38 = vsel %vm5819_vm1, %v14154_v46, 0.0 }
 0x25b   :  { %4824 = vmatpush1.bf16.msra.mxu0 %v11456_v16  ;;  %4843 = vmatprep.mubr.bf16.mxu0 %v11957_v39  ;;  %v5821_v17 = vsel %vm5819_vm1, %v5766_v2, 0.0 }
 0x25c   :  { %4825 = vmatprep.subr.bf16.mxu0 %v11461_v29  ;;  %v5822_v45 = vadd.f32 %v5821_v17, %v5820_v12 }
 0x25d   :  { %v10390_v48 = vpop.f32.mrb[180].mxu1 }
 0x25e   :  { %v5824_v10 = vadd.f32 %v5823_v41, %v5822_v45  ;;  %v5787_v23 = vadd.f32 %v10390_v48, %v5723_v37  ;;  %v5778_v57 = vpop.f32.mrb[181].mxu1  ;;  %v11488_v41 = vld [vmem:[%s15616_s1 + $0xf04] ss:$12 sps:$4 sm:$0xff]  }
 0x25f   :  { %4826 = vmatpush1.bf16.msra.mxu0 %v11459_v55  ;;  %v5779_v50 = vadd.f32 %v5778_v57, %v5715_v44  ;;  %v10391_v60 = vpop.f32.mrb[182].mxu1  ;;  %v11471_v44 = vld [vmem:[%s15616_s1 + $0xe88] ss:$12 sps:$4 sm:$0xff]  }
 0x260   :  { %4827 = vmatprep.subr.bf16.mxu0 %v11464_v62  ;;  %v5826_v5 = vadd.f32 %v5825_v38, %v5824_v10  ;;  %v5781_v54 = vpop.f32.mrb[183].mxu1  ;;  %v5832_v15 = vsel %vm5831_vm2, %v5787_v23, 0.0  ;;  %v11483_v55 = vld [vmem:[%s15616_s1 + $0xee8] ss:$12 sps:$4 sm:$0xff]   ;;  %v11486_v10 = vld [vmem:[%s15616_s1 + $0xf00] ss:$12 sps:$4 sm:$0xff]  }
 0x261   :  { %v5827_v9 = vsel %vm5819_vm1, %v5779_v50, 0.0  ;;  %v5782_v52 = vadd.f32 %v5781_v54, %v5718_v34  ;;  %v11479_v34 = vld [vmem:[%s15616_s1 + $0xebc] ss:$12 sps:$4 sm:$0xff]   ;;  %v11959_v54 = vld [vmem:[%s15615_s0 + $0x104] ss:$92 sps:$4 sm:$0xff]  }
 0x262   :  { %v5828_v1 = vadd.f32 %v5827_v9, %v5826_v5  ;;  %v11491_v57 = vld [vmem:[%s15616_s1 + $0xf1c] ss:$12 sps:$4 sm:$0xff]   ;;  %v11489_v5 = vld [vmem:[%s15616_s1 + $0xf18] ss:$12 sps:$4 sm:$0xff]  }
 0x263   :  { %4828 = vmatpush1.bf16.msra.mxu0 %v11462_v56  ;;  %v5829_v33 = vsel %vm5819_vm1, %v5782_v52, 0.0  ;;  %v11958_v60 = vld [vmem:[%s15615_s0 + $0x48] ss:$92 sps:$4 sm:$0xff]  }
 0x264   :  { %4829 = vmatprep.subr.bf16.mxu0 %v11467_v59  ;;  %v5830_v28 = vadd.f32 %v5829_v33, %v5828_v1  ;;  %v11497_v33 = vld [vmem:[%s15616_s1 + $0xf4c] ss:$12 sps:$4 sm:$0xff]  }
 0x266   :  { %v5833_v18 = vadd.f32 %v5832_v15, %v5830_v28  ;;  %v11960_v28 = vld [vmem:[%s15615_s0 + $0x100] ss:$92 sps:$4 sm:$0xff]  }
 0x267   :  { %4830 = vmatpush1.bf16.msra.mxu0 %v11465_v13  ;;  %v11492_v13 = vld [vmem:[%s15616_s1 + $0xf30] ss:$12 sps:$4 sm:$0xff]  }
 0x268   :  { %4831 = vmatprep.subr.bf16.mxu0 %v11470_v8  ;;  %v5834_v22 = vrot.slane %v5833_v18, 4 }
 0x26a   :  { %v5835_v47 = vadd.f32 %v5834_v22, %v5833_v18  ;;  %v11495_v18 = vld [vmem:[%s15616_s1 + $0xf48] ss:$12 sps:$4 sm:$0xff]   ;;  %v11500_v22 = vld [vmem:[%s15616_s1 + $0xf64] ss:$12 sps:$4 sm:$0xff]  }
 0x26b   :  { %4832 = vmatpush1.bf16.msra.mxu0 %v11468_v20  ;;  %v11961_v20 = vld [vmem:[%s15615_s0 + $0x1bc] ss:$92 sps:$4 sm:$0xff]  }
 0x26c   :  { %4833 = vmatprep.subr.bf16.mxu0 %v11473_v14  ;;  %v5836_v6 = vrot.slane %v5835_v47, 2 }
 0x26e   :  { %v5837_v32 = vadd.f32 %v5836_v6, %v5835_v47  ;;  %v11503_v6 = vld [vmem:[%s15616_s1 + $0xf7c] ss:$12 sps:$4 sm:$0xff]  }
 0x26f   :  { %4834 = vmatpush1.bf16.msra.mxu0 %v11471_v44  ;;  %v11498_v44 = vld [vmem:[%s15616_s1 + $0xf60] ss:$12 sps:$4 sm:$0xff]  }
 0x270   :  { %4835 = vmatprep.subr.bf16.mxu0 %v11476_v30  ;;  %v5838_v25 = vrot.slane %v5837_v32, 1 }
 0x272   :  { %v5839_v4 = vadd.f32 %v5838_v25, %v5837_v32 }
 0x273   :  { %4836 = vmatpush1.bf16.msra.mxu0 %v11474_v7  ;;  %v11962_v7 = vld [vmem:[%s15615_s0 + $0x1b8] ss:$92 sps:$4 sm:$0xff]  }
 0x274   :  { %4837 = vmatprep.subr.bf16.mxu0 %v11479_v34  ;;  %v5843_v51 = vmul.f32 0.02, %v5839_v4  ;;  %v11501_v34 = vld [vmem:[%s15616_s1 + $0xf78] ss:$12 sps:$4 sm:$0xff]   ;;  %v11506_v4 = vld [vmem:[%s15616_s1 + $0xf94] ss:$12 sps:$4 sm:$0xff]  }
 0x276   :  { %v14214_v24 = vsub.f32 %v14149_v11, %v5843_v51  ;;  %v14216_v61 = vsub.f32 %v5766_v2, %v5843_v51  ;;  %v14219_v37 = vsub.f32 %v14143_v42, %v5843_v51  ;;  %v14222_v36 = vsub.f32 %v14154_v46, %v5843_v51  ;;  %v11485_v42 = vld [vmem:[%s15616_s1 + $0xeec] ss:$12 sps:$4 sm:$0xff]  }
 0x277   :  { %4838 = vmatpush1.bf16.msra.mxu0 %v11477_v58  ;;  %v14227_v26 = vsub.f32 %v5779_v50, %v5843_v51  ;;  %v14229_v35 = vsub.f32 %v5782_v52, %v5843_v51  ;;  %v14231_v43 = vsub.f32 %v5787_v23, %v5843_v51  ;;  %v11494_v52 = vld [vmem:[%s15616_s1 + $0xf34] ss:$12 sps:$4 sm:$0xff]   ;;  %v11509_v51 = vld [vmem:[%s15616_s1 + $0xfac] ss:$12 sps:$4 sm:$0xff]  }
 0x278   :  { %4839 = vmatprep.subr.bf16.mxu0 %v11482_v0  ;;  %v5867_v16 = vmul.f32 %v14214_v24, %v14214_v24  ;;  %v5870_v11 = vmul.f32 %v14216_v61, %v14216_v61  ;;  %v5873_v63 = vmul.f32 %v14219_v37, %v14219_v37  ;;  %v5876_v29 = vmul.f32 %v14222_v36, %v14222_v36  ;;  %v11504_v0 = vld [vmem:[%s15616_s1 + $0xf90] ss:$12 sps:$4 sm:$0xff]  }
 0x279   :  { %v5879_v46 = vmul.f32 %v14227_v26, %v14227_v26  ;;  %v5882_v17 = vmul.f32 %v14229_v35, %v14229_v35  ;;  %v5885_v38 = vmul.f32 %v14231_v43, %v14231_v43 }
 0x27a   :  { %v5912_v19 = vsel %vm5819_vm1, %v5867_v16, 0.0  ;;  %v5913_v12 = vsel %vm5819_vm1, %v5870_v11, 0.0  ;;  %v5915_v2 = vsel %vm5819_vm1, %v5873_v63, 0.0  ;;  %v5917_v62 = vsel %vm5819_vm1, %v5876_v29, 0.0  ;;  %v11510_v11 = vld [vmem:[%s15616_s1 + $0xfc0] ss:$12 sps:$4 sm:$0xff]  }
 0x27b   :  { %4840 = vmatpush1.bf16.msra.mxu0 %v11480_v53  ;;  %v5914_v39 = vadd.f32 %v5913_v12, %v5912_v19  ;;  %v5919_v48 = vsel %vm5819_vm1, %v5879_v46, 0.0  ;;  %v5921_v56 = vsel %vm5819_vm1, %v5882_v17, 0.0  ;;  %v5923_v59 = vsel %vm5831_vm2, %v5885_v38, 0.0  ;;  %v11963_v53 = vld [vmem:[%s15615_s0 + $0x54] ss:$92 sps:$4 sm:$0xff]  }
 0x27c   :  { %4841 = vmatprep.subr.bf16.mxu0 %v11485_v42  ;;  %v11512_v42 = vld [vmem:[%s15616_s1 + $0xfc4] ss:$12 sps:$4 sm:$0xff]   ;;  %v11515_v63 = vld [vmem:[%s15616_s1 + $0xfdc] ss:$12 sps:$4 sm:$0xff]  }
 0x27d   :  { %v5916_v45 = vadd.f32 %v5915_v2, %v5914_v39  ;;  %v14334_v16 = vld [vmem:[%s15619_s4 + $0x1] ss:$8 sm:$0x7] }
 0x27e   :  { %v14349_v29 = vrot.slane %v14334_v16, %v13587_v49 }
 0x27f   :  { %4842 = vmatpush1.bf16.msra.mxu0 %v11483_v55  ;;  %v5918_v23 = vadd.f32 %v5917_v62, %v5916_v45 }
 0x280   :  { %4882 = vmatprep.subr.bf16.mxu0 %v11488_v41  ;;  %v11513_v41 = vld [vmem:[%s15616_s1 + $0xfd8] ss:$12 sps:$4 sm:$0xff]  }
 0x281   :  { %v5920_v50 = vadd.f32 %v5919_v48, %v5918_v23 }
 0x282   :  { %4844 = vmatmul.mubr.bf16.vlgmr.msra.gmra.mrb[0].mxu0 %v11958_v60 }
 0x283   :  { %4883 = vmatpush1.bf16.msra.mxu0 %v11486_v10  ;;  %4853 = vmatprep.mubr.bf16.mxu0 %v11959_v54  ;;  %v5922_v9 = vadd.f32 %v5921_v56, %v5920_v50  ;;  %v11521_v56 = vld [vmem:[%s15616_s1 + $0x100c] ss:$12 sps:$4 sm:$0xff]   ;;  %v11519_v54 = vld [vmem:[%s15616_s1 + $0x1008] ss:$12 sps:$4 sm:$0xff]  }
 0x284   :  { %4884 = vmatprep.subr.bf16.mxu0 %v11491_v57 }
 0x285   :  { %v5924_v1 = vadd.f32 %v5923_v59, %v5922_v9 }
 0x287   :  { %4885 = vmatpush1.bf16.msra.mxu0 %v11489_v5  ;;  %v5925_v15 = vrot.slane %v5924_v1, 4 }
 0x288   :  { %4886 = vmatprep.subr.bf16.mxu0 %v11494_v52 }
 0x289   :  { %v5926_v8 = vadd.f32 %v5925_v15, %v5924_v1 }
 0x28a   :  { %4854 = vmatmul.mubr.bf16.gmra.mrb[4].mxu0 %v11960_v28 }
 0x28b   :  { %4887 = vmatpush1.bf16.msra.mxu0 %v11492_v13  ;;  %4863 = vmatprep.mubr.bf16.mxu0 %v11961_v20  ;;  %v5927_v14 = vrot.slane %v5926_v8, 2 }
 0x28c   :  { %4888 = vmatprep.subr.bf16.mxu0 %v11497_v33  ;;  %v11524_v33 = vld [vmem:[%s15616_s1 + $0x1024] ss:$12 sps:$4 sm:$0xff]  }
 0x28d   :  { %v5928_v47 = vadd.f32 %v5927_v14, %v5926_v8  ;;  %v11522_v14 = vld [vmem:[%s15616_s1 + $0x1020] ss:$12 sps:$4 sm:$0xff]  }
 0x28f   :  { %4889 = vmatpush1.bf16.msra.mxu0 %v11495_v18  ;;  %v5929_v30 = vrot.slane %v5928_v47, 1 }
 0x290   :  { %4890 = vmatprep.subr.bf16.mxu0 %v11500_v22  ;;  %v11527_v22 = vld [vmem:[%s15616_s1 + $0x103c] ss:$12 sps:$4 sm:$0xff]  }
 0x291   :  { %v5930_v32 = vadd.f32 %v5929_v30, %v5928_v47  ;;  %v11525_v47 = vld [vmem:[%s15616_s1 + $0x1038] ss:$12 sps:$4 sm:$0xff]  }
 0x292   :  { %4864 = vmatmul.mubr.bf16.gmra.mrb[8].mxu0 %v11962_v7  ;;  %v11533_v7 = vld [vmem:[%s15616_s1 + $0x106c] ss:$12 sps:$4 sm:$0xff]  }
 0x293   :  { %4891 = vmatpush1.bf16.msra.mxu0 %v11498_v44  ;;  %4873 = vmatprep.mubr.bf16.mxu0 %v13449_v3  ;;  %v5933_v25 = vmul.f32 0.02, %v5930_v32  ;;  %v11507_v3 = vld [vmem:[%s15616_s1 + $0xfa8] ss:$12 sps:$4 sm:$0xff]  }
 0x294   :  { %4892 = vmatprep.subr.bf16.mxu0 %v11503_v6  ;;  %v11530_v44 = vld [vmem:[%s15616_s1 + $0x1054] ss:$12 sps:$4 sm:$0xff]   ;;  %v11528_v6 = vld [vmem:[%s15616_s1 + $0x1050] ss:$12 sps:$4 sm:$0xff]  }
 0x295   :  { %v5936_v58 = vadd.f32 0.001, %v5933_v25 }
 0x297   :  { %4893 = vmatpush1.bf16.msra.mxu0 %v11501_v34  ;;  %11864 = vrsqrt.f32 %v5936_v58 }
 0x298   :  { %4894 = vmatprep.subr.bf16.mxu0 %v11506_v4 }
 0x29a   :  { %4874 = vmatmul.mubr.bf16.gmra.mrb[12].mxu0 %v13477_v21  ;;  %v14339_v21 = vld [vmem:[%s15619_s4 + $0x2] ss:$8 sm:$0x7] }
 0x29b   :  { %4895 = vmatpush1.bf16.msra.mxu0 %v11504_v0  ;;  %4914 = vmatprep.mubr.bf16.mxu0 %v11963_v53  ;;  %v14353_v19 = vrot.slane %v14339_v21, %v13587_v49  ;;  %v11531_v53 = vld [vmem:[%s15616_s1 + $0x1068] ss:$12 sps:$4 sm:$0xff]  }
 0x29c   :  { %4896 = vmatprep.subr.bf16.mxu0 %v11509_v51 }
 0x29f   :  { %4897 = vmatpush1.bf16.msra.mxu0 %v11507_v3 }
 0x2a0   :  { %4898 = vmatprep.subr.bf16.mxu0 %v11512_v42 }
 0x2a1   :  { %v11865_v46 = vpop.eup %11864 }
 0x2a2   :  { %v5942_v12 = vmul.f32 %v11865_v46, %v14214_v24  ;;  %v5945_v2 = vmul.f32 %v11865_v46, %v14216_v61  ;;  %v5948_v55 = vmul.f32 %v11865_v46, %v14219_v37  ;;  %v5951_v39 = vmul.f32 %v11865_v46, %v14222_v36  ;;  %v11518_v24 = vld [vmem:[%s15616_s1 + $0xff4] ss:$12 sps:$4 sm:$0xff]  }
 0x2a3   :  { %4899 = vmatpush1.bf16.msra.mxu0 %v11510_v11  ;;  %v5954_v17 = vmul.f32 %v11865_v46, %v14227_v26  ;;  %v5957_v62 = vmul.f32 %v11865_v46, %v14229_v35  ;;  %v14365_v49 = vmul.f32 %v11865_v46, %v14231_v43  ;;  %v11516_v43 = vld [vmem:[%s15616_s1 + $0xff0] ss:$12 sps:$4 sm:$0xff]  }
 0x2a4   :  { %4900 = vmatprep.subr.bf16.mxu0 %v11515_v63  ;;  %v5979_v61 = vmul.f32 %v14349_v29, %v5942_v12  ;;  %v5982_v37 = vmul.f32 %v14349_v29, %v5945_v2  ;;  %v5985_v36 = vmul.f32 %v14349_v29, %v5948_v55  ;;  %v5988_v45 = vmul.f32 %v14349_v29, %v5951_v39  ;;  %v11536_v63 = vld [vmem:[%s15616_s1 + $0x1084] ss:$12 sps:$4 sm:$0xff]  }
 0x2a5   :  { %v5991_v26 = vmul.f32 %v14349_v29, %v5954_v17  ;;  %v5994_v35 = vmul.f32 %v14349_v29, %v5957_v62  ;;  %v11534_v62 = vld [vmem:[%s15616_s1 + $0x1080] ss:$12 sps:$4 sm:$0xff]  }
 0x2a6   :  { %v6016_v38 = vadd.f32 %v14353_v19, %v5979_v61  ;;  %v6019_v48 = vadd.f32 %v14353_v19, %v5982_v37  ;;  %v14382_v10 = vadd.f32 %v14353_v19, %v5985_v36  ;;  %v14385_v23 = vadd.f32 %v14353_v19, %v5988_v45  ;;  %v11539_v37 = vld [vmem:[%s15616_s1 + $0x109c] ss:$12 sps:$4 sm:$0xff]   ;;  %v11964_v45 = vld [vmem:[%s15615_s0 + $0x50] ss:$92 sps:$4 sm:$0xff]  }
 0x2a7   :  { %4901 = vmatpush1.bf16.msra.mxu0 %v11513_v41  ;;  %v14388_v57 = vadd.f32 %v14353_v19, %v5994_v35  ;;  %v14394_v50 = vadd.f32 %v14353_v19, %v5991_v26  ;;  %v11965_v26 = vld [vmem:[%s15615_s0 + $0x10c] ss:$92 sps:$4 sm:$0xff]   ;;  %v11537_v35 = vld [vmem:[%s15616_s1 + $0x1098] ss:$12 sps:$4 sm:$0xff]  }
 0x2a8   :  { %4902 = vmatprep.subr.bf16.mxu0 %v11518_v24  ;;  %v6058_v60 = vmin.f32 %v6016_v38, 0.0  ;;  %v6061_v59 = vmin.f32 %v6019_v48, 0.0  ;;  %v6064_v1 = vmin.f32 %v14382_v10, 0.0  ;;  %v6067_v13 = vmin.f32 %v14385_v23, 0.0 }
 0x2a9   :  { %v6073_v5 = vmin.f32 %v14388_v57, 0.0  ;;  %v6070_v8 = vmin.f32 %v14394_v50, 0.0  ;;  %vm6037_vm3 = vcmp.gt.f32.partialorder %v6016_v38, 0.0  ;;  %vm6052_vm4 = vcmp.gt.f32.partialorder %v14388_v57, 0.0 }
 0x2aa   :  { %v6081_v9 = vmul.f32 1.442695, %v6058_v60  ;;  %v6087_v52 = vmul.f32 1.442695, %v6061_v59  ;;  %v6093_v28 = vmul.f32 1.442695, %v6064_v1 }
 0x2ab   :  { %4903 = vmatpush1.bf16.msra.mxu0 %v11516_v43  ;;  %v6111_v15 = vmul.f32 1.442695, %v6073_v5  ;;  %v6099_v18 = vmul.f32 1.442695, %v6067_v13  ;;  %v6105_v20 = vmul.f32 1.442695, %v6070_v8 }
 0x2ac   :  { %4904 = vmatprep.subr.bf16.mxu0 %v11521_v56  ;;  %11866 = vpow2.f32 %v6081_v9  ;;  %vm6040_vm5 = vcmp.gt.f32.partialorder %v6019_v48, 0.0  ;;  %vm6043_vm6 = vcmp.gt.f32.partialorder %v14382_v10, 0.0  ;;  %vm6046_vm7 = vcmp.gt.f32.partialorder %v14385_v23, 0.0  ;;  %v11542_v43 = vld [vmem:[%s15616_s1 + $0x10b4] ss:$12 sps:$4 sm:$0xff]  }
 0x2ad   :  { %11868 = vpow2.f32 %v6111_v15  ;;  %vm6049_vm8 = vcmp.gt.f32.partialorder %v14394_v50, 0.0  ;;  %v11968_v56 = vld [vmem:[%s15615_s0 + $0x1c0] ss:$92 sps:$4 sm:$0xff]   ;;  %v11969_v60 = vld [vmem:[%s15615_s0 + $0x58] ss:$92 sps:$4 sm:$0xff]  }
 0x2ae   :  { %11870 = vpow2.f32 %v6087_v52  ;;  %v11970_v59 = vld [vmem:[%s15615_s0 + $0x110] ss:$92 sps:$4 sm:$0xff]   ;;  %v11546_v9 = vld [vmem:[%s15617_s2] ss:$40 sps:$4 sm:$0xff]   ;;  %v11554_v1 = vld [vmem:[%s15617_s2 + $0x54] ss:$40 sps:$4 sm:$0xff]  }
 0x2af   :  { %4905 = vmatpush1.bf16.msra.mxu0 %v11519_v54  ;;  %11872 = vpow2.f32 %v6093_v28  ;;  %v11548_v5 = vld [vmem:[%s15617_s2 + $0x4] ss:$40 sps:$4 sm:$0xff]   ;;  %v11549_v52 = vld [vmem:[%s15617_s2 + $0x20] ss:$40 sps:$4 sm:$0xff]   ;;  %v11557_v13 = vld [vmem:[%s15617_s2 + $0x74] ss:$40 sps:$4 sm:$0xff]  }
 0x2b0   :  { %4906 = vmatprep.subr.bf16.mxu0 %v11524_v33  ;;  %11874 = vpow2.f32 %v6099_v18  ;;  %v11551_v54 = vld [vmem:[%s15617_s2 + $0x24] ss:$40 sps:$4 sm:$0xff]   ;;  %7346 = vmatprep.subr.bf16.mxu1 %v11548_v5  ;;  %v11552_v15 = vld [vmem:[%s15617_s2 + $0x50] ss:$40 sps:$4 sm:$0xff]   ;;  %v11558_v18 = vld [vmem:[%s15617_s2 + $0xa0] ss:$40 sps:$4 sm:$0xff]  }
 0x2b1   :  { %11876 = vpow2.f32 %v6105_v20  ;;  %7347 = vmatpush1.bf16.msra.mxu1 %v11546_v9  ;;  %v11555_v33 = vld [vmem:[%s15617_s2 + $0x70] ss:$40 sps:$4 sm:$0xff]   ;;  %v11560_v8 = vld [vmem:[%s15617_s2 + $0xa4] ss:$40 sps:$4 sm:$0xff]   ;;  %v11561_v20 = vld [vmem:[%s15617_s2 + $0xc0] ss:$40 sps:$4 sm:$0xff]  }
 0x2b2   :  { %7348 = vmatprep.subr.bf16.mxu1 %v11554_v1  ;;  %v11563_v28 = vld [vmem:[%s15617_s2 + $0xc4] ss:$40 sps:$4 sm:$0xff]   ;;  %v11624_v5 = vld [vmem:[%s15617_s2 + $0x410] ss:$40 sps:$4 sm:$0xff]   ;;  %v11630_v1 = vld [vmem:[%s15617_s2 + $0x460] ss:$40 sps:$4 sm:$0xff]  }
 0x2b3   :  { %4907 = vmatpush1.bf16.msra.mxu0 %v11522_v14  ;;  %v11566_v14 = vld [vmem:[%s15617_s2 + $0xf4] ss:$40 sps:$4 sm:$0xff]   ;;  %v11632_v9 = vld [vmem:[%s15617_s2 + $0x464] ss:$40 sps:$4 sm:$0xff]  }
 0x2b4   :  { %4908 = vmatprep.subr.bf16.mxu0 %v11527_v22  ;;  %v11569_v22 = vld [vmem:[%s15617_s2 + $0x114] ss:$40 sps:$4 sm:$0xff]  }
 0x2b5   :  { %7349 = vmatpush1.bf16.msra.mxu1 %v11552_v15  ;;  %v11638_v15 = vld [vmem:[%s15617_s2 + $0x4b4] ss:$40 sps:$4 sm:$0xff]  }
 0x2b6   :  { %v11867_v30 = vpop.eup %11866  ;;  %7350 = vmatprep.subr.bf16.mxu1 %v11560_v8  ;;  %v11636_v8 = vld [vmem:[%s15617_s2 + $0x4b0] ss:$40 sps:$4 sm:$0xff]  }
 0x2b7   :  { %4909 = vmatpush1.bf16.msra.mxu0 %v11525_v47  ;;  %v11869_v32 = vpop.eup %11868  ;;  %v9647_v34 = vadd.f32 -1.0, %v11867_v30  ;;  %v11564_v47 = vld [vmem:[%s15617_s2 + $0xf0] ss:$40 sps:$4 sm:$0xff]   ;;  %v11572_v30 = vld [vmem:[%s15617_s2 + $0x144] ss:$40 sps:$4 sm:$0xff]  }
 0x2b8   :  { %4910 = vmatprep.subr.bf16.mxu0 %v11530_v44  ;;  %v11871_v25 = vpop.eup %11870  ;;  %v9662_v4 = vadd.f32 -1.0, %v11869_v32  ;;  %v11567_v44 = vld [vmem:[%s15617_s2 + $0x110] ss:$40 sps:$4 sm:$0xff]   ;;  %v11570_v32 = vld [vmem:[%s15617_s2 + $0x140] ss:$40 sps:$4 sm:$0xff]  }
 0x2b9   :  { %v11873_v58 = vpop.eup %11872  ;;  %v9650_v0 = vadd.f32 -1.0, %v11871_v25  ;;  %v6142_v51 = vsel %vm6037_vm3, %v6016_v38, %v9647_v34  ;;  %v11540_v38 = vld [vmem:[%s15616_s1 + $0x10b0] ss:$12 sps:$4 sm:$0xff]   ;;  %7351 = vmatpush1.bf16.msra.mxu1 %v11558_v18  ;;  %v14695_v18 = vsub.s32 0, %v13568_v31 }
 0x2ba   :  { %v11875_v3 = vpop.eup %11874  ;;  %v9653_v42 = vadd.f32 -1.0, %v11873_v58  ;;  %v6157_v41 = vsel %vm6052_vm4, %v14388_v57, %v9662_v4  ;;  %v11543_v57 = vld [vmem:[%s15616_s1 + $0x10c8] ss:$12 sps:$4 sm:$0xff]   ;;  %7352 = vmatprep.subr.bf16.mxu1 %v11566_v14  ;;  %v11576_v4 = vld [vmem:[%s15617_s2 + $0x190] ss:$40 sps:$4 sm:$0xff]  }
 0x2bb   :  { %4911 = vmatpush1.bf16.msra.mxu0 %v11528_v6  ;;  %v11877_v11 = vpop.eup %11876  ;;  %v6145_v46 = vsel %vm6040_vm5, %v6019_v48, %v9650_v0  ;;  %v9656_v12 = vadd.f32 -1.0, %v11875_v3  ;;  %v11545_v48 = vld [vmem:[%s15616_s1 + $0x10cc] ss:$12 sps:$4 sm:$0xff]   ;;  %v11578_v34 = vld [vmem:[%s15617_s2 + $0x194] ss:$40 sps:$4 sm:$0xff]   ;;  %vm7315_vm5 = vcmask 1045504  }
 0x2bc   :  { %4912 = vmatprep.subr.bf16.mxu0 %v11533_v7  ;;  %v14433_v2 = vpack.c.bf16 %v6145_v46, %v6142_v51  ;;  %v6148_v55 = vsel %vm6043_vm6, %v14382_v10, %v9653_v42  ;;  %v9659_v39 = vadd.f32 -1.0, %v11877_v11  ;;  %v11966_v10 = vld [vmem:[%s15615_s0 + $0x108] ss:$92 sps:$4 sm:$0xff]   ;;  %v11581_v25 = vld [vmem:[%s15617_s2 + $0x1b4] ss:$40 sps:$4 sm:$0xff]  }
 0x2bd   :  { %v6151_v17 = vsel %vm6046_vm7, %v14385_v23, %v9656_v12  ;;  %v11967_v23 = vld [vmem:[%s15615_s0 + $0x1c4] ss:$92 sps:$4 sm:$0xff]   ;;  %7353 = vmatpush1.bf16.msra.mxu1 %v11564_v47  ;;  %v11579_v58 = vld [vmem:[%s15617_s2 + $0x1b0] ss:$40 sps:$4 sm:$0xff]   ;;  %v11590_v42 = vld [vmem:[%s15617_s2 + $0x234] ss:$40 sps:$4 sm:$0xff]  }
 0x2be   :  { %v14442_v24 = vpack.c.bf16 %v6151_v17, %v6148_v55  ;;  %v6154_v61 = vsel %vm6049_vm8, %v14394_v50, %v9659_v39  ;;  %v11998_v50 = vmov 0   ;;  %v11575_v6 = vld [vmem:[%s15617_s2 + $0x164] ss:$40 sps:$4 sm:$0xff]   ;;  %v11573_v7 = vld [vmem:[%s15617_s2 + $0x160] ss:$40 sps:$4 sm:$0xff]   ;;  %7354 = vmatprep.subr.bf16.mxu1 %v11572_v30 }
 0x2bf   :  { %4913 = vmatpush1.bf16.msra.mxu0 %v11531_v53  ;;  %v14448_v36 = vpack.c.bf16 %v6157_v41, %v6154_v61  ;;  %v11584_v0 = vld [vmem:[%s15617_s2 + $0x1e4] ss:$40 sps:$4 sm:$0xff]   ;;  %v11582_v3 = vld [vmem:[%s15617_s2 + $0x1e0] ss:$40 sps:$4 sm:$0xff]   ;;  %v11593_v11 = vld [vmem:[%s15617_s2 + $0x254] ss:$40 sps:$4 sm:$0xff]  }
 0x2c0   :  { %4953 = vmatprep.subr.bf16.mxu0 %v11536_v63  ;;  %v11587_v51 = vld [vmem:[%s15617_s2 + $0x204] ss:$40 sps:$4 sm:$0xff]   ;;  %v11585_v53 = vld [vmem:[%s15617_s2 + $0x200] ss:$40 sps:$4 sm:$0xff]   ;;  %v11588_v63 = vld [vmem:[%s15617_s2 + $0x230] ss:$40 sps:$4 sm:$0xff]  }
 0x2c1   :  { %7355 = vmatpush1.bf16.msra.mxu1 %v11570_v32  ;;  %v11591_v46 = vld [vmem:[%s15617_s2 + $0x250] ss:$40 sps:$4 sm:$0xff]   ;;  %v11596_v12 = vld [vmem:[%s15617_s2 + $0x284] ss:$40 sps:$4 sm:$0xff]   ;;  %v11594_v39 = vld [vmem:[%s15617_s2 + $0x280] ss:$40 sps:$4 sm:$0xff]  }
 0x2c2   :  { %4915 = vmatmul.mubr.bf16.vlgmr.msra.gmra.mrb[0].mxu0 %v11964_v45  ;;  %7356 = vmatprep.subr.bf16.mxu1 %v11578_v34  ;;  %v11599_v55 = vld [vmem:[%s15617_s2 + $0x2a4] ss:$40 sps:$4 sm:$0xff]   ;;  %v11597_v41 = vld [vmem:[%s15617_s2 + $0x2a0] ss:$40 sps:$4 sm:$0xff]   ;;  %v11602_v17 = vld [vmem:[%s15617_s2 + $0x2d4] ss:$40 sps:$4 sm:$0xff]  }
 0x2c3   :  { %4924 = vmatprep.mubr.bf16.mxu0 %v11965_v26  ;;  %4954 = vmatpush1.bf16.msra.mxu0 %v11534_v62  ;;  %v11605_v62 = vld [vmem:[%s15617_s2 + $0x2f4] ss:$40 sps:$4 sm:$0xff]   ;;  %v11600_v61 = vld [vmem:[%s15617_s2 + $0x2d0] ss:$40 sps:$4 sm:$0xff]   ;;  %v11608_v45 = vld [vmem:[%s15617_s2 + $0x324] ss:$40 sps:$4 sm:$0xff]  }
 0x2c4   :  { %4955 = vmatprep.subr.bf16.mxu0 %v11539_v37  ;;  %v11603_v37 = vld [vmem:[%s15617_s2 + $0x2f0] ss:$40 sps:$4 sm:$0xff]   ;;  %v11611_v26 = vld [vmem:[%s15617_s2 + $0x344] ss:$40 sps:$4 sm:$0xff]  }
 0x2c5   :  { %7357 = vmatpush1.bf16.msra.mxu1 %v11576_v4  ;;  %v11973_v14 = vld [vmem:[%s15619_s4] ss:$8 sm:$0x7] }
 0x2c6   :  { %7358 = vmatprep.subr.bf16.mxu1 %v11584_v0 }
 0x2c7   :  { %4956 = vmatpush1.bf16.msra.mxu0 %v11537_v35  ;;  %v11606_v35 = vld [vmem:[%s15617_s2 + $0x320] ss:$40 sps:$4 sm:$0xff]  }
 0x2c8   :  { %4957 = vmatprep.subr.bf16.mxu0 %v11542_v43  ;;  %v11609_v43 = vld [vmem:[%s15617_s2 + $0x340] ss:$40 sps:$4 sm:$0xff]  }
 0x2c9   :  { %7359 = vmatpush1.bf16.msra.mxu1 %v11582_v3 }
 0x2ca   :  { %4925 = vmatmul.mubr.bf16.gmra.mrb[4].mxu0 %v11966_v10  ;;  %7360 = vmatprep.subr.bf16.mxu1 %v11590_v42  ;;  %v11612_v10 = vld [vmem:[%s15617_s2 + $0x370] ss:$40 sps:$4 sm:$0xff]  }
 0x2cb   :  { %4934 = vmatprep.mubr.bf16.mxu0 %v11967_v23  ;;  %4958 = vmatpush1.bf16.msra.mxu0 %v11540_v38  ;;  %v11614_v38 = vld [vmem:[%s15617_s2 + $0x374] ss:$40 sps:$4 sm:$0xff]   ;;  %v11615_v23 = vld [vmem:[%s15617_s2 + $0x390] ss:$40 sps:$4 sm:$0xff]  }
 0x2cc   :  { %4959 = vmatprep.subr.bf16.mxu0 %v11545_v48  ;;  %v11617_v48 = vld [vmem:[%s15617_s2 + $0x394] ss:$40 sps:$4 sm:$0xff]  }
 0x2cd   :  { %7361 = vmatpush1.bf16.msra.mxu1 %v11588_v63  ;;  %v11647_v63 = vld [vmem:[%s15617_s2 + $0x524] ss:$40 sps:$4 sm:$0xff]  }
 0x2ce   :  { %7362 = vmatprep.subr.bf16.mxu1 %v11596_v12 }
 0x2cf   :  { %4960 = vmatpush1.bf16.msra.mxu0 %v11543_v57  ;;  %v11620_v57 = vld [vmem:[%s15617_s2 + $0x3c4] ss:$40 sps:$4 sm:$0xff]  }
 0x2d0   :  { %7914 = vmatprep.subr.bf16.mxu0 %v11551_v54  ;;  %v11627_v54 = vld [vmem:[%s15617_s2 + $0x430] ss:$40 sps:$4 sm:$0xff]  }
 0x2d1   :  { %7363 = vmatpush1.bf16.msra.mxu1 %v11594_v39 }
 0x2d2   :  { %4935 = vmatmul.mubr.bf16.gmra.mrb[8].mxu0 %v11968_v56  ;;  %7364 = vmatprep.subr.bf16.mxu1 %v11602_v17  ;;  %v11623_v56 = vld [vmem:[%s15617_s2 + $0x3e4] ss:$40 sps:$4 sm:$0xff]  }
 0x2d3   :  { %4944 = vmatprep.mubr.bf16.mxu0 %v13581_v40  ;;  %v11971_v40 = vld [vmem:[%s15615_s0 + $0x1c8] ss:$92 sps:$4 sm:$0xff]  }
 0x2d5   :  { %7365 = vmatpush1.bf16.msra.mxu1 %v11600_v61 }
 0x2d6   :  { %7366 = vmatprep.subr.bf16.mxu1 %v11608_v45 }
 0x2d9   :  { %7367 = vmatpush1.bf16.msra.mxu1 %v11606_v35 }
 0x2da   :  { %4945 = vmatmul.mubr.bf16.gmra.mrb[12].mxu0 %v13599_v27  ;;  %v11972_v27 = vld [vmem:[%s15615_s0 + $0x280] ss:$0 sps:$4 sm:$0x11]   ;;  %7368 = vmatprep.subr.bf16.mxu1 %v11614_v38 }
 0x2db   :  { %4985 = vmatprep.mubr.bf16.mxu0 %v11998_v50 }
 0x2dd   :  { %7369 = vmatpush1.bf16.msra.mxu1 %v11612_v10 }
 0x2de   :  { %7370 = vmatprep.subr.bf16.mxu1 %v11620_v57 }
 0x2e2   :  { %9637 = vmatmul.mubr.msk.bf16.vlgmr.msra.gmra.mrb[0].mxu0 %vm4159_vm0, %v11969_v60  ;;  %v11618_v60 = vld [vmem:[%s15617_s2 + $0x3c0] ss:$40 sps:$4 sm:$0xff]  }
 0x2e3   :  { %4995 = vmatprep.mubr.bf16.mxu0 %v11998_v50  ;;  %7915 = vmatpush1.bf16.msra.mxu0 %v11549_v52  ;;  %v11635_v52 = vld [vmem:[%s15617_s2 + $0x484] ss:$40 sps:$4 sm:$0xff]  }
 0x2e4   :  { %7916 = vmatprep.subr.bf16.mxu0 %v11557_v13  ;;  %7371 = vmatpush1.bf16.msra.mxu1 %v11618_v60  ;;  %v11633_v13 = vld [vmem:[%s15617_s2 + $0x480] ss:$40 sps:$4 sm:$0xff]  }
 0x2e7   :  { %7917 = vmatpush1.bf16.msra.mxu0 %v11555_v33  ;;  %v11641_v33 = vld [vmem:[%s15617_s2 + $0x4d4] ss:$40 sps:$4 sm:$0xff]  }
 0x2e8   :  { %7918 = vmatprep.subr.bf16.mxu0 %v11563_v28  ;;  %v11639_v28 = vld [vmem:[%s15617_s2 + $0x4d0] ss:$40 sps:$4 sm:$0xff]  }
 0x2ea   :  { %9638 = vmatmul.mubr.msk.bf16.gmra.mrb[4].mxu0 %vm4159_vm0, %v11970_v59  ;;  %v11621_v59 = vld [vmem:[%s15617_s2 + $0x3e0] ss:$40 sps:$4 sm:$0xff]  }
 0x2eb   :  { %5005 = vmatprep.mubr.bf16.mxu0 %v11998_v50  ;;  %7919 = vmatpush1.bf16.msra.mxu0 %v11561_v20  ;;  %v14698_v20 = vsub.s32 1, %v13568_v31 }
 0x2ec   :  { %7920 = vmatprep.subr.bf16.mxu0 %v11569_v22  ;;  %v842_v22 = vrot.slane %v11973_v14, %v14695_v18 }
 0x2ef   :  { %7921 = vmatpush1.bf16.msra.mxu0 %v11567_v44  ;;  %v846_v44 = vrot.slane %v11973_v14, %v14698_v20 }
 0x2f0   :  { %7922 = vmatprep.subr.bf16.mxu0 %v11575_v6 }
 0x2f2   :  { %9639 = vmatmul.mubr.msk.bf16.gmra.mrb[8].mxu0 %vm4159_vm0, %v11971_v40  ;;  %v11626_v40 = vld [vmem:[%s15617_s2 + $0x414] ss:$40 sps:$4 sm:$0xff]  }
 0x2f3   :  { %5015 = vmatprep.mubr.bf16.mxu0 %v11998_v50  ;;  %7923 = vmatpush1.bf16.msra.mxu0 %v11573_v7 }
 0x2f4   :  { %7924 = vmatprep.subr.bf16.mxu0 %v11581_v25  ;;  %7372 = vmatprep.subr.bf16.mxu1 %v11626_v40 }
 0x2f5   :  { %7373 = vmatpush1.bf16.msra.mxu1 %v11624_v5 }
 0x2f6   :  { %7374 = vmatprep.subr.bf16.mxu1 %v11632_v9 }
 0x2f7   :  { %7925 = vmatpush1.bf16.msra.mxu0 %v11579_v58 }
 0x2f8   :  { %7926 = vmatprep.subr.bf16.mxu0 %v11587_v51 }
 0x2f9   :  { %7375 = vmatpush1.bf16.msra.mxu1 %v11630_v1 }
 0x2fa   :  { %9640 = vmatmul.mubr.msk.bf16.gmra.mrb[12].mxu0 %vm4159_vm0, %v11972_v27  ;;  %v11629_v27 = vld [vmem:[%s15617_s2 + $0x434] ss:$40 sps:$4 sm:$0xff]   ;;  %7376 = vmatprep.subr.bf16.mxu1 %v11638_v15 }
 0x2fb   :  { %7927 = vmatpush1.bf16.msra.mxu0 %v11585_v53  ;;  %v11644_v53 = vld [vmem:[%s15617_s2 + $0x504] ss:$40 sps:$4 sm:$0xff]  }
 0x2fc   :  { %7928 = vmatprep.subr.bf16.mxu0 %v11593_v11 }
 0x2fd   :  { %7377 = vmatpush1.bf16.msra.mxu1 %v11636_v8 }
 0x2fe   :  { %7417 = vmatprep.subr.bf16.mxu1 %v11644_v53 }
 0x2ff   :  { %7929 = vmatpush1.bf16.msra.mxu0 %v11591_v46 }
 0x300   :  { %7930 = vmatprep.subr.bf16.mxu0 %v11599_v55 }
 0x303   :  { %7931 = vmatpush1.bf16.msra.mxu0 %v11597_v41 }
 0x304   :  { %7932 = vmatprep.subr.bf16.mxu0 %v11605_v62 }
 0x307   :  { %7933 = vmatpush1.bf16.msra.mxu0 %v11603_v37 }
 0x308   :  { %7934 = vmatprep.subr.bf16.mxu0 %v11611_v26 }
 0x30b   :  { %7935 = vmatpush1.bf16.msra.mxu0 %v11609_v43 }
 0x30c   :  { %7936 = vmatprep.subr.bf16.mxu0 %v11617_v48 }
 0x30f   :  { %7937 = vmatpush1.bf16.msra.mxu0 %v11615_v23 }
 0x310   :  { %7938 = vmatprep.subr.bf16.mxu0 %v11623_v56 }
 0x313   :  { %7939 = vmatpush1.bf16.msra.mxu0 %v11621_v59 }
 0x314   :  { %7940 = vmatprep.subr.bf16.mxu0 %v11629_v27 }
 0x317   :  { %7941 = vmatpush1.bf16.msra.mxu0 %v11627_v54 }
 0x318   :  { %7942 = vmatprep.subr.bf16.mxu0 %v11635_v52 }
 0x31b   :  { %7943 = vmatpush1.bf16.msra.mxu0 %v11633_v13 }
 0x31c   :  { %7944 = vmatprep.subr.bf16.mxu0 %v11641_v33 }
 0x31f   :  { %7945 = vmatpush1.bf16.msra.mxu0 %v11639_v28 }
 0x320   :  { %7985 = vmatprep.subr.bf16.mxu0 %v11647_v63 }
 0x3b5   :  { %v4987_v47 = vpop.f32.mrb[0].mxu0 }
 0x3b6   :  { %v4989_v30 = vpop.f32.mrb[1].mxu0  ;;  %v10426_v32 = vadd.f32 %v4987_v47, %v842_v22 }
 0x3b7   :  { %v4991_v6 = vpop.f32.mrb[2].mxu0  ;;  %v14705_v25 = vadd.f32 %v4989_v30, %v846_v44 }
 0x3b8   :  { %v10428_v7 = vadd.f32 %v4991_v6, %v842_v22  ;;  %v4993_v34 = vpop.f32.mrb[3].mxu0 }
 0x3b9   :  { %v14707_v4 = vadd.f32 %v4993_v34, %v846_v44 }
 0x3ba   :  { %v5792_v31 = vadd.f32 %v10428_v7, %v10426_v32 }
 0x3bb   :  { %v5806_v58 = vadd.f32 %v14707_v4, %v14705_v25 }
 0x3bd   :  { %v4997_v0 = vpop.f32.mrb[4].mxu0 }
 0x3be   :  { %v10430_v51 = vadd.f32 %v4997_v0, %v842_v22  ;;  %v4999_v3 = vpop.f32.mrb[5].mxu0 }
 0x3bf   :  { %v10431_v42 = vadd.f32 %v4999_v3, %v846_v44  ;;  %v5001_v11 = vpop.f32.mrb[6].mxu0 }
 0x3c0   :  { %v5793_v46 = vadd.f32 %v10430_v51, %v5792_v31  ;;  %v10432_v12 = vadd.f32 %v5001_v11, %v842_v22  ;;  %v5003_v55 = vpop.f32.mrb[7].mxu0 }
 0x3c1   :  { %v5807_v39 = vadd.f32 %v10431_v42, %v5806_v58  ;;  %v10433_v41 = vadd.f32 %v5003_v55, %v846_v44 }
 0x3c2   :  { %v5794_v17 = vadd.f32 %v10432_v12, %v5793_v46 }
 0x3c3   :  { %v5808_v62 = vadd.f32 %v10433_v41, %v5807_v39 }
 0x3c5   :  { %v5007_v61 = vpop.f32.mrb[8].mxu0 }
 0x3c6   :  { %v10434_v37 = vadd.f32 %v5007_v61, %v842_v22  ;;  %v5009_v45 = vpop.f32.mrb[9].mxu0 }
 0x3c7   :  { %v10435_v26 = vadd.f32 %v5009_v45, %v846_v44  ;;  %v5011_v35 = vpop.f32.mrb[10].mxu0 }
 0x3c8   :  { %v5795_v43 = vadd.f32 %v10434_v37, %v5794_v17  ;;  %v10436_v38 = vadd.f32 %v5011_v35, %v842_v22  ;;  %v5013_v48 = vpop.f32.mrb[11].mxu0 }
 0x3c9   :  { %v5809_v10 = vadd.f32 %v10435_v26, %v5808_v62  ;;  %v10437_v23 = vadd.f32 %v5013_v48, %v846_v44 }
 0x3ca   :  { %v5796_v57 = vadd.f32 %v10436_v38, %v5795_v43 }
 0x3cb   :  { %v5810_v56 = vadd.f32 %v10437_v23, %v5809_v10 }
 0x3cd   :  { %v5017_v60 = vpop.f32.mrb[12].mxu0 }
 0x3ce   :  { %v10438_v59 = vadd.f32 %v5017_v60, %v842_v22  ;;  %v5019_v40 = vpop.f32.mrb[13].mxu0 }
 0x3cf   :  { %v10439_v27 = vadd.f32 %v5019_v40, %v846_v44  ;;  %v5021_v5 = vpop.f32.mrb[14].mxu0 }
 0x3d0   :  { %v5798_v54 = vsel %vm5797_vm9, %v10438_v59, 0.0  ;;  %v5022_v9 = vpop.f32.mrb[15].mxu0 }
 0x3d1   :  { %v5799_v52 = vadd.f32 %v5798_v54, %v5796_v57  ;;  %v5811_v1 = vsel %vm5797_vm9, %v10439_v27, 0.0 }
 0x3d2   :  { %v5812_v13 = vadd.f32 %v5811_v1, %v5810_v56 }
 0x3d3   :  { %v5800_v15 = vrot.slane %v5799_v52, 4 }
 0x3d4   :  { %v5813_v33 = vrot.slane %v5812_v13, 4 }
 0x3d5   :  { %v5801_v8 = vadd.f32 %v5800_v15, %v5799_v52 }
 0x3d6   :  { %v5814_v28 = vadd.f32 %v5813_v33, %v5812_v13 }
 0x3d7   :  { %v5802_v14 = vrot.slane %v5801_v8, 2 }
 0x3d8   :  { %v5815_v47 = vrot.slane %v5814_v28, 2 }
 0x3d9   :  { %v5803_v30 = vadd.f32 %v5802_v14, %v5801_v8 }
 0x3da   :  { %v5816_v6 = vadd.f32 %v5815_v47, %v5814_v28 }
 0x3db   :  { %v5804_v34 = vrot.slane %v5803_v30, 1 }
 0x3dc   :  { %v5817_v22 = vrot.slane %v5816_v6, 1 }
 0x3dd   :  { %v5805_v31 = vadd.f32 %v5804_v34, %v5803_v30 }
 0x3de   :  { %v5818_v44 = vadd.f32 %v5817_v22, %v5816_v6 }
 0x3df   :  { %v5841_v58 = vmul.f32 0.02, %v5805_v31 }
 0x3e0   :  { %v5842_v0 = vmul.f32 0.02, %v5818_v44 }
 0x3e1   :  { %v14719_v3 = vsub.f32 %v10426_v32, %v5841_v58  ;;  %v14721_v53 = vsub.f32 %v10428_v7, %v5841_v58  ;;  %v14723_v11 = vsub.f32 %v10430_v51, %v5841_v58  ;;  %v5853_v63 = vsub.f32 %v10432_v12, %v5841_v58 }
 0x3e2   :  { %v5856_v46 = vsub.f32 %v10434_v37, %v5841_v58  ;;  %v5859_v55 = vsub.f32 %v10436_v38, %v5841_v58  ;;  %v5862_v39 = vsub.f32 %v10438_v59, %v5841_v58  ;;  %v14726_v17 = vsub.f32 %v14705_v25, %v5842_v0 }
 0x3e3   :  { %v5865_v62 = vmul.f32 %v14719_v3, %v14719_v3  ;;  %v5868_v61 = vmul.f32 %v14721_v53, %v14721_v53  ;;  %v5871_v32 = vmul.f32 %v14723_v11, %v14723_v11  ;;  %v14735_v7 = vsub.f32 %v14707_v4, %v5842_v0 }
 0x3e4   :  { %v14737_v12 = vsub.f32 %v10431_v42, %v5842_v0  ;;  %v5854_v37 = vsub.f32 %v10433_v41, %v5842_v0  ;;  %v5857_v45 = vsub.f32 %v10435_v26, %v5842_v0  ;;  %v5860_v35 = vsub.f32 %v10437_v23, %v5842_v0 }
 0x3e5   :  { %v5886_v51 = vadd.f32 %v5868_v61, %v5865_v62  ;;  %v5863_v25 = vsub.f32 %v10439_v27, %v5842_v0  ;;  %v5866_v43 = vmul.f32 %v14726_v17, %v14726_v17  ;;  %v5874_v38 = vmul.f32 %v5853_v63, %v5853_v63 }
 0x3e6   :  { %v5869_v10 = vmul.f32 %v14735_v7, %v14735_v7  ;;  %v5877_v57 = vmul.f32 %v5856_v46, %v5856_v46  ;;  %v5872_v4 = vmul.f32 %v14737_v12, %v14737_v12  ;;  %v5883_v42 = vmul.f32 %v5862_v39, %v5862_v39 }
 0x3e7   :  { %v5887_v48 = vadd.f32 %v5886_v51, %v5871_v32  ;;  %v5880_v59 = vmul.f32 %v5859_v55, %v5859_v55  ;;  %v5875_v26 = vmul.f32 %v5854_v37, %v5854_v37  ;;  %v5878_v27 = vmul.f32 %v5857_v45, %v5857_v45 }
 0x3e8   :  { %v5899_v60 = vadd.f32 %v5869_v10, %v5866_v43  ;;  %v5891_v54 = vsel %vm5797_vm9, %v5883_v42, 0.0  ;;  %v5884_v9 = vmul.f32 %v5863_v25, %v5863_v25  ;;  %v5881_v1 = vmul.f32 %v5860_v35, %v5860_v35 }
 0x3e9   :  { %v5888_v56 = vadd.f32 %v5887_v48, %v5874_v38  ;;  %v5965_v48 = vrot.slane %v14334_v16, %v14695_v18 }
 0x3ea   :  { %v5900_v23 = vadd.f32 %v5899_v60, %v5872_v4  ;;  %v5904_v8 = vsel %vm5797_vm9, %v5884_v9, 0.0  ;;  %v14751_v60 = vrot.slane %v14339_v21, %v14695_v18 }
 0x3eb   :  { %v5889_v41 = vadd.f32 %v5888_v56, %v5877_v57 }
 0x3ec   :  { %v5901_v5 = vadd.f32 %v5900_v23, %v5875_v26  ;;  %v5969_v23 = vrot.slane %v14334_v16, %v14698_v20 }
 0x3ed   :  { %v5890_v40 = vadd.f32 %v5889_v41, %v5880_v59 }
 0x3ee   :  { %v5902_v13 = vadd.f32 %v5901_v5, %v5878_v27 }
 0x3ef   :  { %v5892_v52 = vadd.f32 %v5891_v54, %v5890_v40 }
 0x3f0   :  { %v5903_v33 = vadd.f32 %v5902_v13, %v5881_v1 }
 0x3f1   :  { %v5893_v15 = vrot.slane %v5892_v52, 4 }
 0x3f2   :  { %v5905_v14 = vadd.f32 %v5904_v8, %v5903_v33 }
 0x3f3   :  { %v5894_v28 = vadd.f32 %v5893_v15, %v5892_v52 }
 0x3f4   :  { %v5906_v30 = vrot.slane %v5905_v14, 4 }
 0x3f5   :  { %v5895_v47 = vrot.slane %v5894_v28, 2 }
 0x3f6   :  { %v5907_v34 = vadd.f32 %v5906_v30, %v5905_v14 }
 0x3f7   :  { %v5896_v6 = vadd.f32 %v5895_v47, %v5894_v28 }
 0x3f8   :  { %v5908_v31 = vrot.slane %v5907_v34, 2 }
 0x3f9   :  { %v5897_v22 = vrot.slane %v5896_v6, 1 }
 0x3fa   :  { %v5909_v58 = vadd.f32 %v5908_v31, %v5907_v34 }
 0x3fb   :  { %v5898_v44 = vadd.f32 %v5897_v22, %v5896_v6 }
 0x3fc   :  { %v5910_v62 = vrot.slane %v5909_v58, 1 }
 0x3fd   :  { %v5931_v0 = vmul.f32 0.02, %v5898_v44 }
 0x3fe   :  { %v5911_v32 = vadd.f32 %v5910_v62, %v5909_v58 }
 0x3ff   :  { %v5934_v61 = vadd.f32 0.001, %v5931_v0 }
 0x400   :  { %v5932_v51 = vmul.f32 0.02, %v5911_v32 }
 0x401   :  { %11878 = vrsqrt.f32 %v5934_v61 }
 0x402   :  { %v5935_v43 = vadd.f32 0.001, %v5932_v51 }
 0x404   :  { %11880 = vrsqrt.f32 %v5935_v43 }
 0x40b   :  { %v11879_v38 = vpop.eup %11878 }
 0x40c   :  { %v5949_v10 = vmul.f32 %v11879_v38, %v5853_v63  ;;  %v5952_v57 = vmul.f32 %v11879_v38, %v5856_v46  ;;  %v5955_v56 = vmul.f32 %v11879_v38, %v5859_v55  ;;  %v5958_v4 = vmul.f32 %v11879_v38, %v5862_v39 }
 0x40d   :  { %v5940_v42 = vmul.f32 %v11879_v38, %v14719_v3  ;;  %v5943_v59 = vmul.f32 %v11879_v38, %v14721_v53  ;;  %v5946_v41 = vmul.f32 %v11879_v38, %v14723_v11  ;;  %v6006_v39 = vrot.slane %v14339_v21, %v14698_v20 }
 0x40e   :  { %v11881_v26 = vpop.eup %11880  ;;  %v5986_v52 = vmul.f32 %v5965_v48, %v5949_v10  ;;  %v5989_v13 = vmul.f32 %v5965_v48, %v5952_v57  ;;  %v5992_v22 = vmul.f32 %v5965_v48, %v5955_v56  ;;  %v5995_v44 = vmul.f32 %v5965_v48, %v5958_v4 }
 0x40f   :  { %v5977_v40 = vmul.f32 %v5965_v48, %v5940_v42  ;;  %v5980_v27 = vmul.f32 %v5965_v48, %v5943_v59  ;;  %v5950_v63 = vmul.f32 %v11881_v26, %v5854_v37  ;;  %v5953_v46 = vmul.f32 %v11881_v26, %v5857_v45 }
 0x410   :  { %v5956_v55 = vmul.f32 %v11881_v26, %v5860_v35  ;;  %v5959_v18 = vmul.f32 %v11881_v26, %v5863_v25  ;;  %v5941_v5 = vmul.f32 %v11881_v26, %v14726_v17  ;;  %v5944_v3 = vmul.f32 %v11881_v26, %v14735_v7 }
 0x411   :  { %v14763_v53 = vadd.f32 %v14751_v60, %v5977_v40  ;;  %v14766_v11 = vadd.f32 %v14751_v60, %v5980_v27  ;;  %v5947_v20 = vmul.f32 %v11881_v26, %v14737_v12  ;;  %v5983_v17 = vmul.f32 %v5965_v48, %v5946_v41 }
 0x412   :  { %v5978_v16 = vmul.f32 %v5969_v23, %v5941_v5  ;;  %v5981_v54 = vmul.f32 %v5969_v23, %v5944_v3  ;;  %v5987_v9 = vmul.f32 %v5969_v23, %v5950_v63  ;;  %v5996_v1 = vmul.f32 %v5969_v23, %v5959_v18 }
 0x413   :  { %v6056_v37 = vmin.f32 %v14763_v53, 0.0  ;;  %v6059_v45 = vmin.f32 %v14766_v11, 0.0  ;;  %v5984_v8 = vmul.f32 %v5969_v23, %v5947_v20  ;;  %v5993_v28 = vmul.f32 %v5969_v23, %v5956_v55 }
 0x414   :  { %v14770_v35 = vadd.f32 %v6006_v39, %v5978_v16  ;;  %v14772_v21 = vadd.f32 %v6006_v39, %v5981_v54  ;;  %v14777_v14 = vadd.f32 %v6006_v39, %v5987_v9  ;;  %v14780_v47 = vadd.f32 %v14751_v60, %v5983_v17 }
 0x415   :  { %v6077_v7 = vmul.f32 1.442695, %v6056_v37  ;;  %v6083_v25 = vmul.f32 1.442695, %v6059_v45  ;;  %v14782_v6 = vadd.f32 %v6006_v39, %v5984_v8  ;;  %v14785_v34 = vadd.f32 %v14751_v60, %v5986_v52  ;;  %v11642_v8 = vld [vmem:[%s15617_s2 + $0x500] ss:$40 sps:$4 sm:$0xff]  }
 0x416   :  { %v6057_v15 = vmin.f32 %v14770_v35, 0.0  ;;  %v6060_v33 = vmin.f32 %v14772_v21, 0.0  ;;  %v6066_v31 = vmin.f32 %v14777_v14, 0.0  ;;  %v14788_v58 = vadd.f32 %v6006_v39, %v5996_v1 }
 0x417   :  { %11882 = vpow2.f32 %v6077_v7  ;;  %v6063_v0 = vmin.f32 %v14782_v6, 0.0  ;;  %v6062_v61 = vmin.f32 %v14780_v47, 0.0  ;;  %v6065_v32 = vmin.f32 %v14785_v34, 0.0 }
 0x418   :  { %11884 = vpow2.f32 %v6083_v25  ;;  %v6079_v12 = vmul.f32 1.442695, %v6057_v15  ;;  %v6085_v30 = vmul.f32 1.442695, %v6060_v33  ;;  %v6097_v62 = vmul.f32 1.442695, %v6066_v31 }
 0x419   :  { %v6091_v51 = vmul.f32 1.442695, %v6063_v0  ;;  %v5990_v43 = vmul.f32 %v5969_v23, %v5953_v46  ;;  %v14793_v38 = vadd.f32 %v6006_v39, %v5993_v28  ;;  %v14796_v10 = vadd.f32 %v14751_v60, %v5989_v13  ;;  %v11645_v28 = vld [vmem:[%s15617_s2 + $0x520] ss:$40 sps:$4 sm:$0xff]   ;;  %v11653_v0 = vld [vmem:[%s15617_s2 + $0x574] ss:$40 sps:$4 sm:$0xff]  }
 0x41a   :  { %11886 = vpow2.f32 %v6079_v12  ;;  %v6089_v48 = vmul.f32 1.442695, %v6062_v61  ;;  %v6095_v57 = vmul.f32 1.442695, %v6065_v32  ;;  %v14799_v56 = vadd.f32 %v14751_v60, %v5992_v22  ;;  %v11648_v61 = vld [vmem:[%s15617_s2 + $0x550] ss:$40 sps:$4 sm:$0xff]  }
 0x41b   :  { %11888 = vpow2.f32 %v6085_v30  ;;  %v14801_v4 = vadd.f32 %v6006_v39, %v5990_v43  ;;  %v6072_v42 = vmin.f32 %v14793_v38, 0.0  ;;  %v6075_v59 = vmin.f32 %v14788_v58, 0.0  ;;  %v11654_v32 = vld [vmem:[%s15617_s2 + $0x5a4] ss:$40 sps:$4 sm:$0x3f]  }
 0x41c   :  { %11890 = vpow2.f32 %v6097_v62  ;;  %v6068_v41 = vmin.f32 %v14796_v10, 0.0  ;;  %v14807_v23 = vadd.f32 %v14751_v60, %v5995_v44  ;;  %vm6035_vm10 = vcmp.gt.f32.partialorder %v14763_v53, 0.0  ;;  %v11650_v44 = vld [vmem:[%s15617_s2 + $0x554] ss:$40 sps:$4 sm:$0xff]  }
 0x41d   :  { %11892 = vpow2.f32 %v6091_v51  ;;  %v6069_v40 = vmin.f32 %v14801_v4, 0.0  ;;  %v6109_v27 = vmul.f32 1.442695, %v6072_v42  ;;  %v6071_v55 = vmin.f32 %v14799_v56, 0.0 }
 0x41e   :  { %11894 = vpow2.f32 %v6089_v48  ;;  %v6101_v39 = vmul.f32 1.442695, %v6068_v41  ;;  %vm6038_vm11 = vcmp.gt.f32.partialorder %v14766_v11, 0.0  ;;  %v6115_v3 = vmul.f32 1.442695, %v6075_v59 }
 0x41f   :  { %11896 = vpow2.f32 %v6095_v57  ;;  %v6103_v5 = vmul.f32 1.442695, %v6069_v40  ;;  %v6107_v16 = vmul.f32 1.442695, %v6071_v55  ;;  %v6074_v7 = vmin.f32 %v14807_v23, 0.0 }
 0x420   :  { %11898 = vpow2.f32 %v6109_v27  ;;  %vm6036_vm12 = vcmp.gt.f32.partialorder %v14770_v35, 0.0  ;;  %vm6039_vm13 = vcmp.gt.f32.partialorder %v14772_v21, 0.0  ;;  %vm6045_vm14 = vcmp.gt.f32.partialorder %v14777_v14, 0.0  ;;  %v11651_v57 = vld [vmem:[%s15617_s2 + $0x570] ss:$40 sps:$4 sm:$0xff]  }
 0x421   :  { %v11883_v26 = vpop.eup %11882  ;;  %11900 = vpow2.f32 %v6101_v39  ;;  %vm6042_vm15 = vcmp.gt.f32.partialorder %v14782_v6, 0.0  ;;  %vm6041_vm0 = vcmp.gt.f32.partialorder %v14780_v47, 0.0  ;;  %vm6044_vm2 = vcmp.gt.f32.partialorder %v14785_v34, 0.0  ;;  %v11657_v41 = vld [vmem:[%s15617_s2 + $0x5c4] ss:$40 sps:$4 sm:$0x3f]  }
 0x422   :  { %v11885_v63 = vpop.eup %11884  ;;  %v9645_v46 = vadd.f32 -1.0, %v11883_v26  ;;  %11902 = vpow2.f32 %v6103_v5  ;;  %vm6051_vm3 = vcmp.gt.f32.partialorder %v14793_v38, 0.0  ;;  %vm6047_vm4 = vcmp.gt.f32.partialorder %v14796_v10, 0.0 }
 0x423   :  { %v9648_v18 = vadd.f32 -1.0, %v11885_v63  ;;  %11904 = vpow2.f32 %v6107_v16  ;;  %v11659_v63 = vld [vmem:[%s15617_s2 + $0x5c0] ss:$40 sps:$4 sm:$0x3f]   ;;  %vm6048_vm6 = vcmp.gt.f32.partialorder %v14801_v4, 0.0  ;;  %vm6050_vm7 = vcmp.gt.f32.partialorder %v14799_v56, 0.0 }
 0x424   :  { %v6140_v60 = vsel %vm6035_vm10, %v14763_v53, %v9645_v46  ;;  %v11887_v54 = vpop.eup %11886  ;;  %11906 = vpow2.f32 %v6115_v3  ;;  %vm6054_vm8 = vcmp.gt.f32.partialorder %v14788_v58, 0.0  ;;  %vm6053_vm10 = vcmp.gt.f32.partialorder %v14807_v23, 0.0 }
 0x425   :  { %v6143_v37 = vsel %vm6038_vm11, %v14766_v11, %v9648_v18  ;;  %v11889_v45 = vpop.eup %11888  ;;  %v9646_v20 = vadd.f32 -1.0, %v11887_v54 }
 0x426   :  { %v14815_v17 = vpack.c.bf16 %v6143_v37, %v6140_v60  ;;  %v9649_v25 = vadd.f32 -1.0, %v11889_v45  ;;  %v11891_v9 = vpop.eup %11890 }
 0x427   :  { %v6141_v53 = vsel %vm6036_vm12, %v14770_v35, %v9646_v20  ;;  %v11893_v52 = vpop.eup %11892  ;;  %v9655_v1 = vadd.f32 -1.0, %v11891_v9  ;;  %v6113_v35 = vmul.f32 1.442695, %v6074_v7  ;;  %v5997_v20 = vmul.f32 %v14349_v29, %v14365_v49  ;;  %v11660_v29 = vld [vmem:[%s15617_s2 + $0x8] ss:$40 sps:$4 sm:$0xff]  }
 0x428   :  { %v6144_v11 = vsel %vm6039_vm13, %v14772_v21, %v9649_v25  ;;  %v11895_v13 = vpop.eup %11894  ;;  %v9652_v33 = vadd.f32 -1.0, %v11893_v52  ;;  %v11665_v49 = vld [vmem:[%s15617_s2 + $0x5c] ss:$40 sps:$4 sm:$0xff]   ;;  %v11666_v52 = vld [vmem:[%s15617_s2 + $0xa8] ss:$40 sps:$4 sm:$0xff]   ;;  %vm8144_vm12 = vcmask 1046528  }
 0x429   :  { %v14822_v15 = vpack.c.bf16 %v6144_v11, %v6141_v53  ;;  %v11897_v12 = vpop.eup %11896  ;;  %v6150_v21 = vsel %vm6045_vm14, %v14777_v14, %v9655_v1  ;;  %v9651_v30 = vadd.f32 -1.0, %v11895_v13  ;;  %11908 = vpow2.f32 %v6113_v35  ;;  %v11668_v53 = vld [vmem:[%s15617_s2 + $0xac] ss:$40 sps:$4 sm:$0xff]   ;;  %v11671_v11 = vld [vmem:[%s15617_s2 + $0xfc] ss:$40 sps:$4 sm:$0xff]  }
 0x42a   :  { %v6147_v22 = vsel %vm6042_vm15, %v14782_v6, %v9652_v33  ;;  %v9654_v31 = vadd.f32 -1.0, %v11897_v12  ;;  %v11899_v62 = vpop.eup %11898  ;;  %v11669_v1 = vld [vmem:[%s15617_s2 + $0xf8] ss:$40 sps:$4 sm:$0xff]   ;;  %v11674_v13 = vld [vmem:[%s15617_s2 + $0x14c] ss:$40 sps:$4 sm:$0xff]   ;;  %vm8215_vm13 = vcmask 1044480  }
 0x42b   :  { %7378 = vmatprep.mubr.bf16.mxu1 %v14822_v15  ;;  %7946 = vmatprep.mubr.bf16.mxu0 %v14822_v15  ;;  %v14845_v14 = vpack.c.bf16 %v6150_v21, %v6147_v22  ;;  %v6146_v6 = vsel %vm6041_vm0, %v14780_v47, %v9651_v30  ;;  %v11901_v51 = vpop.eup %11900  ;;  %v9661_v48 = vadd.f32 -1.0, %v11899_v62  ;;  %v11656_v47 = vld [vmem:[%s15617_s2 + $0x5a0] ss:$40 sps:$4 sm:$0x3f]   ;;  %v11680_v21 = vld [vmem:[%s15617_s2 + $0x1ec] ss:$40 sps:$4 sm:$0xff]  }
 0x42c   :  { %7379 = vmatmul.mubr.bf16.vlgmr.msra.gmra.mrb[184].mxu1 %v14815_v17  ;;  %7947 = vmatmul.mubr.bf16.vlgmr.msra.gmra.mrb[16].mxu0 %v14815_v17  ;;  %v6149_v43 = vsel %vm6044_vm2, %v14785_v34, %v9654_v31  ;;  %v11903_v42 = vpop.eup %11902  ;;  %v9657_v34 = vadd.f32 -1.0, %v11901_v51  ;;  %v7317_v60 = vsel %vm7315_vm5, %v11656_v47, 0  ;;  %v11675_v35 = vld [vmem:[%s15617_s2 + $0x198] ss:$40 sps:$4 sm:$0xff]   ;;  %v11678_v22 = vld [vmem:[%s15617_s2 + $0x1e8] ss:$40 sps:$4 sm:$0xff]  }
 0x42d   :  { %7418 = vmatpush1.bf16.msra.mxu1 %v11642_v8  ;;  %7986 = vmatpush1.bf16.msra.mxu0 %v11645_v28  ;;  %v14864_v59 = vpack.c.bf16 %v6149_v43, %v6146_v6  ;;  %v11905_v26 = vpop.eup %11904  ;;  %v9658_v40 = vadd.f32 -1.0, %v11903_v42  ;;  %v6156_v27 = vsel %vm6051_vm3, %v14793_v38, %v9661_v48  ;;  %v11672_v8 = vld [vmem:[%s15617_s2 + $0x148] ss:$40 sps:$4 sm:$0xff]   ;;  %v11677_v28 = vld [vmem:[%s15617_s2 + $0x19c] ss:$40 sps:$4 sm:$0xff]   ;;  %vm8287_vm14 = vcmask 1042432  }
 0x42e   :  { %7388 = vmatprep.mubr.bf16.mxu1 %v14845_v14  ;;  %7956 = vmatprep.mubr.bf16.mxu0 %v14845_v14  ;;  %v9660_v46 = vadd.f32 -1.0, %v11905_v26  ;;  %v6152_v55 = vsel %vm6047_vm4, %v14796_v10, %v9657_v34  ;;  %v11907_v39 = vpop.eup %11906  ;;  %v7341_v10 = vsel %vm7315_vm5, %v11659_v63, 0  ;;  %v11686_v62 = vld [vmem:[%s15617_s2 + $0x28c] ss:$40 sps:$4 sm:$0xff]   ;;  %v11684_v6 = vld [vmem:[%s15617_s2 + $0x288] ss:$40 sps:$4 sm:$0xff]  }
 0x42f   :  { %7419 = vmatprep.subr.bf16.mxu1 %v11650_v44  ;;  %7987 = vmatprep.subr.bf16.mxu0 %v11653_v0  ;;  %v6153_v18 = vsel %vm6048_vm6, %v14801_v4, %v9658_v40  ;;  %v11662_v4 = vld [vmem:[%s15617_s2 + $0xc] ss:$40 sps:$4 sm:$0xff]   ;;  %v9664_v16 = vadd.f32 -1.0, %v11907_v39  ;;  %v11683_v44 = vld [vmem:[%s15617_s2 + $0x23c] ss:$40 sps:$4 sm:$0xff]   ;;  %vm8437_vm15 = vcmask 334848  }
 0x430   :  { %v14879_v38 = vpack.c.bf16 %v6156_v27, %v6153_v18  ;;  %v6155_v5 = vsel %vm6050_vm7, %v14799_v56, %v9660_v46  ;;  %v11681_v0 = vld [vmem:[%s15617_s2 + $0x238] ss:$40 sps:$4 sm:$0xff]   ;;  %v11692_v51 = vld [vmem:[%s15617_s2 + $0x32c] ss:$40 sps:$4 sm:$0xff]   ;;  %v11690_v43 = vld [vmem:[%s15617_s2 + $0x328] ss:$40 sps:$4 sm:$0xff]  }
 0x431   :  { %7420 = vmatpush1.bf16.msra.mxu1 %v11648_v61  ;;  %7988 = vmatpush1.bf16.msra.mxu0 %v11651_v57  ;;  %v14884_v3 = vpack.c.bf16 %v6155_v5, %v6152_v55  ;;  %v6159_v54 = vsel %vm6054_vm8, %v14788_v58, %v9664_v16  ;;  %v6034_v58 = vadd.f32 %v14353_v19, %v5997_v20  ;;  %v11663_v19 = vld [vmem:[%s15617_s2 + $0x58] ss:$40 sps:$4 sm:$0xff]   ;;  %v11689_v61 = vld [vmem:[%s15617_s2 + $0x2dc] ss:$40 sps:$4 sm:$0xff]   ;;  %v11698_v47 = vld [vmem:[%s15617_s2 + $0x3cc] ss:$40 sps:$4 sm:$0xff]  }
 0x432   :  { %9856 = vmatprep.subr.msk.bf16.mxu1 %vm7315_vm5, %v11654_v32  ;;  %9876 = vmatprep.subr.msk.bf16.mxu0 %vm7315_vm5, %v11657_v41  ;;  %v14897_v37 = vpack.c.bf16 %v6159_v54, %v6159_v54  ;;  %v11687_v32 = vld [vmem:[%s15617_s2 + $0x2d8] ss:$40 sps:$4 sm:$0xff]   ;;  %v11695_v48 = vld [vmem:[%s15617_s2 + $0x37c] ss:$40 sps:$4 sm:$0xff]   ;;  %v11696_v42 = vld [vmem:[%s15617_s2 + $0x3c8] ss:$40 sps:$4 sm:$0xff]  }
 0x433   :  { %v11909_v56 = vpop.eup %11908  ;;  %v6076_v9 = vmin.f32 %v6034_v58, 0.0  ;;  %vm6055_vm11 = vcmp.gt.f32.partialorder %v6034_v58, 0.0  ;;  %v11693_v57 = vld [vmem:[%s15617_s2 + $0x378] ss:$40 sps:$4 sm:$0xff]   ;;  %v11701_v34 = vld [vmem:[%s15617_s2 + $0x41c] ss:$40 sps:$4 sm:$0xff]  }
 0x434   :  { %7389 = vmatmul.mubr.bf16.gmra.mrb[188].mxu1 %v14864_v59  ;;  %7957 = vmatmul.mubr.bf16.gmra.mrb[20].mxu0 %v14864_v59  ;;  %v9663_v45 = vadd.f32 -1.0, %v11909_v56  ;;  %v11699_v41 = vld [vmem:[%s15617_s2 + $0x418] ss:$40 sps:$4 sm:$0xff]   ;;  %v11704_v26 = vld [vmem:[%s15617_s2 + $0x46c] ss:$40 sps:$4 sm:$0xff]   ;;  %vm8358_vm0 = vcmask 1040384  }
 0x435   :  { %7398 = vmatprep.mubr.bf16.mxu1 %v14879_v38  ;;  %7966 = vmatprep.mubr.bf16.mxu0 %v14879_v38  ;;  %v11702_v40 = vld [vmem:[%s15617_s2 + $0x468] ss:$40 sps:$4 sm:$0xff]   ;;  %v11707_v27 = vld [vmem:[%s15617_s2 + $0x4bc] ss:$40 sps:$4 sm:$0xff]   ;;  %v11705_v63 = vld [vmem:[%s15617_s2 + $0x4b8] ss:$40 sps:$4 sm:$0xff]  }
 0x436   :  { %7422 = vmatpush1.bf16.msra.mxu1 %v7317_v60  ;;  %7990 = vmatpush1.bf16.msra.mxu0 %v7341_v10  ;;  %v6158_v7 = vsel %vm6053_vm10, %v14807_v23, %v9663_v45  ;;  %v6117_v23 = vmul.f32 1.442695, %v6076_v9  ;;  %v11710_v46 = vld [vmem:[%s15617_s2 + $0x50c] ss:$40 sps:$4 sm:$0xff]   ;;  %v11708_v55 = vld [vmem:[%s15617_s2 + $0x508] ss:$40 sps:$4 sm:$0xff]  }
 0x437   :  { %7488 = vmatprep.subr.bf16.mxu1 %v11662_v4  ;;  %v14907_v25 = vpack.c.bf16 %v6158_v7, %v6158_v7  ;;  %v11713_v39 = vld [vmem:[%s15617_s2 + $0x55c] ss:$40 sps:$4 sm:$0xff]   ;;  %v11711_v18 = vld [vmem:[%s15617_s2 + $0x558] ss:$40 sps:$4 sm:$0xff]   ;;  %vm11999_vm2 = vmmov 1   ;;  %vm8520_vm4 = vcmask 408576  }
 0x438   :  { %11910 = vpow2.f32 %v6117_v23  ;;  %v11714_v5 = vld [vmem:[%s15617_s2 + $0x5ac] ss:$40 sps:$4 sm:$0x3f]   ;;  %v11716_v60 = vld [vmem:[%s15617_s2 + $0x5a8] ss:$40 sps:$4 sm:$0x3f]   ;;  %vm10421_vm3 = vmpackc.low %vm8358_vm0, %vm11999_vm2 }
 0x439   :  { %v7323_v10 = vsel %vm7315_vm5, %v11716_v60, 0  ;;  %v11719_v4 = vld [vmem:[%s15617_s2 + $0x14] ss:$40 sps:$4 sm:$0xff]   ;;  %v11717_v16 = vld [vmem:[%s15617_s2 + $0x10] ss:$40 sps:$4 sm:$0xff]   ;;  %vm12001_vm8 = vmmov 0  }
 0x43a   :  { %v11722_v56 = vld [vmem:[%s15617_s2 + $0x64] ss:$40 sps:$4 sm:$0xff]   ;;  %v11720_v54 = vld [vmem:[%s15617_s2 + $0x60] ss:$40 sps:$4 sm:$0xff]   ;;  %v11725_v45 = vld [vmem:[%s15617_s2 + $0xb4] ss:$40 sps:$4 sm:$0xff]  }
 0x43b   :  { %v11723_v20 = vld [vmem:[%s15617_s2 + $0xb0] ss:$40 sps:$4 sm:$0xff]   ;;  %v11728_v7 = vld [vmem:[%s15617_s2 + $0x104] ss:$40 sps:$4 sm:$0xff]   ;;  %v11731_v9 = vld [vmem:[%s15617_s2 + $0x154] ss:$40 sps:$4 sm:$0xff]  }
 0x43c   :  { %7399 = vmatmul.mubr.bf16.gmra.mrb[192].mxu1 %v14884_v3  ;;  %7967 = vmatmul.mubr.bf16.gmra.mrb[24].mxu0 %v14884_v3  ;;  %v11732_v23 = vld [vmem:[%s15617_s2 + $0x1a0] ss:$40 sps:$4 sm:$0xff]   ;;  %v11791_v60 = vld [vmem:[%s15617_s2 + $0x1ac] ss:$40 sps:$4 sm:$0xff]   ;;  %vm8976_vm10 = vcmask 91136  }
 0x43d   :  { %7408 = vmatprep.mubr.bf16.mxu1 %v14897_v37  ;;  %7976 = vmatprep.mubr.bf16.mxu0 %v14897_v37 }
 0x442   :  { %v11911_v33 = vpop.eup %11910 }
 0x443   :  { %v9665_v12 = vadd.f32 -1.0, %v11911_v33  ;;  %v11746_v33 = vld [vmem:[%s15617_s2 + $0x2e4] ss:$40 sps:$4 sm:$0xff]  }
 0x444   :  { %7409 = vmatmul.mubr.bf16.gmra.mrb[196].mxu1 %v14907_v25  ;;  %7977 = vmatmul.mubr.bf16.gmra.mrb[28].mxu0 %v14907_v25 }
 0x445   :  { %7449 = vmatprep.mubr.bf16.mxu1 %v11998_v50  ;;  %8017 = vmatprep.mubr.bf16.mxu0 %v11998_v50  ;;  %v6160_v30 = vsel %vm6055_vm11, %v6034_v58, %v9665_v12  ;;  %v11726_v58 = vld [vmem:[%s15617_s2 + $0x100] ss:$40 sps:$4 sm:$0xff]   ;;  %v11747_v12 = vld [vmem:[%s15617_s2 + $0x330] ss:$40 sps:$4 sm:$0xff]  }
 0x446   :  { %v14971_v31 = vpack.c.bf16 %v6160_v30, %v6160_v30  ;;  %v11755_v30 = vld [vmem:[%s15617_s2 + $0x3d4] ss:$40 sps:$4 sm:$0xff]  }
 0x44c   :  { %9857 = vmatmul.mubr.msk.bf16.vlgmr.msra.gmra.mrb[184].mxu1 %vm5819_vm1, %v14433_v2  ;;  %9877 = vmatmul.mubr.msk.bf16.vlgmr.msra.gmra.mrb[16].mxu0 %vm5819_vm1, %v14433_v2 }
 0x44d   :  { %7489 = vmatpush1.bf16.msra.mxu1 %v11660_v29  ;;  %7459 = vmatprep.mubr.bf16.mxu1 %v11998_v50  ;;  %v11729_v29 = vld [vmem:[%s15617_s2 + $0x150] ss:$40 sps:$4 sm:$0xff]  }
 0x44e   :  { %7490 = vmatprep.subr.bf16.mxu1 %v11665_v49  ;;  %8027 = vmatprep.mubr.bf16.mxu0 %v11998_v50  ;;  %v11734_v49 = vld [vmem:[%s15617_s2 + $0x1a4] ss:$40 sps:$4 sm:$0xff]  }
 0x451   :  { %7491 = vmatpush1.bf16.msra.mxu1 %v11663_v19  ;;  %v11737_v19 = vld [vmem:[%s15617_s2 + $0x1f4] ss:$40 sps:$4 sm:$0xff]  }
 0x452   :  { %7492 = vmatprep.subr.bf16.mxu1 %v11668_v53  ;;  %v11735_v53 = vld [vmem:[%s15617_s2 + $0x1f0] ss:$40 sps:$4 sm:$0xff]  }
 0x454   :  { %9858 = vmatmul.mubr.msk.bf16.gmra.mrb[188].mxu1 %vm5819_vm1, %v14442_v24  ;;  %9878 = vmatmul.mubr.msk.bf16.gmra.mrb[20].mxu0 %vm5819_vm1, %v14442_v24 }
 0x455   :  { %7493 = vmatpush1.bf16.msra.mxu1 %v11666_v52  ;;  %7469 = vmatprep.mubr.bf16.mxu1 %v11998_v50  ;;  %v11740_v52 = vld [vmem:[%s15617_s2 + $0x244] ss:$40 sps:$4 sm:$0xff]  }
 0x456   :  { %7494 = vmatprep.subr.bf16.mxu1 %v11671_v11  ;;  %8037 = vmatprep.mubr.bf16.mxu0 %v11998_v50  ;;  %v11738_v11 = vld [vmem:[%s15617_s2 + $0x240] ss:$40 sps:$4 sm:$0xff]  }
 0x459   :  { %7495 = vmatpush1.bf16.msra.mxu1 %v11669_v1  ;;  %v11743_v1 = vld [vmem:[%s15617_s2 + $0x294] ss:$40 sps:$4 sm:$0xff]  }
 0x45a   :  { %7496 = vmatprep.subr.bf16.mxu1 %v11674_v13  ;;  %v11741_v13 = vld [vmem:[%s15617_s2 + $0x290] ss:$40 sps:$4 sm:$0xff]  }
 0x45c   :  { %9859 = vmatmul.mubr.msk.bf16.gmra.mrb[192].mxu1 %vm5819_vm1, %v14448_v36  ;;  %9879 = vmatmul.mubr.msk.bf16.gmra.mrb[24].mxu0 %vm5819_vm1, %v14448_v36 }
 0x45d   :  { %7497 = vmatpush1.bf16.msra.mxu1 %v11672_v8  ;;  %7479 = vmatprep.mubr.bf16.mxu1 %v11998_v50  ;;  %v11744_v8 = vld [vmem:[%s15617_s2 + $0x2e0] ss:$40 sps:$4 sm:$0xff]  }
 0x45e   :  { %7498 = vmatprep.subr.bf16.mxu1 %v11677_v28  ;;  %8047 = vmatprep.mubr.bf16.mxu0 %v11998_v50  ;;  %v11749_v28 = vld [vmem:[%s15617_s2 + $0x334] ss:$40 sps:$4 sm:$0xff]  }
 0x461   :  { %7499 = vmatpush1.bf16.msra.mxu1 %v11675_v35  ;;  %v11752_v35 = vld [vmem:[%s15617_s2 + $0x384] ss:$40 sps:$4 sm:$0xff]  }
 0x462   :  { %7500 = vmatprep.subr.bf16.mxu1 %v11680_v21  ;;  %v11750_v21 = vld [vmem:[%s15617_s2 + $0x380] ss:$40 sps:$4 sm:$0xff]  }
 0x464   :  { %9860 = vmatmul.mubr.msk.bf16.gmra.mrb[196].mxu1 %vm5819_vm1, %v14971_v31  ;;  %9880 = vmatmul.mubr.msk.bf16.gmra.mrb[28].mxu0 %vm5819_vm1, %v14971_v31 }
 0x465   :  { %7501 = vmatpush1.bf16.msra.mxu1 %v11678_v22  ;;  %7520 = vmatprep.mubr.bf16.mxu1 %v14822_v15  ;;  %v11753_v22 = vld [vmem:[%s15617_s2 + $0x3d0] ss:$40 sps:$4 sm:$0xff]  }
 0x466   :  { %7502 = vmatprep.subr.bf16.mxu1 %v11683_v44  ;;  %v11758_v44 = vld [vmem:[%s15617_s2 + $0x424] ss:$40 sps:$4 sm:$0xff]  }
 0x469   :  { %7503 = vmatpush1.bf16.msra.mxu1 %v11681_v0  ;;  %v11756_v0 = vld [vmem:[%s15617_s2 + $0x420] ss:$40 sps:$4 sm:$0xff]  }
 0x46a   :  { %7504 = vmatprep.subr.bf16.mxu1 %v11686_v62  ;;  %v11761_v62 = vld [vmem:[%s15617_s2 + $0x474] ss:$40 sps:$4 sm:$0xff]  }
 0x46d   :  { %7505 = vmatpush1.bf16.msra.mxu1 %v11684_v6  ;;  %v11759_v6 = vld [vmem:[%s15617_s2 + $0x470] ss:$40 sps:$4 sm:$0xff]  }
 0x46e   :  { %7506 = vmatprep.subr.bf16.mxu1 %v11689_v61  ;;  %v11764_v61 = vld [vmem:[%s15617_s2 + $0x4c4] ss:$40 sps:$4 sm:$0xff]  }
 0x471   :  { %7507 = vmatpush1.bf16.msra.mxu1 %v11687_v32  ;;  %v11762_v32 = vld [vmem:[%s15617_s2 + $0x4c0] ss:$40 sps:$4 sm:$0xff]  }
 0x472   :  { %7508 = vmatprep.subr.bf16.mxu1 %v11692_v51  ;;  %v11767_v51 = vld [vmem:[%s15617_s2 + $0x514] ss:$40 sps:$4 sm:$0xff]  }
 0x475   :  { %7509 = vmatpush1.bf16.msra.mxu1 %v11690_v43  ;;  %v11765_v43 = vld [vmem:[%s15617_s2 + $0x510] ss:$40 sps:$4 sm:$0xff]  }
 0x476   :  { %7510 = vmatprep.subr.bf16.mxu1 %v11695_v48  ;;  %v11770_v48 = vld [vmem:[%s15617_s2 + $0x564] ss:$40 sps:$4 sm:$0xff]  }
 0x479   :  { %7511 = vmatpush1.bf16.msra.mxu1 %v11693_v57  ;;  %v11768_v57 = vld [vmem:[%s15617_s2 + $0x560] ss:$40 sps:$4 sm:$0xff]  }
 0x47a   :  { %7512 = vmatprep.subr.bf16.mxu1 %v11698_v47  ;;  %v11771_v47 = vld [vmem:[%s15617_s2 + $0x5b4] ss:$40 sps:$4 sm:$0x3f]  }
 0x47d   :  { %7513 = vmatpush1.bf16.msra.mxu1 %v11696_v42  ;;  %v11773_v42 = vld [vmem:[%s15617_s2 + $0x5b0] ss:$40 sps:$4 sm:$0x3f]  }
 0x47e   :  { %7514 = vmatprep.subr.bf16.mxu1 %v11701_v34  ;;  %v7329_v34 = vsel %vm7315_vm5, %v11773_v42, 0 }
 0x481   :  { %7515 = vmatpush1.bf16.msra.mxu1 %v11699_v41  ;;  %v11776_v41 = vld [vmem:[%s15617_s2 + $0x1c] ss:$40 sps:$4 sm:$0xff]  }
 0x482   :  { %7516 = vmatprep.subr.bf16.mxu1 %v11704_v26  ;;  %v11774_v26 = vld [vmem:[%s15617_s2 + $0x18] ss:$40 sps:$4 sm:$0xff]  }
 0x485   :  { %7517 = vmatpush1.bf16.msra.mxu1 %v11702_v40  ;;  %v11779_v40 = vld [vmem:[%s15617_s2 + $0x6c] ss:$40 sps:$4 sm:$0xff]  }
 0x486   :  { %7518 = vmatprep.subr.bf16.mxu1 %v11707_v27  ;;  %v11777_v27 = vld [vmem:[%s15617_s2 + $0x68] ss:$40 sps:$4 sm:$0xff]  }
 0x489   :  { %7519 = vmatpush1.bf16.msra.mxu1 %v11705_v63  ;;  %v11782_v63 = vld [vmem:[%s15617_s2 + $0xbc] ss:$40 sps:$4 sm:$0xff]  }
 0x48a   :  { %7559 = vmatprep.subr.bf16.mxu1 %v11710_v46  ;;  %v11780_v46 = vld [vmem:[%s15617_s2 + $0xb8] ss:$40 sps:$4 sm:$0xff]  }
 0x48c   :  { %7521 = vmatmul.mubr.bf16.vlgmr.msra.gmra.mrb[200].mxu1 %v14815_v17 }
 0x48d   :  { %7530 = vmatprep.mubr.bf16.mxu1 %v14845_v14  ;;  %7560 = vmatpush1.bf16.msra.mxu1 %v11708_v55  ;;  %v11785_v55 = vld [vmem:[%s15617_s2 + $0x10c] ss:$40 sps:$4 sm:$0xff]  }
 0x48e   :  { %7561 = vmatprep.subr.bf16.mxu1 %v11713_v39  ;;  %v11783_v39 = vld [vmem:[%s15617_s2 + $0x108] ss:$40 sps:$4 sm:$0xff]  }
 0x491   :  { %7562 = vmatpush1.bf16.msra.mxu1 %v11711_v18  ;;  %v11788_v18 = vld [vmem:[%s15617_s2 + $0x15c] ss:$40 sps:$4 sm:$0xff]  }
 0x492   :  { %9861 = vmatprep.subr.msk.bf16.mxu1 %vm7315_vm5, %v11714_v5  ;;  %v11786_v5 = vld [vmem:[%s15617_s2 + $0x158] ss:$40 sps:$4 sm:$0xff]  }
 0x494   :  { %7531 = vmatmul.mubr.bf16.gmra.mrb[204].mxu1 %v14864_v59 }
 0x495   :  { %7540 = vmatprep.mubr.bf16.mxu1 %v14879_v38  ;;  %7564 = vmatpush1.bf16.msra.mxu1 %v7323_v10  ;;  %v11789_v10 = vld [vmem:[%s15617_s2 + $0x1a8] ss:$40 sps:$4 sm:$0xff]  }
 0x496   :  { %7630 = vmatprep.subr.bf16.mxu1 %v11719_v4  ;;  %v11794_v4 = vld [vmem:[%s15617_s2 + $0x1fc] ss:$40 sps:$4 sm:$0xff]  }
 0x49c   :  { %7541 = vmatmul.mubr.bf16.gmra.mrb[208].mxu1 %v14884_v3 }
 0x49d   :  { %7550 = vmatprep.mubr.bf16.mxu1 %v14897_v37 }
 0x4a4   :  { %7551 = vmatmul.mubr.bf16.gmra.mrb[212].mxu1 %v14907_v25 }
 0x4a5   :  { %7591 = vmatprep.mubr.bf16.mxu1 %v11998_v50 }
 0x4ac   :  { %9862 = vmatmul.mubr.msk.bf16.vlgmr.msra.gmra.mrb[200].mxu1 %vm5819_vm1, %v14433_v2 }
 0x4ad   :  { %7631 = vmatpush1.bf16.msra.mxu1 %v11717_v16  ;;  %7601 = vmatprep.mubr.bf16.mxu1 %v11998_v50 }
 0x4ae   :  { %7632 = vmatprep.subr.bf16.mxu1 %v11722_v56 }
 0x4b1   :  { %7633 = vmatpush1.bf16.msra.mxu1 %v11720_v54 }
 0x4b2   :  { %7634 = vmatprep.subr.bf16.mxu1 %v11725_v45 }
 0x4b4   :  { %9863 = vmatmul.mubr.msk.bf16.gmra.mrb[204].mxu1 %vm5819_vm1, %v14442_v24 }
 0x4b5   :  { %7635 = vmatpush1.bf16.msra.mxu1 %v11723_v20  ;;  %7611 = vmatprep.mubr.bf16.mxu1 %v11998_v50 }
 0x4b6   :  { %7636 = vmatprep.subr.bf16.mxu1 %v11728_v7  ;;  %v11792_v7 = vld [vmem:[%s15617_s2 + $0x1f8] ss:$40 sps:$4 sm:$0xff]  }
 0x4b9   :  { %7637 = vmatpush1.bf16.msra.mxu1 %v11726_v58 }
 0x4ba   :  { %7638 = vmatprep.subr.bf16.mxu1 %v11731_v9 }
 0x4bc   :  { %9864 = vmatmul.mubr.msk.bf16.gmra.mrb[208].mxu1 %vm5819_vm1, %v14448_v36 }
 0x4bd   :  { %7639 = vmatpush1.bf16.msra.mxu1 %v11729_v29  ;;  %7621 = vmatprep.mubr.bf16.mxu1 %v11998_v50 }
 0x4be   :  { %7640 = vmatprep.subr.bf16.mxu1 %v11734_v49  ;;  %v11797_v49 = vld [vmem:[%s15617_s2 + $0x24c] ss:$40 sps:$4 sm:$0xff]  }
 0x4c1   :  { %7641 = vmatpush1.bf16.msra.mxu1 %v11732_v23  ;;  %v11795_v23 = vld [vmem:[%s15617_s2 + $0x248] ss:$40 sps:$4 sm:$0xff]  }
 0x4c2   :  { %7642 = vmatprep.subr.bf16.mxu1 %v11737_v19  ;;  %v11800_v19 = vld [vmem:[%s15617_s2 + $0x29c] ss:$40 sps:$4 sm:$0xff]  }
 0x4c4   :  { %9865 = vmatmul.mubr.msk.bf16.gmra.mrb[212].mxu1 %vm5819_vm1, %v14971_v31 }
 0x4c5   :  { %7643 = vmatpush1.bf16.msra.mxu1 %v11735_v53  ;;  %7662 = vmatprep.mubr.bf16.mxu1 %v14822_v15 }
 0x4c6   :  { %7644 = vmatprep.subr.bf16.mxu1 %v11740_v52 }
 0x4c9   :  { %7645 = vmatpush1.bf16.msra.mxu1 %v11738_v11  ;;  %v11798_v11 = vld [vmem:[%s15617_s2 + $0x298] ss:$40 sps:$4 sm:$0xff]  }
 0x4ca   :  { %7646 = vmatprep.subr.bf16.mxu1 %v11743_v1 }
 0x4cd   :  { %7647 = vmatpush1.bf16.msra.mxu1 %v11741_v13 }
 0x4ce   :  { %7648 = vmatprep.subr.bf16.mxu1 %v11746_v33 }
 0x4d1   :  { %7649 = vmatpush1.bf16.msra.mxu1 %v11744_v8 }
 0x4d2   :  { %7650 = vmatprep.subr.bf16.mxu1 %v11749_v28 }
 0x4d5   :  { %7651 = vmatpush1.bf16.msra.mxu1 %v11747_v12 }
 0x4d6   :  { %7652 = vmatprep.subr.bf16.mxu1 %v11752_v35 }
 0x4d9   :  { %7653 = vmatpush1.bf16.msra.mxu1 %v11750_v21 }
 0x4da   :  { %7654 = vmatprep.subr.bf16.mxu1 %v11755_v30 }
 0x4dd   :  { %7655 = vmatpush1.bf16.msra.mxu1 %v11753_v22  ;;  %v11803_v22 = vld [vmem:[%s15617_s2 + $0x2ec] ss:$40 sps:$4 sm:$0xff]  }
 0x4de   :  { %7656 = vmatprep.subr.bf16.mxu1 %v11758_v44 }
 0x4e1   :  { %7657 = vmatpush1.bf16.msra.mxu1 %v11756_v0 }
 0x4e2   :  { %7658 = vmatprep.subr.bf16.mxu1 %v11761_v62 }
 0x4e5   :  { %7659 = vmatpush1.bf16.msra.mxu1 %v11759_v6 }
 0x4e6   :  { %7660 = vmatprep.subr.bf16.mxu1 %v11764_v61 }
 0x4e9   :  { %7661 = vmatpush1.bf16.msra.mxu1 %v11762_v32 }
 0x4ea   :  { %7701 = vmatprep.subr.bf16.mxu1 %v11767_v51 }
 0x4ec   :  { %7663 = vmatmul.mubr.bf16.vlgmr.msra.gmra.mrb[216].mxu1 %v14815_v17 }
 0x4ed   :  { %7672 = vmatprep.mubr.bf16.mxu1 %v14845_v14  ;;  %7702 = vmatpush1.bf16.msra.mxu1 %v11765_v43  ;;  %v11801_v43 = vld [vmem:[%s15617_s2 + $0x2e8] ss:$40 sps:$4 sm:$0xff]  }
 0x4ee   :  { %7703 = vmatprep.subr.bf16.mxu1 %v11770_v48 }
 0x4f1   :  { %7704 = vmatpush1.bf16.msra.mxu1 %v11768_v57  ;;  %v11806_v57 = vld [vmem:[%s15617_s2 + $0x33c] ss:$40 sps:$4 sm:$0xff]  }
 0x4f2   :  { %9866 = vmatprep.subr.msk.bf16.mxu1 %vm7315_vm5, %v11771_v47 }
 0x4f4   :  { %7673 = vmatmul.mubr.bf16.gmra.mrb[220].mxu1 %v14864_v59 }
 0x4f5   :  { %7682 = vmatprep.mubr.bf16.mxu1 %v14879_v38  ;;  %7706 = vmatpush1.bf16.msra.mxu1 %v7329_v34 }
 0x4f6   :  { %7772 = vmatprep.subr.bf16.mxu1 %v11776_v41 }
 0x4fc   :  { %7683 = vmatmul.mubr.bf16.gmra.mrb[224].mxu1 %v14884_v3 }
 0x4fd   :  { %7692 = vmatprep.mubr.bf16.mxu1 %v14897_v37 }
 0x504   :  { %7693 = vmatmul.mubr.bf16.gmra.mrb[228].mxu1 %v14907_v25 }
 0x505   :  { %7733 = vmatprep.mubr.bf16.mxu1 %v11998_v50 }
 0x50c   :  { %9867 = vmatmul.mubr.msk.bf16.vlgmr.msra.gmra.mrb[216].mxu1 %vm5819_vm1, %v14433_v2 }
 0x50d   :  { %7773 = vmatpush1.bf16.msra.mxu1 %v11774_v26  ;;  %7743 = vmatprep.mubr.bf16.mxu1 %v11998_v50 }
 0x50e   :  { %7774 = vmatprep.subr.bf16.mxu1 %v11779_v40 }
 0x511   :  { %7775 = vmatpush1.bf16.msra.mxu1 %v11777_v27 }
 0x512   :  { %7776 = vmatprep.subr.bf16.mxu1 %v11782_v63  ;;  %v11804_v63 = vld [vmem:[%s15617_s2 + $0x338] ss:$40 sps:$4 sm:$0xff]  }
 0x514   :  { %9868 = vmatmul.mubr.msk.bf16.gmra.mrb[220].mxu1 %vm5819_vm1, %v14442_v24 }
 0x515   :  { %7777 = vmatpush1.bf16.msra.mxu1 %v11780_v46  ;;  %7753 = vmatprep.mubr.bf16.mxu1 %v11998_v50 }
 0x516   :  { %7778 = vmatprep.subr.bf16.mxu1 %v11785_v55 }
 0x519   :  { %7779 = vmatpush1.bf16.msra.mxu1 %v11783_v39 }
 0x51a   :  { %7780 = vmatprep.subr.bf16.mxu1 %v11788_v18 }
 0x51c   :  { %9869 = vmatmul.mubr.msk.bf16.gmra.mrb[224].mxu1 %vm5819_vm1, %v14448_v36 }
 0x51d   :  { %7781 = vmatpush1.bf16.msra.mxu1 %v11786_v5  ;;  %7763 = vmatprep.mubr.bf16.mxu1 %v11998_v50 }
 0x51e   :  { %7782 = vmatprep.subr.bf16.mxu1 %v11791_v60  ;;  %v11809_v60 = vld [vmem:[%s15617_s2 + $0x38c] ss:$40 sps:$4 sm:$0xff]  }
 0x51f   :  { %v7451_v16 = vpop.f32.mrb[184].mxu1  ;;  %v8019_v56 = vpop.f32.mrb[16].mxu0 }
 0x520   :  { %v7453_v54 = vpop.f32.mrb[185].mxu1  ;;  %v8021_v45 = vpop.f32.mrb[17].mxu0 }
 0x521   :  { %7783 = vmatpush1.bf16.msra.mxu1 %v11789_v10  ;;  %8057 = vst [vmem:[#allocation2 + $0x8] sm:$0xff] %v7453_v54  ;;  %v7455_v20 = vpop.f32.mrb[186].mxu1  ;;  %v15247_v58 = vpop.f32.mrb[18].mxu0  ;;  %v11807_v54 = vld [vmem:[%s15617_s2 + $0x388] ss:$40 sps:$4 sm:$0xff]  }
 0x522   :  { %7784 = vmatprep.subr.bf16.mxu1 %v11794_v4  ;;  %v7457_v9 = vpop.f32.mrb[187].mxu1  ;;  %v8025_v29 = vpop.f32.mrb[19].mxu0 }
 0x523   :  { %8075 = vst [vmem:[#allocation2 + $0x98] sm:$0xff] %v8025_v29  ;;  %v8146_v12 = vrot.slane %v7457_v9, 1 }
 0x524   :  { %9870 = vmatmul.mubr.msk.bf16.gmra.mrb[228].mxu1 %vm5819_vm1, %v14971_v31 }
 0x525   :  { %7785 = vmatpush1.bf16.msra.mxu1 %v11792_v7  ;;  %7804 = vmatprep.mubr.bf16.mxu1 %v14822_v15 }
 0x526   :  { %7786 = vmatprep.subr.bf16.mxu1 %v11797_v49 }
 0x527   :  { %v7461_v53 = vpop.f32.mrb[188].mxu1  ;;  %v15261_v52 = vpop.f32.mrb[20].mxu0 }
 0x528   :  { %v7463_v1 = vpop.f32.mrb[189].mxu1  ;;  %v15266_v13 = vpop.f32.mrb[21].mxu0  ;;  %v8132_v15 = vld [vmem:[#allocation2 + $0x8] sm:$0xfe] }
 0x529   :  { %7787 = vmatpush1.bf16.msra.mxu1 %v11795_v23  ;;  %v7465_v33 = vpop.f32.mrb[190].mxu1  ;;  %v15268_v8 = vpop.f32.mrb[22].mxu0  ;;  %v8145_v28 = vrot.slane %v8132_v15, 1  ;;  %v8148_v35 = vrot.slane %v7463_v1, 1  ;;  %v8407_v62 = vrot.slane %v15266_v13, 1 }
 0x52a   :  { %7788 = vmatprep.subr.bf16.mxu1 %v11800_v19  ;;  %v7467_v21 = vpop.f32.mrb[191].mxu1  ;;  %v8035_v30 = vpop.f32.mrb[23].mxu0  ;;  %v11810_v19 = vld [vmem:[%s15617_s2 + $0x3d8] ss:$40 sps:$4 sm:$0xff]   ;;  %v11815_v15 = vld [vmem:[%s15617_s2 + $0x42c] ss:$40 sps:$4 sm:$0xff]  }
 0x52b   :  { %v8147_v44 = vsel %vm8144_vm12, %v8145_v28, %v8146_v12  ;;  %v8149_v0 = vsel %vm8144_vm12, %v8146_v12, %v8148_v35  ;;  %v8409_v6 = vrot.slane %v8035_v30, 1  ;;  %v8150_v51 = vrot.slane %v7467_v21, 1  ;;  %v11813_v12 = vld [vmem:[%s15617_s2 + $0x428] ss:$40 sps:$4 sm:$0xff]   ;;  %v11818_v21 = vld [vmem:[%s15617_s2 + $0x47c] ss:$40 sps:$4 sm:$0xff]  }
 0x52c   :  { %v15276_v61 = vadd.f32 %v8147_v44, %v7451_v16  ;;  %v15278_v32 = vadd.f32 %v8149_v0, %v7455_v20  ;;  %v11812_v20 = vld [vmem:[%s15617_s2 + $0x3dc] ss:$40 sps:$4 sm:$0xff]   ;;  %v11821_v44 = vld [vmem:[%s15617_s2 + $0x4cc] ss:$40 sps:$4 sm:$0xff]   ;;  %v11819_v0 = vld [vmem:[%s15617_s2 + $0x4c8] ss:$40 sps:$4 sm:$0xff]  }
 0x52d   :  { %7789 = vmatpush1.bf16.msra.mxu1 %v11798_v11  ;;  %v15286_v48 = vsel %vm8144_vm12, %v8407_v62, %v8409_v6  ;;  %v8151_v47 = vsel %vm8144_vm12, %v8148_v35, %v8150_v51 }
 0x52e   :  { %7790 = vmatprep.subr.bf16.mxu1 %v11803_v22  ;;  %v15294_v41 = vadd.f32 %v8151_v47, %v7461_v53  ;;  %v11816_v22 = vld [vmem:[%s15617_s2 + $0x478] ss:$40 sps:$4 sm:$0xff]   ;;  %v11828_v47 = vld [vmem:[%s15617_s2 + $0x5bc] ss:$40 sps:$4 sm:$0x3f]  }
 0x52f   :  { %v7471_v42 = vpop.f32.mrb[192].mxu1  ;;  %v15292_v34 = vpop.f32.mrb[24].mxu0 }
 0x530   :  { %v7473_v26 = vpop.f32.mrb[193].mxu1  ;;  %v8041_v40 = vpop.f32.mrb[25].mxu0 }
 0x531   :  { %7791 = vmatpush1.bf16.msra.mxu1 %v11801_v43  ;;  %v7475_v27 = vpop.f32.mrb[194].mxu1  ;;  %v15299_v46 = vpop.f32.mrb[26].mxu0  ;;  %v8152_v55 = vrot.slane %v7473_v26, 1  ;;  %v8411_v39 = vrot.slane %v8041_v40, 1  ;;  %v11827_v43 = vld [vmem:[%s15617_s2 + $0x56c] ss:$40 sps:$4 sm:$0xff]  }
 0x532   :  { %8106 = vst [vmem:[#allocation2 + $0x190] sm:$0xff] %v7475_v27  ;;  %7792 = vmatprep.subr.bf16.mxu1 %v11806_v57  ;;  %v7477_v18 = vpop.f32.mrb[195].mxu1  ;;  %v15301_v5 = vpop.f32.mrb[27].mxu0  ;;  %v11825_v57 = vld [vmem:[%s15617_s2 + $0x568] ss:$40 sps:$4 sm:$0xff]  }
 0x533   :  { %8107 = vst [vmem:[#allocation2 + $0x198] sm:$0xff] %v7477_v18  ;;  %v8153_v10 = vsel %vm8144_vm12, %v8150_v51, %v8152_v55  ;;  %v15308_v4 = vsel %vm8144_vm12, %v8409_v6, %v8411_v39  ;;  %v8413_v16 = vrot.slane %v15301_v5, 1  ;;  %v11824_v6 = vld [vmem:[%s15617_s2 + $0x51c] ss:$40 sps:$4 sm:$0xff]   ;;  %v11822_v51 = vld [vmem:[%s15617_s2 + $0x518] ss:$40 sps:$4 sm:$0xff]  }
 0x534   :  { %v15311_v56 = vadd.f32 %v8153_v10, %v7465_v33  ;;  %v11833_v5 = vld [vmem:[%s15618_s3 + $0x4] ss:$24 sps:$4 sm:$0xff]  }
 0x535   :  { %7793 = vmatpush1.bf16.msra.mxu1 %v11804_v63  ;;  %v15319_v45 = vsel %vm8144_vm12, %v8411_v39, %v8413_v16 }
 0x536   :  { %7794 = vmatprep.subr.bf16.mxu1 %v11809_v60 }
 0x537   :  { %v7481_v7 = vpop.f32.mrb[196].mxu1  ;;  %v8049_v9 = vpop.f32.mrb[28].mxu0 }
 0x538   :  { %8124 = vst [vmem:[#allocation2 + $0x220] sm:$0x3] %v8049_v9  ;;  %v7483_v29 = vpop.f32.mrb[197].mxu1  ;;  %v8051_v49 = vpop.f32.mrb[29].mxu0 }
 0x539   :  { %7795 = vmatpush1.bf16.msra.mxu1 %v11807_v54  ;;  %8125 = vst [vmem:[#allocation2 + $0x228] sm:$0x3] %v8051_v49  ;;  %v7485_v23 = vpop.f32.mrb[198].mxu1  ;;  %v8053_v53 = vpop.f32.mrb[30].mxu0 }
 0x53a   :  { %7796 = vmatprep.subr.bf16.mxu1 %v11812_v20  ;;  %v7486_v11 = vpop.f32.mrb[199].mxu1  ;;  %v8054_v1 = vpop.f32.mrb[31].mxu0  ;;  %v15330_v33 = vld [vmem:[#allocation2 + $0x198] sm:$0x3] }
 0x53b   :  { %v8154_v28 = vrot.slane %v15330_v33, 1 }
 0x53d   :  { %7797 = vmatpush1.bf16.msra.mxu1 %v11810_v19  ;;  %v8155_v35 = vsel %vm8144_vm12, %v8152_v55, %v8154_v28 }
 0x53e   :  { %7798 = vmatprep.subr.bf16.mxu1 %v11815_v15  ;;  %v15342_v30 = vadd.f32 %v8155_v35, %v7471_v42  ;;  %v11830_v42 = vld [vmem:[%s15617_s2 + $0x5b8] ss:$40 sps:$4 sm:$0x3f]   ;;  %s8995_s2 = sshll.u32 %s12002_s20, 4  ;;  %s8996_s2 = int_to_ptr.vmem [resolvable:$true] %s8995_s2 }
 0x53f   :  { %p11979_p1 = scmp.lt.s32.totalorder %s8996_s2, %s8996_s2 }
 0x541   :  { %7799 = vmatpush1.bf16.msra.mxu1 %v11813_v12 }
 0x542   :  { %7800 = vmatprep.subr.bf16.mxu1 %v11818_v21 }
 0x545   :  { %7801 = vmatpush1.bf16.msra.mxu1 %v11816_v22 }
 0x546   :  { %7802 = vmatprep.subr.bf16.mxu1 %v11821_v44 }
 0x549   :  { %7803 = vmatpush1.bf16.msra.mxu1 %v11819_v0 }
 0x54a   :  { %7843 = vmatprep.subr.bf16.mxu1 %v11824_v6 }
 0x54c   :  { %7805 = vmatmul.mubr.bf16.vlgmr.msra.gmra.mrb[232].mxu1 %v14815_v17  ;;  %v7335_v17 = vsel %vm7315_vm5, %v11830_v42, 0 }
 0x54d   :  { %7814 = vmatprep.mubr.bf16.mxu1 %v14845_v14  ;;  %7844 = vmatpush1.bf16.msra.mxu1 %v11822_v51 }
 0x54e   :  { %7845 = vmatprep.subr.bf16.mxu1 %v11827_v43 }
 0x551   :  { %7846 = vmatpush1.bf16.msra.mxu1 %v11825_v57 }
 0x552   :  { %9871 = vmatprep.subr.msk.bf16.mxu1 %vm7315_vm5, %v11828_v47 }
 0x554   :  { %7815 = vmatmul.mubr.bf16.gmra.mrb[236].mxu1 %v14864_v59 }
 0x555   :  { %7824 = vmatprep.mubr.bf16.mxu1 %v14879_v38  ;;  %7848 = vmatpush1.bf16.msra.mxu1 %v7335_v17 }
 0x55c   :  { %7825 = vmatmul.mubr.bf16.gmra.mrb[240].mxu1 %v14884_v3 }
 0x55d   :  { %7834 = vmatprep.mubr.bf16.mxu1 %v14897_v37 }
 0x564   :  { %7835 = vmatmul.mubr.bf16.gmra.mrb[244].mxu1 %v14907_v25 }
 0x565   :  { %7875 = vmatprep.mubr.bf16.mxu1 %v11998_v50 }
 0x56c   :  { %9872 = vmatmul.mubr.msk.bf16.vlgmr.msra.gmra.mrb[232].mxu1 %vm5819_vm1, %v14433_v2 }
 0x56d   :  { %7885 = vmatprep.mubr.bf16.mxu1 %v11998_v50 }
 0x574   :  { %9873 = vmatmul.mubr.msk.bf16.gmra.mrb[236].mxu1 %vm5819_vm1, %v14442_v24 }
 0x575   :  { %7895 = vmatprep.mubr.bf16.mxu1 %v11998_v50 }
 0x57c   :  { %9874 = vmatmul.mubr.msk.bf16.gmra.mrb[240].mxu1 %vm5819_vm1, %v14448_v36 }
 0x57d   :  { %7905 = vmatprep.mubr.bf16.mxu1 %v11998_v50 }
 0x57f   :  { %v7593_v14 = vpop.f32.mrb[200].mxu1 }
 0x580   :  { %8058 = vst [vmem:[#allocation2 + $0x10] sm:$0xff] %v7593_v14  ;;  %v7595_v59 = vpop.f32.mrb[201].mxu1 }
 0x581   :  { %8059 = vst [vmem:[#allocation2 + $0x18] sm:$0xff] %v7595_v59  ;;  %v7597_v38 = vpop.f32.mrb[202].mxu1 }
 0x582   :  { %v7599_v3 = vpop.f32.mrb[203].mxu1  ;;  %v8181_v26 = vrot.slane %v7597_v38, 2 }
 0x583   :  { %v8217_v55 = vrot.slane %v7599_v3, 3 }
 0x584   :  { %9875 = vmatmul.mubr.msk.bf16.gmra.mrb[244].mxu1 %vm5819_vm1, %v14971_v31  ;;  %vm8251_vm1 = vcmask 1043456  }
 0x587   :  { %v7603_v2 = vpop.f32.mrb[204].mxu1  ;;  %v8168_v37 = vld [vmem:[#allocation2 + $0x10] sm:$0xfc] }
 0x588   :  { %v7605_v24 = vpop.f32.mrb[205].mxu1  ;;  %v8180_v25 = vrot.slane %v8168_v37, 2  ;;  %v8183_v40 = vrot.slane %v7603_v2, 2  ;;  %v8203_v27 = vld [vmem:[#allocation2 + $0x18] sm:$0xf8] }
 0x589   :  { %v7607_v36 = vpop.f32.mrb[206].mxu1  ;;  %v8216_v63 = vrot.slane %v8203_v27, 3  ;;  %v8219_v39 = vrot.slane %v7605_v24, 3 }
 0x58a   :  { %v7609_v18 = vpop.f32.mrb[207].mxu1  ;;  %v8182_v60 = vsel %vm7315_vm5, %v8180_v25, %v8181_v26  ;;  %v8184_v10 = vsel %vm7315_vm5, %v8181_v26, %v8183_v40  ;;  %v8185_v54 = vrot.slane %v7607_v36, 2 }
 0x58b   :  { %v8197_v31 = vadd.f32 %v8182_v60, %v15276_v61  ;;  %v8198_v20 = vadd.f32 %v8184_v10, %v15278_v32  ;;  %v8218_v7 = vsel %vm8215_vm13, %v8216_v63, %v8217_v55  ;;  %v8220_v9 = vsel %vm8215_vm13, %v8217_v55, %v8219_v39 }
 0x58c   :  { %v8186_v29 = vsel %vm7315_vm5, %v8183_v40, %v8185_v54  ;;  %v8221_v49 = vrot.slane %v7609_v18, 3  ;;  %v15424_v18 = vld [vmem:[%s15619_s4 + $0x18] sm:$0xff] }
 0x58d   :  { %v8233_v23 = vadd.f32 %v8218_v7, %v8197_v31  ;;  %v8234_v19 = vadd.f32 %v8220_v9, %v8198_v20  ;;  %v8199_v53 = vadd.f32 %v8186_v29, %v15294_v41  ;;  %v30_v31 = vld [vmem:[%s15619_s4] sm:$0xc0]  ;;  %v8433_v20 = vrot.slane %v15424_v18, 6  ;;  %v11836_v18 = vld [vmem:[%s15618_s3 + $0x34] ss:$24 sps:$4 sm:$0xff]  }
 0x58e   :  { %v8222_v11 = vsel %vm8215_vm13, %v8219_v39, %v8221_v49 }
 0x58f   :  { %v7613_v1 = vpop.f32.mrb[208].mxu1  ;;  %v8235_v15 = vadd.f32 %v8222_v11, %v8199_v53  ;;  %v8432_v53 = vrot.slane %v30_v31, 6 }
 0x590   :  { %v7615_v12 = vpop.f32.mrb[209].mxu1  ;;  %v8187_v35 = vrot.slane %v7613_v1, 2 }
 0x591   :  { %v7617_v61 = vpop.f32.mrb[210].mxu1  ;;  %v8223_v21 = vrot.slane %v7615_v12, 3 }
 0x592   :  { %8108 = vst [vmem:[#allocation2 + $0x1a0] sm:$0xff] %v7617_v61  ;;  %v7619_v32 = vpop.f32.mrb[211].mxu1  ;;  %v8188_v22 = vsel %vm7315_vm5, %v8185_v54, %v8187_v35 }
 0x593   :  { %8109 = vst [vmem:[#allocation2 + $0x1a8] sm:$0xff] %v7619_v32  ;;  %v8200_v44 = vadd.f32 %v8188_v22, %v15311_v56  ;;  %v8224_v0 = vsel %vm8215_vm13, %v8221_v49, %v8223_v21  ;;  %v8434_v32 = vsel %vm5797_vm9, %v8432_v53, %v8433_v20 }
 0x594   :  { %10404 = vmatprep.mubr.msk.f32.mxu1 %vm8437_vm15, %v8434_v32  ;;  %v8394_v32 = vld [vmem:[#allocation2 + $0x98] sm:$0xfe] }
 0x595   :  { %v15404_v6 = vadd.f32 %v8224_v0, %v8200_v44 }
 0x597   :  { %v7623_v41 = vpop.f32.mrb[212].mxu1 }
 0x598   :  { %v7625_v51 = vpop.f32.mrb[213].mxu1 }
 0x599   :  { %v7627_v43 = vpop.f32.mrb[214].mxu1  ;;  %v15406_v57 = vld [vmem:[#allocation2 + $0x1a0] sm:$0x7] }
 0x59a   :  { %v7628_v47 = vpop.f32.mrb[215].mxu1  ;;  %v8189_v42 = vrot.slane %v15406_v57, 2  ;;  %v15409_v17 = vld [vmem:[#allocation2 + $0x1a8] sm:$0xf] }
 0x59b   :  { %v8225_v14 = vrot.slane %v15409_v17, 3 }
 0x59c   :  { %v8190_v56 = vsel %vm7315_vm5, %v8187_v35, %v8189_v42 }
 0x59d   :  { %v8201_v59 = vadd.f32 %v8190_v56, %v15342_v30  ;;  %v8226_v38 = vsel %vm8215_vm13, %v8223_v21, %v8225_v14 }
 0x59f   :  { %v15419_v3 = vadd.f32 %v8226_v38, %v8201_v59 }
 0x5df   :  { %v7735_v2 = vpop.f32.mrb[216].mxu1 }
 0x5e0   :  { %8060 = vst [vmem:[#allocation2 + $0x20] sm:$0xff] %v7735_v2  ;;  %v7737_v37 = vpop.f32.mrb[217].mxu1 }
 0x5e1   :  { %8061 = vst [vmem:[#allocation2 + $0x28] sm:$0xff] %v7737_v37  ;;  %v7739_v24 = vpop.f32.mrb[218].mxu1 }
 0x5e2   :  { %v7741_v25 = vpop.f32.mrb[219].mxu1  ;;  %v8253_v27 = vrot.slane %v7739_v24, 4 }
 0x5e3   :  { %v8289_v36 = vrot.slane %v7741_v25, 5 }
 0x5e7   :  { %v7745_v26 = vpop.f32.mrb[220].mxu1  ;;  %v8239_v40 = vld [vmem:[#allocation2 + $0x20] sm:$0xf0] }
 0x5e8   :  { %v7747_v63 = vpop.f32.mrb[221].mxu1  ;;  %v8252_v30 = vrot.slane %v8239_v40, 4  ;;  %v8255_v55 = vrot.slane %v7745_v26, 4  ;;  %v8275_v39 = vld [vmem:[#allocation2 + $0x28] sm:$0xe0] }
 0x5e9   :  { %v7749_v60 = vpop.f32.mrb[222].mxu1  ;;  %v8288_v10 = vrot.slane %v8275_v39, 5  ;;  %v8291_v54 = vrot.slane %v7747_v63, 5 }
 0x5ea   :  { %v7751_v7 = vpop.f32.mrb[223].mxu1  ;;  %v8254_v9 = vsel %vm8251_vm1, %v8252_v30, %v8253_v27  ;;  %v8256_v29 = vsel %vm8251_vm1, %v8253_v27, %v8255_v55  ;;  %v8257_v49 = vrot.slane %v7749_v60, 4 }
 0x5eb   :  { %v8269_v11 = vadd.f32 %v8254_v9, %v8233_v23  ;;  %v8270_v1 = vadd.f32 %v8256_v29, %v8234_v19  ;;  %v8290_v12 = vsel %vm8287_vm14, %v8288_v10, %v8289_v36  ;;  %v8292_v35 = vsel %vm8287_vm14, %v8289_v36, %v8291_v54 }
 0x5ec   :  { %v8258_v61 = vsel %vm8251_vm1, %v8255_v55, %v8257_v49  ;;  %v8293_v21 = vrot.slane %v7751_v7, 5 }
 0x5ed   :  { %v8305_v22 = vadd.f32 %v8290_v12, %v8269_v11  ;;  %v8306_v44 = vadd.f32 %v8292_v35, %v8270_v1  ;;  %v8271_v0 = vadd.f32 %v8258_v61, %v8235_v15 }
 0x5ee   :  { %v8294_v23 = vsel %vm8287_vm14, %v8291_v54, %v8293_v21 }
 0x5ef   :  { %v7755_v19 = vpop.f32.mrb[224].mxu1  ;;  %v8307_v41 = vadd.f32 %v8294_v23, %v8271_v0 }
 0x5f0   :  { %v7757_v51 = vpop.f32.mrb[225].mxu1  ;;  %v8259_v43 = vrot.slane %v7755_v19, 4 }
 0x5f1   :  { %v7759_v47 = vpop.f32.mrb[226].mxu1  ;;  %v8295_v56 = vrot.slane %v7757_v51, 5 }
 0x5f2   :  { %8110 = vst [vmem:[#allocation2 + $0x1b0] sm:$0xff] %v7759_v47  ;;  %v7761_v59 = vpop.f32.mrb[227].mxu1  ;;  %v8260_v38 = vsel %vm8251_vm1, %v8257_v49, %v8259_v43 }
 0x5f3   :  { %8111 = vst [vmem:[#allocation2 + $0x1b8] sm:$0xff] %v7761_v59  ;;  %v8272_v2 = vadd.f32 %v8260_v38, %v15404_v6  ;;  %v8296_v37 = vsel %vm8287_vm14, %v8293_v21, %v8295_v56  ;;  %v8406_v38 = vrot.slane %v8394_v32, 1 }
 0x5f5   :  { %v15443_v15 = vadd.f32 %v8296_v37, %v8272_v2 }
 0x5f7   :  { %v7765_v24 = vpop.f32.mrb[228].mxu1 }
 0x5f8   :  { %v7767_v25 = vpop.f32.mrb[229].mxu1 }
 0x5f9   :  { %v7769_v26 = vpop.f32.mrb[230].mxu1  ;;  %v15445_v40 = vld [vmem:[#allocation2 + $0x1b0] sm:$0x1f] }
 0x5fa   :  { %v7770_v27 = vpop.f32.mrb[231].mxu1  ;;  %v8261_v36 = vrot.slane %v15445_v40, 4  ;;  %v15448_v63 = vld [vmem:[#allocation2 + $0x1b8] sm:$0x3f] }
 0x5fb   :  { %v8297_v30 = vrot.slane %v15448_v63, 5  ;;  %v8131_v27 = vld [vmem:[#allocation2 + $0x190] sm:$0x1] }
 0x5fc   :  { %v8262_v6 = vsel %vm8251_vm1, %v8259_v43, %v8261_v36  ;;  %v32_v63 = vld [vmem:[%s15619_s4 + $0x30] sm:$0x3] }
 0x5fd   :  { %v8273_v55 = vadd.f32 %v8262_v6, %v15419_v3  ;;  %v8298_v39 = vsel %vm8287_vm14, %v8295_v56, %v8297_v30 }
 0x5ff   :  { %v15458_v60 = vadd.f32 %v8298_v39, %v8273_v55  ;;  %v8167_v55 = vadd.f32 %v8154_v28, %v8131_v27 }
 0x63f   :  { %v7877_v10 = vpop.f32.mrb[232].mxu1 }
 0x640   :  { %8062 = vst [vmem:[#allocation2 + $0x30] sm:$0xff] %v7877_v10  ;;  %v7879_v54 = vpop.f32.mrb[233].mxu1 }
 0x641   :  { %8063 = vst [vmem:[#allocation2 + $0x38] sm:$0xff] %v7879_v54  ;;  %v7881_v31 = vpop.f32.mrb[234].mxu1 }
 0x642   :  { %v7883_v7 = vpop.f32.mrb[235].mxu1  ;;  %v8324_v11 = vrot.slane %v7881_v31, 6  ;;  %v8408_v31 = vsel %vm8144_vm12, %v8406_v38, %v8407_v62 }
 0x643   :  { %v8360_v61 = vrot.slane %v7883_v7, 7 }
 0x647   :  { %v7887_v9 = vpop.f32.mrb[236].mxu1  ;;  %v8311_v29 = vld [vmem:[#allocation2 + $0x30] sm:$0xc0] }
 0x648   :  { %v7889_v49 = vpop.f32.mrb[237].mxu1  ;;  %v8323_v53 = vrot.slane %v8311_v29, 6  ;;  %v8326_v1 = vrot.slane %v7887_v9, 6  ;;  %v8346_v3 = vld [vmem:[#allocation2 + $0x38] sm:$0x80] }
 0x649   :  { %v7891_v12 = vpop.f32.mrb[238].mxu1  ;;  %v8359_v35 = vrot.slane %v8346_v3, 7  ;;  %v8362_v21 = vrot.slane %v7889_v49, 7 }
 0x64a   :  { %v7893_v0 = vpop.f32.mrb[239].mxu1  ;;  %v8325_v23 = vsel %vm5797_vm9, %v8323_v53, %v8324_v11  ;;  %v8327_v19 = vsel %vm5797_vm9, %v8324_v11, %v8326_v1  ;;  %v8328_v51 = vrot.slane %v7891_v12, 6 }
 0x64b   :  { %v8340_v43 = vadd.f32 %v8325_v23, %v8305_v22  ;;  %v8341_v47 = vadd.f32 %v8327_v19, %v8306_v44  ;;  %v8361_v56 = vsel %vm8358_vm0, %v8359_v35, %v8360_v61  ;;  %v8363_v59 = vsel %vm8358_vm0, %v8360_v61, %v8362_v21 }
 0x64c   :  { %v8329_v2 = vsel %vm5797_vm9, %v8326_v1, %v8328_v51  ;;  %v8364_v37 = vrot.slane %v7893_v0, 7  ;;  %v8399_v0 = vld [vmem:[#allocation2 + $0x228] sm:$0x3] }
 0x64d   :  { %v8376_v24 = vadd.f32 %v8361_v56, %v8340_v43  ;;  %v8377_v25 = vadd.f32 %v8363_v59, %v8341_v47  ;;  %v8342_v26 = vadd.f32 %v8329_v2, %v8307_v41  ;;  %v8202_v41 = vadd.f32 %v8189_v42, %v8167_v55  ;;  %v8387_v43 = vld [vmem:[#allocation2 + $0x220] sm:$0x1] }
 0x64e   :  { %v8365_v6 = vsel %vm8358_vm0, %v8362_v21, %v8364_v37  ;;  %v8415_v19 = vrot.slane %v8399_v0, 1  ;;  %v11837_v2 = vld [vmem:[%s15618_s3 + $0x60] ss:$24 sps:$4 sm:$0xff]  }
 0x64f   :  { %v7897_v39 = vpop.f32.mrb[240].mxu1  ;;  %v8388_v22 = vadd.f32 %v8376_v24, %v15247_v58  ;;  %v8389_v44 = vadd.f32 %v8377_v25, %v15261_v52  ;;  %v8378_v10 = vadd.f32 %v8365_v6, %v8342_v26  ;;  %v8238_v57 = vadd.f32 %v8225_v14, %v8202_v41  ;;  %v8586_v24 = vld [vmem:[%s15618_s3 + $0x90] sm:$0x11]  ;;  %v11844_v6 = vld [vmem:[%s15618_s3 + $0xc] ss:$24 sps:$4 sm:$0xff]  }
 0x650   :  { %v7899_v54 = vpop.f32.mrb[241].mxu1  ;;  %v8330_v7 = vrot.slane %v7897_v39, 6  ;;  %v9905_v25 = vcombine.high %v8586_v24, %v8586_v24  ;;  %v9904_v26 = vcombine.low %v8586_v24, %v8586_v24  ;;  %v11858_v24 = vld [vmem:[%s15618_s3 + $0x44] ss:$24 sps:$4 sm:$0xff]  }
 0x651   :  { %v7901_v9 = vpop.f32.mrb[242].mxu1  ;;  %v8423_v29 = vadd.f32 %v8408_v31, %v8388_v22  ;;  %v8424_v33 = vadd.f32 %v15286_v48, %v8389_v44  ;;  %v8366_v28 = vrot.slane %v7899_v54, 7  ;;  %v8390_v49 = vadd.f32 %v8378_v10, %v15268_v8 }
 0x652   :  { %8112 = vst [vmem:[#allocation2 + $0x1c0] sm:$0xff] %v7901_v9  ;;  %v7903_v58 = vpop.f32.mrb[243].mxu1  ;;  %v8331_v52 = vsel %vm5797_vm9, %v8328_v51, %v8330_v7  ;;  %v8274_v8 = vadd.f32 %v8261_v36, %v8238_v57  ;;  %v8698_v27 = vsel %vm8358_vm0, %v9904_v26, 0  ;;  %v11861_v26 = vld [vmem:[%s15618_s3 + $0x74] ss:$24 sps:$4 sm:$0xff]  }
 0x653   :  { %v10412_v53 = vpack.c.bf16 %v8424_v33, %v8423_v29  ;;  %v8343_v13 = vadd.f32 %v8331_v52, %v15443_v15  ;;  %v8367_v62 = vsel %vm8358_vm0, %v8364_v37, %v8366_v28  ;;  %v8425_v11 = vadd.f32 %v15308_v4, %v8390_v49  ;;  %v11839_v37 = vld [vmem:[%s15618_s3 + $0x64] ss:$24 sps:$4 sm:$0xff]  }
 0x654   :  { %v8368_v42 = vrot.slane %v7903_v58, 7  ;;  %v8310_v17 = vadd.f32 %v8297_v30, %v8274_v8  ;;  %v8416_v30 = vsel %vm8144_vm12, %v8413_v16, %v8415_v19  ;;  %v11831_v16 = vld [vmem:[%s15618_s3] ss:$24 sps:$4 sm:$0xff]  }
 0x655   :  { %10413 = vmatprep.subr.bf16.mxu1 %v10412_v53  ;;  %v8379_v48 = vadd.f32 %v8367_v62, %v8343_v13 }
 0x656   :  { %10415 = vmatpush3.bf16.msra.mxu1 %v10412_v53  ;;  %v8369_v1 = vsel %vm8358_vm0, %v8366_v28, %v8368_v42 }
 0x657   :  { %v7907_v3 = vpop.f32.mrb[244].mxu1  ;;  %v8391_v12 = vadd.f32 %v8379_v48, %v15292_v34 }
 0x658   :  { %v7909_v15 = vpop.f32.mrb[245].mxu1 }
 0x659   :  { %v7911_v35 = vpop.f32.mrb[246].mxu1  ;;  %v8426_v61 = vadd.f32 %v15319_v45, %v8391_v12  ;;  %v8316_v4 = vld [vmem:[#allocation2 + $0x1c0] sm:$0x7f] }
 0x65a   :  { %v7912_v21 = vpop.f32.mrb[247].mxu1  ;;  %v8332_v14 = vrot.slane %v8316_v4, 6  ;;  %v27_v35 = vld [vmem:[%s15619_s4 + $0x3] ss:$0 sm:$0xff] }
 0x65b   :  { %v10416_v32 = vpack.c.bf16 %v8426_v61, %v8425_v11  ;;  %v28_v21 = vld [vmem:[%s15619_s4 + $0x4] ss:$0 sm:$0xff] }
 0x65c   :  { %v8333_v40 = vsel %vm5797_vm9, %v8330_v7, %v8332_v14  ;;  %v8345_v36 = vadd.f32 %v8332_v14, %v8310_v17 }
 0x65d   :  { %10417 = vmatprep.subr.bf16.mxu1 %v10416_v32  ;;  %v8344_v23 = vadd.f32 %v8333_v40, %v15458_v60  ;;  %v8435_v60 = vrot.slane %v32_v63, 6  ;;  %v11842_v63 = vld [vmem:[%s15618_s3 + $0x8] ss:$24 sps:$4 sm:$0xff]  }
 0x65e   :  { %10419 = vmatpush3.bf16.msra.mxu1 %v10416_v32  ;;  %v8381_v34 = vadd.f32 %v8368_v42, %v8345_v36 }
 0x65f   :  { %v8380_v51 = vadd.f32 %v8369_v1, %v8344_v23 }
 0x660   :  { %v8393_v45 = vadd.f32 %v8387_v43, %v8381_v34 }
 0x661   :  { %v8392_v47 = vadd.f32 %v8380_v51, %v15299_v46  ;;  %v8436_v46 = vsel %vm5797_vm9, %v8433_v20, %v8435_v60  ;;  %v11834_v20 = vld [vmem:[%s15618_s3 + $0x30] ss:$24 sps:$4 sm:$0xff]   ;;  %vm8522_vm9 = vcmask 404480  }
 0x662   :  { %v8428_v56 = vadd.f32 %v8415_v19, %v8393_v45  ;;  %v11845_v60 = vld [vmem:[%s15618_s3 + $0x38] ss:$24 sps:$4 sm:$0xff]  }
 0x663   :  { %v8427_v59 = vadd.f32 %v8416_v30, %v8392_v47 }
 0x665   :  { %v10420_v38 = vpack.c.bf16 %v8428_v56, %v8427_v59  ;;  %v11847_v59 = vld [vmem:[%s15618_s3 + $0x3c] ss:$24 sps:$4 sm:$0xff]  }
 0x667   :  { %10422 = vmatprep.subr.msk.bf16.mxu1 %vm10421_vm3, %v10420_v38 }
 0x668   :  { %10425 = vmatpush3.bf16.msk.msra.mxu1 %vm10421_vm3, %v10420_v38  ;;  %v11850_v38 = vld [vmem:[%s15618_s3 + $0x6c] ss:$24 sps:$4 sm:$0xff]  }
 0x669   :  { %8715 = vmatprep.subr.bf16.mxu1 %v11833_v5  ;;  %v11848_v5 = vld [vmem:[%s15618_s3 + $0x68] ss:$24 sps:$4 sm:$0xff]  }
 0x66b   :  { %10405 = vmatmul.mubr.msk.f32.vlgmr.msra.gmra.mrb[248].mxu1 %vm8437_vm15, %v8436_v46  ;;  %v8587_v46 = vld [vmem:[%s15618_s3 + $0x98] sm:$0x11] }
 0x66c   :  { %8747 = vmatprep.mubr.bf16.mxu1 %v11998_v50  ;;  %8716 = vmatpush1.bf16.msra.mxu1 %v11831_v16  ;;  %v9907_v16 = vcombine.high %v8587_v46, %v8587_v46 }
 0x66d   :  { %8717 = vmatprep.subr.bf16.mxu1 %v11836_v18  ;;  %v9906_v18 = vcombine.low %v8587_v46, %v8587_v46 }
 0x670   :  { %8718 = vmatpush1.bf16.msra.mxu1 %v11834_v20  ;;  %v8704_v20 = vsel %vm8358_vm0, %v9906_v18, 0 }
 0x671   :  { %8719 = vmatprep.subr.bf16.mxu1 %v11839_v37  ;;  %v11853_v37 = vld [vmem:[%s15618_s3 + $0x10] ss:$24 sps:$4 sm:$0xff]  }
 0x674   :  { %8720 = vmatpush1.bf16.msra.mxu1 %v11837_v2  ;;  %v11855_v2 = vld [vmem:[%s15618_s3 + $0x14] ss:$24 sps:$4 sm:$0xff]  }
 0x675   :  { %9910 = vmatprep.subr.msk.bf16.mxu1 %vm8358_vm0, %v9905_v25  ;;  %v11856_v25 = vld [vmem:[%s15618_s3 + $0x40] ss:$24 sps:$4 sm:$0xff]  }
 0x678   :  { %8722 = vmatpush1.bf16.msra.mxu1 %v8698_v27  ;;  %v8588_v27 = vld [vmem:[%s15618_s3 + $0xa0] sm:$0x11] }
 0x679   :  { %8758 = vmatprep.subr.bf16.mxu1 %v11844_v6  ;;  %v11859_v6 = vld [vmem:[%s15618_s3 + $0x70] ss:$24 sps:$4 sm:$0xff]  }
 0x73e   :  { %v10406_v55 = vpop.f32.mrb[248].mxu1 }
 0x73f   :  { %v8523_v39 = vsel %vm8522_vm9, %v10406_v55, 0.0  ;;  %v8511_v22 = vpop.f32.mrb[249].mxu1 }
 0x740   :  { %v8521_v44 = vsel %vm8520_vm4, %v8511_v22, 0.0 }
 0x741   :  { %v8524_v10 = vadd.f32 %v8523_v39, %v8521_v44  ;;  %v9908_v39 = vcombine.low %v8588_v27, %v8588_v27 }
 0x743   :  { %v8525_v54 = vrot.slane %v8524_v10, 4 }
 0x745   :  { %v8526_v31 = vadd.f32 %v8525_v54, %v8524_v10 }
 0x747   :  { %v8527_v7 = vrot.slane %v8526_v31, 2 }
 0x749   :  { %v8528_v41 = vadd.f32 %v8527_v7, %v8526_v31 }
 0x74b   :  { %v8529_v9 = vrot.slane %v8528_v41, 1 }
 0x74d   :  { %v8530_v29 = vadd.f32 %v8529_v9, %v8528_v41 }
 0x74f   :  { %v8532_v33 = vmul.f32 0.083333336, %v8530_v29 }
 0x751   :  { %v8533_v28 = vsub.f32 %v8511_v22, %v8532_v33  ;;  %v8534_v49 = vsub.f32 %v10406_v55, %v8532_v33  ;;  %v9909_v55 = vcombine.high %v8588_v27, %v8588_v27  ;;  %v12000_v22 = vmov 0.0  }
 0x753   :  { %v8535_v58 = vmul.f32 %v8533_v28, %v8533_v28  ;;  %v8536_v52 = vmul.f32 %v8534_v49, %v8534_v49 }
 0x755   :  { %v8537_v53 = vsel %vm8520_vm4, %v8535_v58, 0.0  ;;  %v8538_v13 = vsel %vm8522_vm9, %v8536_v52, 0.0 }
 0x756   :  { %v8539_v62 = vadd.f32 %v8538_v13, %v8537_v53 }
 0x758   :  { %v8540_v11 = vrot.slane %v8539_v62, 4 }
 0x75a   :  { %v8541_v57 = vadd.f32 %v8540_v11, %v8539_v62 }
 0x75c   :  { %v8542_v42 = vrot.slane %v8541_v57, 2 }
 0x75e   :  { %v8543_v48 = vadd.f32 %v8542_v42, %v8541_v57 }
 0x760   :  { %v8544_v8 = vrot.slane %v8543_v48, 1 }
 0x762   :  { %v8545_v1 = vadd.f32 %v8544_v8, %v8543_v48 }
 0x764   :  { %v8546_v3 = vmul.f32 0.083333336, %v8545_v1 }
 0x766   :  { %v8547_v12 = vadd.f32 0.001, %v8546_v3 }
 0x768   :  { %11912 = vrsqrt.f32 %v8547_v12 }
 0x772   :  { %v11913_v15 = vpop.eup %11912 }
 0x773   :  { %v8549_v61 = vmul.f32 %v11913_v15, %v8533_v28  ;;  %v8550_v4 = vmul.f32 %v11913_v15, %v8534_v49 }
 0x775   :  { %v8551_v17 = vmul.f32 %v8549_v61, %v27_v35  ;;  %v8552_v14 = vmul.f32 %v8550_v4, %v27_v35 }
 0x777   :  { %v8553_v32 = vadd.f32 %v8551_v17, %v28_v21  ;;  %v8554_v0 = vadd.f32 %v8552_v14, %v28_v21 }
 0x779   :  { %v8557_v40 = vmin.f32 %v8553_v32, 0.0  ;;  %v8558_v36 = vmin.f32 %v8554_v0, 0.0  ;;  %vm8555_vm6 = vcmp.gt.f32.partialorder %v8553_v32, 0.0  ;;  %vm8556_vm7 = vcmp.gt.f32.partialorder %v8554_v0, 0.0 }
 0x77b   :  { %v8559_v23 = vmul.f32 1.442695, %v8557_v40  ;;  %v8561_v34 = vmul.f32 1.442695, %v8558_v36 }
 0x77d   :  { %11914 = vpow2.f32 %v8559_v23 }
 0x77e   :  { %11916 = vpow2.f32 %v8561_v34  ;;  %v33_v34 = vld [vmem:[%s15619_s4 + $0x30] sm:$0xc] }
 0x787   :  { %v11915_v19 = vpop.eup %11914 }
 0x788   :  { %v11917_v51 = vpop.eup %11916  ;;  %v9884_v43 = vadd.f32 -1.0, %v11915_v19 }
 0x789   :  { %v9885_v45 = vadd.f32 -1.0, %v11917_v51 }
 0x78a   :  { %v8565_v47 = vsel %vm8555_vm6, %v8553_v32, %v9884_v43 }
 0x78b   :  { %v8566_v30 = vsel %vm8556_vm7, %v8554_v0, %v9885_v45  ;;  %v8899_v45 = vrot.slane %v33_v34, 2 }
 0x78c   :  { %v8567_v56 = vpack.c.bf16 %v8566_v30, %v8565_v47 }
 0x78e   :  { %9911 = vmatmul.mubr.msk.bf16.vlgmr.msra.gmra.mrb[252].mxu1 %vm8520_vm4, %v8567_v56 }
 0x78f   :  { %8759 = vmatpush1.bf16.msra.mxu1 %v11842_v63  ;;  %8790 = vmatprep.mubr.bf16.mxu1 %v11998_v50  ;;  %v29_v63 = vld [vmem:[%s15619_s4 + $0x5] ss:$0 sm:$0xff]  ;;  %s11974_s4 = scalar_lea.vmem %s8996_s2, 32 }
 0x790   :  { %8760 = vmatprep.subr.bf16.mxu1 %v11847_v59  ;;  %p11975_p0 = scmp.ne.s32.totalorder %s8996_s2, %s11974_s4  ;;  %p11980_p2 = scmp.lt.s32.totalorder %s11974_s4, %s11974_s4 }
 0x792   :  { %p11981_p3 = por %p11980_p2, %p11979_p1 }
 0x793   :  { %8761 = vmatpush1.bf16.msra.mxu1 %v11845_v60 }
 0x794   :  { %8762 = vmatprep.subr.bf16.mxu1 %v11850_v38  ;;  %p11982_p4 = pnand %p11981_p3, %p11975_p0 }
 0x797   :  { %8763 = vmatpush1.bf16.msra.mxu1 %v11848_v5 }
 0x798   :  { %9912 = vmatprep.subr.msk.bf16.mxu1 %vm8358_vm0, %v9907_v16 }
 0x79b   :  { %8765 = vmatpush1.bf16.msra.mxu1 %v8704_v20 }
 0x79c   :  { %8801 = vmatprep.subr.bf16.mxu1 %v11855_v2 }
 0x79e   :  { %9913 = vmatmul.mubr.msk.bf16.vlgmr.msra.gmra.mrb[0].mxu1 %vm8520_vm4, %v8567_v56 }
 0x79f   :  { %8802 = vmatpush1.bf16.msra.mxu1 %v11853_v37  ;;  %8833 = vmatprep.mubr.bf16.mxu1 %v11998_v50  ;;  %v8710_v50 = vsel %vm8358_vm0, %v9908_v39, 0 }
 0x7a0   :  { %8803 = vmatprep.subr.bf16.mxu1 %v11858_v24 }
 0x7a3   :  { %8804 = vmatpush1.bf16.msra.mxu1 %v11856_v25 }
 0x7a4   :  { %8805 = vmatprep.subr.bf16.mxu1 %v11861_v26 }
 0x7a7   :  { %8806 = vmatpush1.bf16.msra.mxu1 %v11859_v6 }
 0x7a8   :  { %9914 = vmatprep.subr.msk.bf16.mxu1 %vm8358_vm0, %v9909_v55 }
 0x7ab   :  { %8808 = vmatpush1.bf16.msra.mxu1 %v8710_v50 }
 0x7ac   :  { %10407 = vmatprep.subr.mxu1 %v12000_v22 }
 0x7ae   :  { %9915 = vmatmul.mubr.msk.bf16.vlgmr.msra.gmra.mrb[4].mxu1 %vm8520_vm4, %v8567_v56 }
 0x7af   :  { %10409 = vmatprep.mubr.msk.f32.mxu1 %vm12001_vm8, %v12000_v22 }
 0x861   :  { %v8749_v44 = vpop.f32.mrb[252].mxu1 }
 0x862   :  { %8844 = vst [vmem:[#allocation3] sm:$0xff] %v8749_v44  ;;  %v8751_v10 = vpop.f32.mrb[253].mxu1 }
 0x863   :  { %8845 = vst [vmem:[#allocation3 + $0x8] sm:$0xff] %v8751_v10  ;;  %v8753_v54 = vpop.f32.mrb[254].mxu1 }
 0x864   :  { %v8755_v31 = vpop.f32.mrb[255].mxu1 }
 0x869   :  { %v8856_v8 = vld [vmem:[#allocation3] sm:$0x7f] }
 0x86a   :  { %v8857_v28 = vld [vmem:[#allocation3 + $0x8] sm:$0xfe] }
 0x86b   :  { %v8859_v62 = vrot.slane %v8857_v28, 1 }
 0x86d   :  { %v8861_v12 = vadd.f32 %v8859_v62, %v8856_v8 }
 0x871   :  { %v8792_v7 = vpop.f32.mrb[0].mxu1 }
 0x872   :  { %8846 = vst [vmem:[#allocation3 + $0x10] sm:$0xff] %v8792_v7  ;;  %v8794_v41 = vpop.f32.mrb[1].mxu1 }
 0x873   :  { %8847 = vst [vmem:[#allocation3 + $0x18] sm:$0xff] %v8794_v41  ;;  %v8796_v9 = vpop.f32.mrb[2].mxu1 }
 0x874   :  { %8852 = vst [vmem:[#allocation3 + $0x40] sm:$0xf] %v8796_v9  ;;  %v8798_v29 = vpop.f32.mrb[3].mxu1 }
 0x875   :  { %8853 = vst [vmem:[#allocation3 + $0x48] sm:$0xf] %v8798_v29 }
 0x879   :  { %v8862_v58 = vld [vmem:[#allocation3 + $0x10] sm:$0xfc] }
 0x87a   :  { %v8866_v42 = vrot.slane %v8862_v58, 2  ;;  %v8871_v48 = vld [vmem:[#allocation3 + $0x18] sm:$0xf8] }
 0x87b   :  { %v8863_v33 = vld [vmem:[#allocation3 + $0x40] sm:$0x1]  ;;  %v8875_v15 = vrot.slane %v8871_v48, 3 }
 0x87c   :  { %v8867_v53 = vrot.slane %v8863_v33, 2  ;;  %v8872_v11 = vld [vmem:[#allocation3 + $0x48] sm:$0x3] }
 0x87d   :  { %v8876_v3 = vrot.slane %v8872_v11, 3 }
 0x87e   :  { %v8868_v1 = vsel %vm7315_vm5, %v8866_v42, %v8867_v53  ;;  %vm8900_vm5 = vcmask 56320  }
 0x87f   :  { %v8870_v35 = vadd.f32 %v8868_v1, %v8861_v12  ;;  %v8877_v4 = vsel %vm8215_vm13, %v8875_v15, %v8876_v3 }
 0x881   :  { %v8835_v49 = vpop.f32.mrb[4].mxu1  ;;  %v8879_v40 = vadd.f32 %v8877_v4, %v8870_v35 }
 0x882   :  { %8848 = vst [vmem:[#allocation3 + $0x20] sm:$0xff] %v8835_v49  ;;  %v8837_v52 = vpop.f32.mrb[5].mxu1 }
 0x883   :  { %8849 = vst [vmem:[#allocation3 + $0x28] sm:$0xff] %v8837_v52  ;;  %v8839_v13 = vpop.f32.mrb[6].mxu1 }
 0x884   :  { %8854 = vst [vmem:[#allocation3 + $0x50] sm:$0xf] %v8839_v13  ;;  %v8841_v57 = vpop.f32.mrb[7].mxu1 }
 0x885   :  { %8855 = vst [vmem:[#allocation3 + $0x58] sm:$0xf] %v8841_v57 }
 0x889   :  { %v8880_v61 = vld [vmem:[#allocation3 + $0x20] sm:$0xf0] }
 0x88a   :  { %v8889_v21 = vld [vmem:[#allocation3 + $0x28] sm:$0xe0]  ;;  %v8884_v14 = vrot.slane %v8880_v61, 4 }
 0x88b   :  { %v8881_v17 = vld [vmem:[#allocation3 + $0x50] sm:$0x7]  ;;  %v8893_v36 = vrot.slane %v8889_v21, 5 }
 0x88c   :  { %v8885_v32 = vrot.slane %v8881_v17, 4  ;;  %v8890_v0 = vld [vmem:[#allocation3 + $0x58] sm:$0xf] }
 0x88d   :  { %v8894_v23 = vrot.slane %v8890_v0, 5 }
 0x88e   :  { %v8886_v19 = vsel %vm8251_vm1, %v8884_v14, %v8885_v32 }
 0x88f   :  { %v8888_v51 = vadd.f32 %v8886_v19, %v8879_v40  ;;  %v8895_v43 = vsel %vm8287_vm14, %v8893_v36, %v8894_v23 }
 0x891   :  { %v8897_v47 = vadd.f32 %v8895_v43, %v8888_v51 }
 0x893   :  { %10408 = vmatpush3.msk.msra.mxu1 %vm8144_vm12, %v8897_v47 }
 0x894   :  { %10410 = vmatmul.mubr.msk.f32.vlgmr.msra.gmra.mrb[250].mxu1 %vm8900_vm5, %v8899_v45 }
 0x967   :  { %v8972_v30 = vpop.f32.mrb[250].mxu1 }
 0x968   :  { %v8973_v56 = vadd.f32 %v8972_v30, %v29_v63  ;;  %v10411_v59 = vpop.f32.mrb[251].mxu1 }
 0x96a   :  { %v8977_v60 = vsel %vm8976_vm10, %v8973_v56, -inf }
 0x96b   :  { %8978 = vmax.xlane.f32.xlu0 %v8977_v60 }
 0x9f8   :  { %v8979_v38 = vpop.xlane.xlu0 %8978 }
 0x9f9   :  { %v8980_v46 = vsub.f32 %v8973_v56, %v8979_v38 }
 0x9fb   :  { %v8981_v5 = vmul.f32 1.442695, %v8980_v46 }
 0x9fd   :  { %11918 = vpow2.f32 %v8981_v5 }
 0xa07   :  { %v11919_v16 = vpop.eup %11918 }
 0xa08   :  { %v8983_v18 = vsel %vm8976_vm10, %v11919_v16, 0.0 }
 0xa09   :  { %8984 = vadd.xlane.f32.xlu0 %v8983_v18 }
 0xa96   :  { %v8985_v20 = vpop.xlane.xlu0 %8984 }
 0xa97   :  { %11920 = vrcp.f32 %v8985_v20 }
 0xaa1   :  { %v11921_v2 = vpop.eup %11920 }
 0xaa2   :  { %v8987_v37 = vmul.f32 %v11921_v2, %v11919_v16 }
 0xaa4   :  { %8988 = vst.msk [vmem:[#allocation4] sm:$0x3] %vm8976_vm10, %v8987_v37 }
 0xaa5   :  { %11985 = shalt.err (!%p11982_p4)
}
 0xaa6   :  { %s11986_s23 = scalar_lea.hbm %s15620_s5, 32 }
 0xaa7   :  { %p11987_p5 = scmp.ne.s32.totalorder %s15620_s5, %s11986_s23  ;;  %p11990_p6 = scmp.lt.u32.totalorder %s11986_s23, %s15620_s5 }
 0xaa9   :  { %p11992_p7 = pnand %p11990_p6, %p11987_p5 }
 0xaab   :  { %11995 = shalt.err (!%p11992_p7)
}
 0xaac   :  { %8998 = dma.vmem_to_hbm [thread:$0]  %s8996_s2, 32, %s15620_s5, [#allocation5]  }
 0xaad   :  { %11996 = dma.done.wait [#allocation5], 32  }
 0xaae   :  { %11997 = vsyncadd [#allocation5], 4294967264 }
 0xaaf   :  { %9002 = vsyncpa [#allocation5], 1 }

</bundles_post_ra>
